<compile_context>
chip_gen: v7x
topology: tpu7x:2x2x1
jax: 0.10.0
libtpu: 0.0.40
codegen_flags: <defaults>
</compile_context>

<pallas_src>
import math

import jax
import jax.numpy as jnp
from jax import lax
from jax.experimental import pallas as pl
from jax.experimental.pallas import tpu as pltpu


def _round_up(n, m):
    return ((n + m - 1) // m) * m


# ------------------------------- fused kernel --------------------------------

def _make_fused_kernel(enc_cfgs, dec_cfgs, *, K, B, T, t_len, pool_step, Cp):
    """Builds the single fused forward kernel (static unroll over layers)."""

    def kernel(*refs):
        cols_ref = refs[-1]                     # (K*Cp, B*T) im2col scratch
        o_ref = refs[-2]                        # (B, c_fin, t_len) output
        it = iter(refs[:-2])
        x = next(it)[...].astype(jnp.float32)   # (Cp, B*T), batch in lanes

        def conv(xv, w_ref, b_ref, d):
            # "same" zero-padded dilated conv as ONE MXU matmul via im2col:
            #   cols[k*Cp + c, b*T + t] = xpad[c, b, t + k*d - left]
            # (zero outside the valid range; only valid slices are written
            #  into the pre-zeroed scratch, so nothing padded hits HBM).
            left = (K - 1) * d // 2
            cols_ref[...] = jnp.zeros(cols_ref.shape, jnp.float32)
            for k in range(K):                  # static unroll over taps
                shift = k * d - left
                dst0 = max(0, -shift)
                n = T - abs(shift)
                src0 = dst0 + shift
                for b in range(B):              # batch folded into lanes
                    cols_ref[k * Cp:(k + 1) * Cp,
                             b * T + dst0:b * T + dst0 + n] = \
                        xv[:, b * T + src0:b * T + src0 + n]
            return jnp.dot(w_ref[...], cols_ref[...],
                           preferred_element_type=jnp.float32) + b_ref[...]

        def tcn_block(xv, cfg):
            w1, b1, w2, b2 = next(it), next(it), next(it), next(it)
            d = cfg["dilation"]
            h = jnp.maximum(conv(xv, w1, b1, d), 0.0)    # relu1 (dropout = id)
            y = jnp.maximum(conv(h, w2, b2, d), 0.0)     # relu2 (dropout = id)
            if cfg["has_res"]:
                wr, br = next(it), next(it)
                res = jnp.dot(wr[...], xv,
                              preferred_element_type=jnp.float32) + br[...]
            else:
                res = xv
            return jnp.maximum(y + res, 0.0)             # final relu

        for cfg in enc_cfgs:
            x = tcn_block(x, cfg)

        # ---- latent 1x1 conv ----
        wl, bl = next(it), next(it)
        x = jnp.dot(wl[...], x, preferred_element_type=jnp.float32) + bl[...]

        # ---- avg_pool1d(pool_step) + nearest Upsample(size=t_len) ----
        # Per-sample matmul against a (T, t_len) matrix built in-kernel from
        # iotas and static rectangle bounds (no int division, no HBM constant).
        Tp = T // pool_step
        ti = lax.broadcasted_iota(jnp.int32, (T, 1), 0)
        tj = lax.broadcasted_iota(jnp.int32, (1, t_len), 1)
        m = jnp.zeros((T, t_len), jnp.float32)
        for q in range(Tp):                     # static, Tp is small
            lo = (q * t_len + Tp - 1) // Tp     # cols whose nearest idx == q
            hi = ((q + 1) * t_len + Tp - 1) // Tp
            row_f = jnp.where((ti >= q * pool_step) & (ti < (q + 1) * pool_step),
                              1.0 / pool_step, 0.0)      # (T, 1)
            col_f = jnp.where((tj >= lo) & (tj < hi), 1.0, 0.0)  # (1, t_len)
            m = m + row_f * col_f
        x = jnp.concatenate(
            [jnp.dot(x[:, b * T:(b + 1) * T], m,
                     preferred_element_type=jnp.float32) for b in range(B)],
            axis=1)                             # (Cp, B*t_len)

        for cfg in dec_cfgs:
            x = tcn_block(x, cfg)

        # ---- final Linear over channels (per time step) ----
        wf, bf = next(it), next(it)
        y = jnp.dot(wf[...], x, preferred_element_type=jnp.float32) + bf[...]
        for b in range(B):
            o_ref[b] = y[:, b * t_len:(b + 1) * t_len].astype(o_ref.dtype)

    return kernel


# ------------------------------ Pallas wrapper --------------------------------

def _pad_rows(a, rows):
    return jnp.pad(a, ((0, rows - a.shape[0]), (0, 0)))


def _pad_cols(a, cols):
    return jnp.pad(a, ((0, 0), (0, cols - a.shape[1])))


def _flatten_taps(w, cp):
    # (C_out, C_in, K) -> (C_out, K*cp); flat column index = k*cp + c_in.
    c_out, c_in, k = w.shape
    wp = jnp.pad(w, ((0, 0), (0, cp - c_in), (0, 0)))
    return jnp.transpose(wp, (0, 2, 1)).reshape(c_out, k * cp)


def pallas_tcn_autoencoder(x, params, *, kernel_size, pool_step, t_len):
    """Fused TCNAutoencoder forward.  x: (B, C_in, T) -> (B, C_in, t_len)."""
    B, c_in, T = x.shape
    K = kernel_size
    c_blk = params["encoder"][0]["w1"].shape[0]
    c_lat = params["latent_w"].shape[0]
    c_fin = params["final_w"].shape[0]
    Cp = _round_up(max(c_in, c_blk, c_lat), 8)   # padded channel width

    # TODO(synk): support input length != t_len (decoder then runs at t_len and
    # needs a second im2col scratch width); the demo uses input length == t_len.
    assert T == t_len, "fused kernel assumes input length == t_len"
    assert T % pool_step == 0, "avg_pool1d window must divide the length"
    for p in params["encoder"] + params["decoder"]:
        assert (K - 1) * p["dilation"] < T

    # Fold batch into lanes: (B, C, T) -> (Cp, B*T), channels zero-padded to Cp.
    x2 = jnp.pad(jnp.transpose(x, (1, 0, 2)).reshape(c_in, B * T),
                 ((0, Cp - c_in), (0, 0)))

    def block_inputs(p):
        cfg = dict(dilation=int(p["dilation"]), has_res=p["w_res"] is not None)
        ins = [_pad_rows(_flatten_taps(p["w1"], Cp), Cp),
               _pad_rows(p["b1"].reshape(-1, 1), Cp),
               _pad_rows(_flatten_taps(p["w2"], Cp), Cp),
               _pad_rows(p["b2"].reshape(-1, 1), Cp)]
        if cfg["has_res"]:
            ins += [_pad_rows(_pad_cols(p["w_res"][:, :, 0], Cp), Cp),
                    _pad_rows(p["b_res"].reshape(-1, 1), Cp)]
        return cfg, ins

    inputs = [x2]
    enc_cfgs, dec_cfgs = [], []
    for p in params["encoder"]:
        cfg, ins = block_inputs(p)
        enc_cfgs.append(cfg)
        inputs += ins
    inputs += [_pad_rows(_pad_cols(params["latent_w"][:, :, 0], Cp), Cp),
               _pad_rows(params["latent_b"].reshape(-1, 1), Cp)]
    for p in params["decoder"]:
        cfg, ins = block_inputs(p)
        dec_cfgs.append(cfg)
        inputs += ins
    inputs += [_pad_cols(params["final_w"], Cp),
               params["final_b"].reshape(-1, 1)]

    kernel = _make_fused_kernel(enc_cfgs, dec_cfgs, K=K, B=B, T=T, t_len=t_len,
                                pool_step=pool_step, Cp=Cp)

    def full_spec(a):
        return pl.BlockSpec(a.shape, lambda i, _nd=a.ndim: (0,) * _nd)

    return pl.pallas_call(
        kernel,
        out_shape=jax.ShapeDtypeStruct((B, c_fin, t_len), x.dtype),
        grid=(1,),                               # single step, single TC
        in_specs=[full_spec(a) for a in inputs],
        out_specs=pl.BlockSpec((B, c_fin, t_len), lambda i: (0, 0, 0)),
        scratch_shapes=[pltpu.VMEM((K * Cp, B * T), jnp.float32)],
    )(*inputs)


# ------------------------------ Parameter init --------------------------------

def _xavier_normal(key, shape):
    # shape = (C_out, C_in, K): fan_in = C_in*K, fan_out = C_out*K
    fan_in = shape[1] * shape[2]
    fan_out = shape[0] * shape[2]
    std = math.sqrt(2.0 / (fan_in + fan_out))
    return std * jax.random.normal(key, shape, dtype=jnp.float32)


def init_params(key, input_size, output_size, kernel_size, n_blocks, latent_size):
    keys = iter(jax.random.split(key, 128))

    def conv_params(cin, cout, k):
        w = _xavier_normal(next(keys), (cout, cin, k))
        bound = 1.0 / math.sqrt(cin * k)
        b = jax.random.uniform(next(keys), (cout,), minval=-bound, maxval=bound,
                               dtype=jnp.float32)
        return w, b

    def block_params(cin, cout, dilation):
        w1, b1 = conv_params(cin, cout, kernel_size)
        w2, b2 = conv_params(cout, cout, kernel_size)
        if cin != cout:
            wr, br = conv_params(cin, cout, 1)
        else:
            wr, br = None, None
        return dict(w1=w1, b1=b1, w2=w2, b2=b2, w_res=wr, b_res=br,
                    dilation=dilation)

    encoder = [block_params(input_size, output_size, 1)]
    for n in range(1, n_blocks):
        encoder.append(block_params(output_size, output_size, 2 ** n))
    latent_w, latent_b = conv_params(output_size, latent_size, 1)
    decoder = [block_params(latent_size, output_size, 2 ** (n_blocks - 1))]
    for n in reversed(range(n_blocks - 1)):
        decoder.append(block_params(output_size, output_size, 2 ** n))
    fw, fb = conv_params(output_size, input_size, 1)   # Linear(out_size -> in)
    return dict(encoder=encoder, latent_w=latent_w, latent_b=latent_b,
                decoder=decoder, final_w=fw[:, :, 0], final_b=fb)


# ----------------------- Pure-JAX reference (validation) ----------------------

def _ref_conv(xp, w, b, d):
    y = lax.conv_general_dilated(xp, w, window_strides=(1,), padding="VALID",
                                 rhs_dilation=(d,),
                                 dimension_numbers=("NCH", "OIH", "NCH"),
                                 precision=lax.Precision.HIGHEST)
    return y + b[None, :, None]


def ref_forward(x, params, *, kernel_size, pool_step, t_len):
    def block(x, p):
        d = p["dilation"]
        left = math.floor((kernel_size - 1) * d / 2)
        right = math.ceil((kernel_size - 1) * d / 2)
        pad = lambda a: jnp.pad(a, ((0, 0), (0, 0), (left, right)))
        h = jax.nn.relu(_ref_conv(pad(x), p["w1"], p["b1"], d))
        h2 = jax.nn.relu(_ref_conv(pad(h), p["w2"], p["b2"], d))
        res = x if p["w_res"] is None else _ref_conv(x, p["w_res"], p["b_res"], 1)
        return jax.nn.relu(h2 + res)

    for p in params["encoder"]:
        x = block(x, p)
    x = _ref_conv(x, params["latent_w"], params["latent_b"], 1)
    B, C, T = x.shape
    x = x.reshape(B, C, T // pool_step, pool_step).mean(-1)
    idx = (jnp.arange(t_len) * (T // pool_step)) // t_len
    x = jnp.take(x, idx, axis=-1)
    for p in params["decoder"]:
        x = block(x, p)
    x = jnp.einsum("bct,oc->bot", x, params["final_w"],
                   precision=lax.Precision.HIGHEST) \
        + params["final_b"][None, :, None]
    return x


# ----------------------------------- Main -------------------------------------

if __name__ == "__main__":
    # Small shapes consistent with the module's forward; t_len=128 keeps every
    # in-kernel matmul lane-dense and the batch-folded N dimension at 256.
    input_size, output_size = 4, 8
    kernel_size, n_blocks, latent_size = 5, 2, 4
    t_len, pool_step = 128, 16
    batch = 2

    key = jax.random.PRNGKey(0)
    kp, kx = jax.random.split(key)
    params = init_params(kp, input_size, output_size, kernel_size, n_blocks,
                         latent_size)
    x = jax.random.normal(kx, (batch, input_size, t_len), dtype=jnp.float32)

    fwd = jax.jit(lambda inp: pallas_tcn_autoencoder(
        inp, params, kernel_size=kernel_size, pool_step=pool_step, t_len=t_len))
    out = jax.block_until_ready(fwd(x))

    assert out.shape == (batch, input_size, t_len), out.shape
    ref = ref_forward(x, params, kernel_size=kernel_size,
                      pool_step=pool_step, t_len=t_len)
    err = float(jnp.max(jnp.abs(out - ref)))
    assert jnp.all(jnp.isfinite(out)) and err < 1e-3, f"max abs err {err}"

    print("KERNEL_OK")
</pallas_src>

<mosaic_0001>
module attributes {stable_mosaic.version = 11 : i64} {
  func.func @kernel(%arg0: i32, %arg1: memref<8x256xf32, #tpu.memory_space<vmem>>, %arg2: memref<8x40xf32, #tpu.memory_space<vmem>>, %arg3: memref<8x1xf32, #tpu.memory_space<vmem>>, %arg4: memref<8x40xf32, #tpu.memory_space<vmem>>, %arg5: memref<8x1xf32, #tpu.memory_space<vmem>>, %arg6: memref<8x8xf32, #tpu.memory_space<vmem>>, %arg7: memref<8x1xf32, #tpu.memory_space<vmem>>, %arg8: memref<8x40xf32, #tpu.memory_space<vmem>>, %arg9: memref<8x1xf32, #tpu.memory_space<vmem>>, %arg10: memref<8x40xf32, #tpu.memory_space<vmem>>, %arg11: memref<8x1xf32, #tpu.memory_space<vmem>>, %arg12: memref<8x8xf32, #tpu.memory_space<vmem>>, %arg13: memref<8x1xf32, #tpu.memory_space<vmem>>, %arg14: memref<8x40xf32, #tpu.memory_space<vmem>>, %arg15: memref<8x1xf32, #tpu.memory_space<vmem>>, %arg16: memref<8x40xf32, #tpu.memory_space<vmem>>, %arg17: memref<8x1xf32, #tpu.memory_space<vmem>>, %arg18: memref<8x8xf32, #tpu.memory_space<vmem>>, %arg19: memref<8x1xf32, #tpu.memory_space<vmem>>, %arg20: memref<8x40xf32, #tpu.memory_space<vmem>>, %arg21: memref<8x1xf32, #tpu.memory_space<vmem>>, %arg22: memref<8x40xf32, #tpu.memory_space<vmem>>, %arg23: memref<8x1xf32, #tpu.memory_space<vmem>>, %arg24: memref<4x8xf32, #tpu.memory_space<vmem>>, %arg25: memref<4x1xf32, #tpu.memory_space<vmem>>, %arg26: memref<2x4x128xf32, #tpu.memory_space<vmem>>, %arg27: memref<40x256xf32, #tpu.memory_space<vmem>>) attributes {dimension_semantics = [#tpu.dimension_semantics<arbitrary>], iteration_bounds = array<i64: 1>, scalar_prefetch = 0 : i64, scratch_operands = 1 : i64, tpu.core_type = #tpu.core_type<tc>, window_params = [{pipeline_mode = #tpu.pipeline_mode<synchronous>, transform_indices = @transform_0, window_bounds = array<i64: 8, 256>}, {pipeline_mode = #tpu.pipeline_mode<synchronous>, transform_indices = @transform_1, window_bounds = array<i64: 8, 40>}, {pipeline_mode = #tpu.pipeline_mode<synchronous>, transform_indices = @transform_2, window_bounds = array<i64: 8, 1>}, {pipeline_mode = #tpu.pipeline_mode<synchronous>, transform_indices = @transform_3, window_bounds = array<i64: 8, 40>}, {pipeline_mode = #tpu.pipeline_mode<synchronous>, transform_indices = @transform_4, window_bounds = array<i64: 8, 1>}, {pipeline_mode = #tpu.pipeline_mode<synchronous>, transform_indices = @transform_5, window_bounds = array<i64: 8, 8>}, {pipeline_mode = #tpu.pipeline_mode<synchronous>, transform_indices = @transform_6, window_bounds = array<i64: 8, 1>}, {pipeline_mode = #tpu.pipeline_mode<synchronous>, transform_indices = @transform_7, window_bounds = array<i64: 8, 40>}, {pipeline_mode = #tpu.pipeline_mode<synchronous>, transform_indices = @transform_8, window_bounds = array<i64: 8, 1>}, {pipeline_mode = #tpu.pipeline_mode<synchronous>, transform_indices = @transform_9, window_bounds = array<i64: 8, 40>}, {pipeline_mode = #tpu.pipeline_mode<synchronous>, transform_indices = @transform_10, window_bounds = array<i64: 8, 1>}, {pipeline_mode = #tpu.pipeline_mode<synchronous>, transform_indices = @transform_11, window_bounds = array<i64: 8, 8>}, {pipeline_mode = #tpu.pipeline_mode<synchronous>, transform_indices = @transform_12, window_bounds = array<i64: 8, 1>}, {pipeline_mode = #tpu.pipeline_mode<synchronous>, transform_indices = @transform_13, window_bounds = array<i64: 8, 40>}, {pipeline_mode = #tpu.pipeline_mode<synchronous>, transform_indices = @transform_14, window_bounds = array<i64: 8, 1>}, {pipeline_mode = #tpu.pipeline_mode<synchronous>, transform_indices = @transform_15, window_bounds = array<i64: 8, 40>}, {pipeline_mode = #tpu.pipeline_mode<synchronous>, transform_indices = @transform_16, window_bounds = array<i64: 8, 1>}, {pipeline_mode = #tpu.pipeline_mode<synchronous>, transform_indices = @transform_17, window_bounds = array<i64: 8, 8>}, {pipeline_mode = #tpu.pipeline_mode<synchronous>, transform_indices = @transform_18, window_bounds = array<i64: 8, 1>}, {pipeline_mode = #tpu.pipeline_mode<synchronous>, transform_indices = @transform_19, window_bounds = array<i64: 8, 40>}, {pipeline_mode = #tpu.pipeline_mode<synchronous>, transform_indices = @transform_20, window_bounds = array<i64: 8, 1>}, {pipeline_mode = #tpu.pipeline_mode<synchronous>, transform_indices = @transform_21, window_bounds = array<i64: 8, 40>}, {pipeline_mode = #tpu.pipeline_mode<synchronous>, transform_indices = @transform_22, window_bounds = array<i64: 8, 1>}, {pipeline_mode = #tpu.pipeline_mode<synchronous>, transform_indices = @transform_23, window_bounds = array<i64: 4, 8>}, {pipeline_mode = #tpu.pipeline_mode<synchronous>, transform_indices = @transform_24, window_bounds = array<i64: 4, 1>}, {pipeline_mode = #tpu.pipeline_mode<synchronous>, transform_indices = @transform_25, window_bounds = array<i64: 2, 4, 128>}]} {
    %c0 = arith.constant 0 : index
    %c0_0 = arith.constant 0 : index
    %0 = vector.load %arg1[%c0, %c0_0] : memref<8x256xf32, #tpu.memory_space<vmem>>, vector<8x256xf32>
    %cst = arith.constant 0.000000e+00 : f32
    %1 = vector.broadcast %cst : f32 to vector<40x256xf32>
    %c0_1 = arith.constant 0 : index
    %c0_2 = arith.constant 0 : index
    %2 = vector.load %arg27[%c0_1, %c0_2] : memref<40x256xf32, #tpu.memory_space<vmem>>, vector<40x256xf32>
    tpu.vector_store %arg27[%c0_1, %c0_2], %1 {strides = array<i32>} : memref<40x256xf32, #tpu.memory_space<vmem>>, vector<40x256xf32>,
    %3 = vector.extract_strided_slice %0 {offsets = [0, 0], sizes = [8, 126], strides = [1, 1]} : vector<8x256xf32> to vector<8x126xf32>
    %c0_3 = arith.constant 0 : index
    %c2 = arith.constant 2 : index
    %4 = vector.load %arg27[%c0_3, %c2] : memref<40x256xf32, #tpu.memory_space<vmem>>, vector<8x126xf32>
    tpu.vector_store %arg27[%c0_3, %c2], %3 {strides = array<i32>} : memref<40x256xf32, #tpu.memory_space<vmem>>, vector<8x126xf32>,
    %5 = vector.extract_strided_slice %0 {offsets = [0, 128], sizes = [8, 126], strides = [1, 1]} : vector<8x256xf32> to vector<8x126xf32>
    %c0_4 = arith.constant 0 : index
    %c130 = arith.constant 130 : index
    %6 = vector.load %arg27[%c0_4, %c130] : memref<40x256xf32, #tpu.memory_space<vmem>>, vector<8x126xf32>
    tpu.vector_store %arg27[%c0_4, %c130], %5 {strides = array<i32>} : memref<40x256xf32, #tpu.memory_space<vmem>>, vector<8x126xf32>,
    %7 = vector.extract_strided_slice %0 {offsets = [0, 0], sizes = [8, 127], strides = [1, 1]} : vector<8x256xf32> to vector<8x127xf32>
    %c8 = arith.constant 8 : index
    %c1 = arith.constant 1 : index
    %8 = vector.load %arg27[%c8, %c1] : memref<40x256xf32, #tpu.memory_space<vmem>>, vector<8x127xf32>
    tpu.vector_store %arg27[%c8, %c1], %7 {strides = array<i32>} : memref<40x256xf32, #tpu.memory_space<vmem>>, vector<8x127xf32>,
    %9 = vector.extract_strided_slice %0 {offsets = [0, 128], sizes = [8, 127], strides = [1, 1]} : vector<8x256xf32> to vector<8x127xf32>
    %c8_5 = arith.constant 8 : index
    %c129 = arith.constant 129 : index
    %10 = vector.load %arg27[%c8_5, %c129] : memref<40x256xf32, #tpu.memory_space<vmem>>, vector<8x127xf32>
    tpu.vector_store %arg27[%c8_5, %c129], %9 {strides = array<i32>} : memref<40x256xf32, #tpu.memory_space<vmem>>, vector<8x127xf32>,
    %11 = vector.extract_strided_slice %0 {offsets = [0, 0], sizes = [8, 128], strides = [1, 1]} : vector<8x256xf32> to vector<8x128xf32>
    %c16 = arith.constant 16 : index
    %c0_6 = arith.constant 0 : index
    %12 = vector.load %arg27[%c16, %c0_6] : memref<40x256xf32, #tpu.memory_space<vmem>>, vector<8x128xf32>
    tpu.vector_store %arg27[%c16, %c0_6], %11 {strides = array<i32>} : memref<40x256xf32, #tpu.memory_space<vmem>>, vector<8x128xf32>,
    %13 = vector.extract_strided_slice %0 {offsets = [0, 128], sizes = [8, 128], strides = [1, 1]} : vector<8x256xf32> to vector<8x128xf32>
    %c16_7 = arith.constant 16 : index
    %c128 = arith.constant 128 : index
    %14 = vector.load %arg27[%c16_7, %c128] : memref<40x256xf32, #tpu.memory_space<vmem>>, vector<8x128xf32>
    tpu.vector_store %arg27[%c16_7, %c128], %13 {strides = array<i32>} : memref<40x256xf32, #tpu.memory_space<vmem>>, vector<8x128xf32>,
    %15 = vector.extract_strided_slice %0 {offsets = [0, 1], sizes = [8, 127], strides = [1, 1]} : vector<8x256xf32> to vector<8x127xf32>
    %c24 = arith.constant 24 : index
    %c0_8 = arith.constant 0 : index
    %16 = vector.load %arg27[%c24, %c0_8] : memref<40x256xf32, #tpu.memory_space<vmem>>, vector<8x127xf32>
    tpu.vector_store %arg27[%c24, %c0_8], %15 {strides = array<i32>} : memref<40x256xf32, #tpu.memory_space<vmem>>, vector<8x127xf32>,
    %17 = vector.extract_strided_slice %0 {offsets = [0, 129], sizes = [8, 127], strides = [1, 1]} : vector<8x256xf32> to vector<8x127xf32>
    %c24_9 = arith.constant 24 : index
    %c128_10 = arith.constant 128 : index
    %18 = vector.load %arg27[%c24_9, %c128_10] : memref<40x256xf32, #tpu.memory_space<vmem>>, vector<8x127xf32>
    tpu.vector_store %arg27[%c24_9, %c128_10], %17 {strides = array<i32>} : memref<40x256xf32, #tpu.memory_space<vmem>>, vector<8x127xf32>,
    %19 = vector.extract_strided_slice %0 {offsets = [0, 2], sizes = [8, 126], strides = [1, 1]} : vector<8x256xf32> to vector<8x126xf32>
    %c32 = arith.constant 32 : index
    %c0_11 = arith.constant 0 : index
    %20 = vector.load %arg27[%c32, %c0_11] : memref<40x256xf32, #tpu.memory_space<vmem>>, vector<8x126xf32>
    tpu.vector_store %arg27[%c32, %c0_11], %19 {strides = array<i32>} : memref<40x256xf32, #tpu.memory_space<vmem>>, vector<8x126xf32>,
    %21 = vector.extract_strided_slice %0 {offsets = [0, 130], sizes = [8, 126], strides = [1, 1]} : vector<8x256xf32> to vector<8x126xf32>
    %c32_12 = arith.constant 32 : index
    %c128_13 = arith.constant 128 : index
    %22 = vector.load %arg27[%c32_12, %c128_13] : memref<40x256xf32, #tpu.memory_space<vmem>>, vector<8x126xf32>
    tpu.vector_store %arg27[%c32_12, %c128_13], %21 {strides = array<i32>} : memref<40x256xf32, #tpu.memory_space<vmem>>, vector<8x126xf32>,
    %c0_14 = arith.constant 0 : index
    %c0_15 = arith.constant 0 : index
    %23 = vector.load %arg2[%c0_14, %c0_15] : memref<8x40xf32, #tpu.memory_space<vmem>>, vector<8x40xf32>
    %c0_16 = arith.constant 0 : index
    %c0_17 = arith.constant 0 : index
    %24 = vector.load %arg27[%c0_16, %c0_17] : memref<40x256xf32, #tpu.memory_space<vmem>>, vector<40x256xf32>
    %cst_18 = arith.constant dense<0.000000e+00> : vector<8x256xf32>
    %25 = tpu.matmul %23, %24, %cst_18 {dimension_numbers = #tpu.dot_dimension_numbers<[1], [0], [0], [1], [0, 0, 1, 1], [], []>} : vector<8x40xf32>, vector<40x256xf32>, vector<8x256xf32> -> vector<8x256xf32>
    %c0_19 = arith.constant 0 : index
    %c0_20 = arith.constant 0 : index
    %26 = vector.load %arg3[%c0_19, %c0_20] : memref<8x1xf32, #tpu.memory_space<vmem>>, vector<8x1xf32>
    %27 = vector.broadcast %26 : vector<8x1xf32> to vector<8x256xf32>
    %28 = arith.addf %25, %27 : vector<8x256xf32>
    %cst_21 = arith.constant 0.000000e+00 : f32
    %29 = vector.broadcast %cst_21 : f32 to vector<8x256xf32>
    %30 = arith.maximumf %28, %29 : vector<8x256xf32>
    %cst_22 = arith.constant 0.000000e+00 : f32
    %31 = vector.broadcast %cst_22 : f32 to vector<40x256xf32>
    %c0_23 = arith.constant 0 : index
    %c0_24 = arith.constant 0 : index
    %32 = vector.load %arg27[%c0_23, %c0_24] : memref<40x256xf32, #tpu.memory_space<vmem>>, vector<40x256xf32>
    tpu.vector_store %arg27[%c0_23, %c0_24], %31 {strides = array<i32>} : memref<40x256xf32, #tpu.memory_space<vmem>>, vector<40x256xf32>,
    %33 = vector.extract_strided_slice %30 {offsets = [0, 0], sizes = [8, 126], strides = [1, 1]} : vector<8x256xf32> to vector<8x126xf32>
    %c0_25 = arith.constant 0 : index
    %c2_26 = arith.constant 2 : index
    %34 = vector.load %arg27[%c0_25, %c2_26] : memref<40x256xf32, #tpu.memory_space<vmem>>, vector<8x126xf32>
    tpu.vector_store %arg27[%c0_25, %c2_26], %33 {strides = array<i32>} : memref<40x256xf32, #tpu.memory_space<vmem>>, vector<8x126xf32>,
    %35 = vector.extract_strided_slice %30 {offsets = [0, 128], sizes = [8, 126], strides = [1, 1]} : vector<8x256xf32> to vector<8x126xf32>
    %c0_27 = arith.constant 0 : index
    %c130_28 = arith.constant 130 : index
    %36 = vector.load %arg27[%c0_27, %c130_28] : memref<40x256xf32, #tpu.memory_space<vmem>>, vector<8x126xf32>
    tpu.vector_store %arg27[%c0_27, %c130_28], %35 {strides = array<i32>} : memref<40x256xf32, #tpu.memory_space<vmem>>, vector<8x126xf32>,
    %37 = vector.extract_strided_slice %30 {offsets = [0, 0], sizes = [8, 127], strides = [1, 1]} : vector<8x256xf32> to vector<8x127xf32>
    %c8_29 = arith.constant 8 : index
    %c1_30 = arith.constant 1 : index
    %38 = vector.load %arg27[%c8_29, %c1_30] : memref<40x256xf32, #tpu.memory_space<vmem>>, vector<8x127xf32>
    tpu.vector_store %arg27[%c8_29, %c1_30], %37 {strides = array<i32>} : memref<40x256xf32, #tpu.memory_space<vmem>>, vector<8x127xf32>,
    %39 = vector.extract_strided_slice %30 {offsets = [0, 128], sizes = [8, 127], strides = [1, 1]} : vector<8x256xf32> to vector<8x127xf32>
    %c8_31 = arith.constant 8 : index
    %c129_32 = arith.constant 129 : index
    %40 = vector.load %arg27[%c8_31, %c129_32] : memref<40x256xf32, #tpu.memory_space<vmem>>, vector<8x127xf32>
    tpu.vector_store %arg27[%c8_31, %c129_32], %39 {strides = array<i32>} : memref<40x256xf32, #tpu.memory_space<vmem>>, vector<8x127xf32>,
    %41 = vector.extract_strided_slice %30 {offsets = [0, 0], sizes = [8, 128], strides = [1, 1]} : vector<8x256xf32> to vector<8x128xf32>
    %c16_33 = arith.constant 16 : index
    %c0_34 = arith.constant 0 : index
    %42 = vector.load %arg27[%c16_33, %c0_34] : memref<40x256xf32, #tpu.memory_space<vmem>>, vector<8x128xf32>
    tpu.vector_store %arg27[%c16_33, %c0_34], %41 {strides = array<i32>} : memref<40x256xf32, #tpu.memory_space<vmem>>, vector<8x128xf32>,
    %43 = vector.extract_strided_slice %30 {offsets = [0, 128], sizes = [8, 128], strides = [1, 1]} : vector<8x256xf32> to vector<8x128xf32>
    %c16_35 = arith.constant 16 : index
    %c128_36 = arith.constant 128 : index
    %44 = vector.load %arg27[%c16_35, %c128_36] : memref<40x256xf32, #tpu.memory_space<vmem>>, vector<8x128xf32>
    tpu.vector_store %arg27[%c16_35, %c128_36], %43 {strides = array<i32>} : memref<40x256xf32, #tpu.memory_space<vmem>>, vector<8x128xf32>,
    %45 = vector.extract_strided_slice %30 {offsets = [0, 1], sizes = [8, 127], strides = [1, 1]} : vector<8x256xf32> to vector<8x127xf32>
    %c24_37 = arith.constant 24 : index
    %c0_38 = arith.constant 0 : index
    %46 = vector.load %arg27[%c24_37, %c0_38] : memref<40x256xf32, #tpu.memory_space<vmem>>, vector<8x127xf32>
    tpu.vector_store %arg27[%c24_37, %c0_38], %45 {strides = array<i32>} : memref<40x256xf32, #tpu.memory_space<vmem>>, vector<8x127xf32>,
    %47 = vector.extract_strided_slice %30 {offsets = [0, 129], sizes = [8, 127], strides = [1, 1]} : vector<8x256xf32> to vector<8x127xf32>
    %c24_39 = arith.constant 24 : index
    %c128_40 = arith.constant 128 : index
    %48 = vector.load %arg27[%c24_39, %c128_40] : memref<40x256xf32, #tpu.memory_space<vmem>>, vector<8x127xf32>
    tpu.vector_store %arg27[%c24_39, %c128_40], %47 {strides = array<i32>} : memref<40x256xf32, #tpu.memory_space<vmem>>, vector<8x127xf32>,
    %49 = vector.extract_strided_slice %30 {offsets = [0, 2], sizes = [8, 126], strides = [1, 1]} : vector<8x256xf32> to vector<8x126xf32>
    %c32_41 = arith.constant 32 : index
    %c0_42 = arith.constant 0 : index
    %50 = vector.load %arg27[%c32_41, %c0_42] : memref<40x256xf32, #tpu.memory_space<vmem>>, vector<8x126xf32>
    tpu.vector_store %arg27[%c32_41, %c0_42], %49 {strides = array<i32>} : memref<40x256xf32, #tpu.memory_space<vmem>>, vector<8x126xf32>,
    %51 = vector.extract_strided_slice %30 {offsets = [0, 130], sizes = [8, 126], strides = [1, 1]} : vector<8x256xf32> to vector<8x126xf32>
    %c32_43 = arith.constant 32 : index
    %c128_44 = arith.constant 128 : index
    %52 = vector.load %arg27[%c32_43, %c128_44] : memref<40x256xf32, #tpu.memory_space<vmem>>, vector<8x126xf32>
    tpu.vector_store %arg27[%c32_43, %c128_44], %51 {strides = array<i32>} : memref<40x256xf32, #tpu.memory_space<vmem>>, vector<8x126xf32>,
    %c0_45 = arith.constant 0 : index
    %c0_46 = arith.constant 0 : index
    %53 = vector.load %arg4[%c0_45, %c0_46] : memref<8x40xf32, #tpu.memory_space<vmem>>, vector<8x40xf32>
    %c0_47 = arith.constant 0 : index
    %c0_48 = arith.constant 0 : index
    %54 = vector.load %arg27[%c0_47, %c0_48] : memref<40x256xf32, #tpu.memory_space<vmem>>, vector<40x256xf32>
    %cst_49 = arith.constant dense<0.000000e+00> : vector<8x256xf32>
    %55 = tpu.matmul %53, %54, %cst_49 {dimension_numbers = #tpu.dot_dimension_numbers<[1], [0], [0], [1], [0, 0, 1, 1], [], []>} : vector<8x40xf32>, vector<40x256xf32>, vector<8x256xf32> -> vector<8x256xf32>
    %c0_50 = arith.constant 0 : index
    %c0_51 = arith.constant 0 : index
    %56 = vector.load %arg5[%c0_50, %c0_51] : memref<8x1xf32, #tpu.memory_space<vmem>>, vector<8x1xf32>
    %57 = vector.broadcast %56 : vector<8x1xf32> to vector<8x256xf32>
    %58 = arith.addf %55, %57 : vector<8x256xf32>
    %cst_52 = arith.constant 0.000000e+00 : f32
    %59 = vector.broadcast %cst_52 : f32 to vector<8x256xf32>
    %60 = arith.maximumf %58, %59 : vector<8x256xf32>
    %c0_53 = arith.constant 0 : index
    %c0_54 = arith.constant 0 : index
    %61 = vector.load %arg6[%c0_53, %c0_54] : memref<8x8xf32, #tpu.memory_space<vmem>>, vector<8x8xf32>
    %cst_55 = arith.constant dense<0.000000e+00> : vector<8x256xf32>
    %62 = tpu.matmul %61, %0, %cst_55 {dimension_numbers = #tpu.dot_dimension_numbers<[1], [0], [0], [1], [0, 0, 1, 1], [], []>} : vector<8x8xf32>, vector<8x256xf32>, vector<8x256xf32> -> vector<8x256xf32>
    %c0_56 = arith.constant 0 : index
    %c0_57 = arith.constant 0 : index
    %63 = vector.load %arg7[%c0_56, %c0_57] : memref<8x1xf32, #tpu.memory_space<vmem>>, vector<8x1xf32>
    %64 = vector.broadcast %63 : vector<8x1xf32> to vector<8x256xf32>
    %65 = arith.addf %62, %64 : vector<8x256xf32>
    %66 = arith.addf %60, %65 : vector<8x256xf32>
    %cst_58 = arith.constant 0.000000e+00 : f32
    %67 = vector.broadcast %cst_58 : f32 to vector<8x256xf32>
    %68 = arith.maximumf %66, %67 : vector<8x256xf32>
    %cst_59 = arith.constant 0.000000e+00 : f32
    %69 = vector.broadcast %cst_59 : f32 to vector<40x256xf32>
    %c0_60 = arith.constant 0 : index
    %c0_61 = arith.constant 0 : index
    %70 = vector.load %arg27[%c0_60, %c0_61] : memref<40x256xf32, #tpu.memory_space<vmem>>, vector<40x256xf32>
    tpu.vector_store %arg27[%c0_60, %c0_61], %69 {strides = array<i32>} : memref<40x256xf32, #tpu.memory_space<vmem>>, vector<40x256xf32>,
    %71 = vector.extract_strided_slice %68 {offsets = [0, 0], sizes = [8, 124], strides = [1, 1]} : vector<8x256xf32> to vector<8x124xf32>
    %c0_62 = arith.constant 0 : index
    %c4 = arith.constant 4 : index
    %72 = vector.load %arg27[%c0_62, %c4] : memref<40x256xf32, #tpu.memory_space<vmem>>, vector<8x124xf32>
    tpu.vector_store %arg27[%c0_62, %c4], %71 {strides = array<i32>} : memref<40x256xf32, #tpu.memory_space<vmem>>, vector<8x124xf32>,
    %73 = vector.extract_strided_slice %68 {offsets = [0, 128], sizes = [8, 124], strides = [1, 1]} : vector<8x256xf32> to vector<8x124xf32>
    %c0_63 = arith.constant 0 : index
    %c132 = arith.constant 132 : index
    %74 = vector.load %arg27[%c0_63, %c132] : memref<40x256xf32, #tpu.memory_space<vmem>>, vector<8x124xf32>
    tpu.vector_store %arg27[%c0_63, %c132], %73 {strides = array<i32>} : memref<40x256xf32, #tpu.memory_space<vmem>>, vector<8x124xf32>,
    %75 = vector.extract_strided_slice %68 {offsets = [0, 0], sizes = [8, 126], strides = [1, 1]} : vector<8x256xf32> to vector<8x126xf32>
    %c8_64 = arith.constant 8 : index
    %c2_65 = arith.constant 2 : index
    %76 = vector.load %arg27[%c8_64, %c2_65] : memref<40x256xf32, #tpu.memory_space<vmem>>, vector<8x126xf32>
    tpu.vector_store %arg27[%c8_64, %c2_65], %75 {strides = array<i32>} : memref<40x256xf32, #tpu.memory_space<vmem>>, vector<8x126xf32>,
    %77 = vector.extract_strided_slice %68 {offsets = [0, 128], sizes = [8, 126], strides = [1, 1]} : vector<8x256xf32> to vector<8x126xf32>
    %c8_66 = arith.constant 8 : index
    %c130_67 = arith.constant 130 : index
    %78 = vector.load %arg27[%c8_66, %c130_67] : memref<40x256xf32, #tpu.memory_space<vmem>>, vector<8x126xf32>
    tpu.vector_store %arg27[%c8_66, %c130_67], %77 {strides = array<i32>} : memref<40x256xf32, #tpu.memory_space<vmem>>, vector<8x126xf32>,
    %79 = vector.extract_strided_slice %68 {offsets = [0, 0], sizes = [8, 128], strides = [1, 1]} : vector<8x256xf32> to vector<8x128xf32>
    %c16_68 = arith.constant 16 : index
    %c0_69 = arith.constant 0 : index
    %80 = vector.load %arg27[%c16_68, %c0_69] : memref<40x256xf32, #tpu.memory_space<vmem>>, vector<8x128xf32>
    tpu.vector_store %arg27[%c16_68, %c0_69], %79 {strides = array<i32>} : memref<40x256xf32, #tpu.memory_space<vmem>>, vector<8x128xf32>,
    %81 = vector.extract_strided_slice %68 {offsets = [0, 128], sizes = [8, 128], strides = [1, 1]} : vector<8x256xf32> to vector<8x128xf32>
    %c16_70 = arith.constant 16 : index
    %c128_71 = arith.constant 128 : index
    %82 = vector.load %arg27[%c16_70, %c128_71] : memref<40x256xf32, #tpu.memory_space<vmem>>, vector<8x128xf32>
    tpu.vector_store %arg27[%c16_70, %c128_71], %81 {strides = array<i32>} : memref<40x256xf32, #tpu.memory_space<vmem>>, vector<8x128xf32>,
    %83 = vector.extract_strided_slice %68 {offsets = [0, 2], sizes = [8, 126], strides = [1, 1]} : vector<8x256xf32> to vector<8x126xf32>
    %c24_72 = arith.constant 24 : index
    %c0_73 = arith.constant 0 : index
    %84 = vector.load %arg27[%c24_72, %c0_73] : memref<40x256xf32, #tpu.memory_space<vmem>>, vector<8x126xf32>
    tpu.vector_store %arg27[%c24_72, %c0_73], %83 {strides = array<i32>} : memref<40x256xf32, #tpu.memory_space<vmem>>, vector<8x126xf32>,
    %85 = vector.extract_strided_slice %68 {offsets = [0, 130], sizes = [8, 126], strides = [1, 1]} : vector<8x256xf32> to vector<8x126xf32>
    %c24_74 = arith.constant 24 : index
    %c128_75 = arith.constant 128 : index
    %86 = vector.load %arg27[%c24_74, %c128_75] : memref<40x256xf32, #tpu.memory_space<vmem>>, vector<8x126xf32>
    tpu.vector_store %arg27[%c24_74, %c128_75], %85 {strides = array<i32>} : memref<40x256xf32, #tpu.memory_space<vmem>>, vector<8x126xf32>,
    %87 = vector.extract_strided_slice %68 {offsets = [0, 4], sizes = [8, 124], strides = [1, 1]} : vector<8x256xf32> to vector<8x124xf32>
    %c32_76 = arith.constant 32 : index
    %c0_77 = arith.constant 0 : index
    %88 = vector.load %arg27[%c32_76, %c0_77] : memref<40x256xf32, #tpu.memory_space<vmem>>, vector<8x124xf32>
    tpu.vector_store %arg27[%c32_76, %c0_77], %87 {strides = array<i32>} : memref<40x256xf32, #tpu.memory_space<vmem>>, vector<8x124xf32>,
    %89 = vector.extract_strided_slice %68 {offsets = [0, 132], sizes = [8, 124], strides = [1, 1]} : vector<8x256xf32> to vector<8x124xf32>
    %c32_78 = arith.constant 32 : index
    %c128_79 = arith.constant 128 : index
    %90 = vector.load %arg27[%c32_78, %c128_79] : memref<40x256xf32, #tpu.memory_space<vmem>>, vector<8x124xf32>
    tpu.vector_store %arg27[%c32_78, %c128_79], %89 {strides = array<i32>} : memref<40x256xf32, #tpu.memory_space<vmem>>, vector<8x124xf32>,
    %c0_80 = arith.constant 0 : index
    %c0_81 = arith.constant 0 : index
    %91 = vector.load %arg8[%c0_80, %c0_81] : memref<8x40xf32, #tpu.memory_space<vmem>>, vector<8x40xf32>
    %c0_82 = arith.constant 0 : index
    %c0_83 = arith.constant 0 : index
    %92 = vector.load %arg27[%c0_82, %c0_83] : memref<40x256xf32, #tpu.memory_space<vmem>>, vector<40x256xf32>
    %cst_84 = arith.constant dense<0.000000e+00> : vector<8x256xf32>
    %93 = tpu.matmul %91, %92, %cst_84 {dimension_numbers = #tpu.dot_dimension_numbers<[1], [0], [0], [1], [0, 0, 1, 1], [], []>} : vector<8x40xf32>, vector<40x256xf32>, vector<8x256xf32> -> vector<8x256xf32>
    %c0_85 = arith.constant 0 : index
    %c0_86 = arith.constant 0 : index
    %94 = vector.load %arg9[%c0_85, %c0_86] : memref<8x1xf32, #tpu.memory_space<vmem>>, vector<8x1xf32>
    %95 = vector.broadcast %94 : vector<8x1xf32> to vector<8x256xf32>
    %96 = arith.addf %93, %95 : vector<8x256xf32>
    %cst_87 = arith.constant 0.000000e+00 : f32
    %97 = vector.broadcast %cst_87 : f32 to vector<8x256xf32>
    %98 = arith.maximumf %96, %97 : vector<8x256xf32>
    %cst_88 = arith.constant 0.000000e+00 : f32
    %99 = vector.broadcast %cst_88 : f32 to vector<40x256xf32>
    %c0_89 = arith.constant 0 : index
    %c0_90 = arith.constant 0 : index
    %100 = vector.load %arg27[%c0_89, %c0_90] : memref<40x256xf32, #tpu.memory_space<vmem>>, vector<40x256xf32>
    tpu.vector_store %arg27[%c0_89, %c0_90], %99 {strides = array<i32>} : memref<40x256xf32, #tpu.memory_space<vmem>>, vector<40x256xf32>,
    %101 = vector.extract_strided_slice %98 {offsets = [0, 0], sizes = [8, 124], strides = [1, 1]} : vector<8x256xf32> to vector<8x124xf32>
    %c0_91 = arith.constant 0 : index
    %c4_92 = arith.constant 4 : index
    %102 = vector.load %arg27[%c0_91, %c4_92] : memref<40x256xf32, #tpu.memory_space<vmem>>, vector<8x124xf32>
    tpu.vector_store %arg27[%c0_91, %c4_92], %101 {strides = array<i32>} : memref<40x256xf32, #tpu.memory_space<vmem>>, vector<8x124xf32>,
    %103 = vector.extract_strided_slice %98 {offsets = [0, 128], sizes = [8, 124], strides = [1, 1]} : vector<8x256xf32> to vector<8x124xf32>
    %c0_93 = arith.constant 0 : index
    %c132_94 = arith.constant 132 : index
    %104 = vector.load %arg27[%c0_93, %c132_94] : memref<40x256xf32, #tpu.memory_space<vmem>>, vector<8x124xf32>
    tpu.vector_store %arg27[%c0_93, %c132_94], %103 {strides = array<i32>} : memref<40x256xf32, #tpu.memory_space<vmem>>, vector<8x124xf32>,
    %105 = vector.extract_strided_slice %98 {offsets = [0, 0], sizes = [8, 126], strides = [1, 1]} : vector<8x256xf32> to vector<8x126xf32>
    %c8_95 = arith.constant 8 : index
    %c2_96 = arith.constant 2 : index
    %106 = vector.load %arg27[%c8_95, %c2_96] : memref<40x256xf32, #tpu.memory_space<vmem>>, vector<8x126xf32>
    tpu.vector_store %arg27[%c8_95, %c2_96], %105 {strides = array<i32>} : memref<40x256xf32, #tpu.memory_space<vmem>>, vector<8x126xf32>,
    %107 = vector.extract_strided_slice %98 {offsets = [0, 128], sizes = [8, 126], strides = [1, 1]} : vector<8x256xf32> to vector<8x126xf32>
    %c8_97 = arith.constant 8 : index
    %c130_98 = arith.constant 130 : index
    %108 = vector.load %arg27[%c8_97, %c130_98] : memref<40x256xf32, #tpu.memory_space<vmem>>, vector<8x126xf32>
    tpu.vector_store %arg27[%c8_97, %c130_98], %107 {strides = array<i32>} : memref<40x256xf32, #tpu.memory_space<vmem>>, vector<8x126xf32>,
    %109 = vector.extract_strided_slice %98 {offsets = [0, 0], sizes = [8, 128], strides = [1, 1]} : vector<8x256xf32> to vector<8x128xf32>
    %c16_99 = arith.constant 16 : index
    %c0_100 = arith.constant 0 : index
    %110 = vector.load %arg27[%c16_99, %c0_100] : memref<40x256xf32, #tpu.memory_space<vmem>>, vector<8x128xf32>
    tpu.vector_store %arg27[%c16_99, %c0_100], %109 {strides = array<i32>} : memref<40x256xf32, #tpu.memory_space<vmem>>, vector<8x128xf32>,
    %111 = vector.extract_strided_slice %98 {offsets = [0, 128], sizes = [8, 128], strides = [1, 1]} : vector<8x256xf32> to vector<8x128xf32>
    %c16_101 = arith.constant 16 : index
    %c128_102 = arith.constant 128 : index
    %112 = vector.load %arg27[%c16_101, %c128_102] : memref<40x256xf32, #tpu.memory_space<vmem>>, vector<8x128xf32>
    tpu.vector_store %arg27[%c16_101, %c128_102], %111 {strides = array<i32>} : memref<40x256xf32, #tpu.memory_space<vmem>>, vector<8x128xf32>,
    %113 = vector.extract_strided_slice %98 {offsets = [0, 2], sizes = [8, 126], strides = [1, 1]} : vector<8x256xf32> to vector<8x126xf32>
    %c24_103 = arith.constant 24 : index
    %c0_104 = arith.constant 0 : index
    %114 = vector.load %arg27[%c24_103, %c0_104] : memref<40x256xf32, #tpu.memory_space<vmem>>, vector<8x126xf32>
    tpu.vector_store %arg27[%c24_103, %c0_104], %113 {strides = array<i32>} : memref<40x256xf32, #tpu.memory_space<vmem>>, vector<8x126xf32>,
    %115 = vector.extract_strided_slice %98 {offsets = [0, 130], sizes = [8, 126], strides = [1, 1]} : vector<8x256xf32> to vector<8x126xf32>
    %c24_105 = arith.constant 24 : index
    %c128_106 = arith.constant 128 : index
    %116 = vector.load %arg27[%c24_105, %c128_106] : memref<40x256xf32, #tpu.memory_space<vmem>>, vector<8x126xf32>
    tpu.vector_store %arg27[%c24_105, %c128_106], %115 {strides = array<i32>} : memref<40x256xf32, #tpu.memory_space<vmem>>, vector<8x126xf32>,
    %117 = vector.extract_strided_slice %98 {offsets = [0, 4], sizes = [8, 124], strides = [1, 1]} : vector<8x256xf32> to vector<8x124xf32>
    %c32_107 = arith.constant 32 : index
    %c0_108 = arith.constant 0 : index
    %118 = vector.load %arg27[%c32_107, %c0_108] : memref<40x256xf32, #tpu.memory_space<vmem>>, vector<8x124xf32>
    tpu.vector_store %arg27[%c32_107, %c0_108], %117 {strides = array<i32>} : memref<40x256xf32, #tpu.memory_space<vmem>>, vector<8x124xf32>,
    %119 = vector.extract_strided_slice %98 {offsets = [0, 132], sizes = [8, 124], strides = [1, 1]} : vector<8x256xf32> to vector<8x124xf32>
    %c32_109 = arith.constant 32 : index
    %c128_110 = arith.constant 128 : index
    %120 = vector.load %arg27[%c32_109, %c128_110] : memref<40x256xf32, #tpu.memory_space<vmem>>, vector<8x124xf32>
    tpu.vector_store %arg27[%c32_109, %c128_110], %119 {strides = array<i32>} : memref<40x256xf32, #tpu.memory_space<vmem>>, vector<8x124xf32>,
    %c0_111 = arith.constant 0 : index
    %c0_112 = arith.constant 0 : index
    %121 = vector.load %arg10[%c0_111, %c0_112] : memref<8x40xf32, #tpu.memory_space<vmem>>, vector<8x40xf32>
    %c0_113 = arith.constant 0 : index
    %c0_114 = arith.constant 0 : index
    %122 = vector.load %arg27[%c0_113, %c0_114] : memref<40x256xf32, #tpu.memory_space<vmem>>, vector<40x256xf32>
    %cst_115 = arith.constant dense<0.000000e+00> : vector<8x256xf32>
    %123 = tpu.matmul %121, %122, %cst_115 {dimension_numbers = #tpu.dot_dimension_numbers<[1], [0], [0], [1], [0, 0, 1, 1], [], []>} : vector<8x40xf32>, vector<40x256xf32>, vector<8x256xf32> -> vector<8x256xf32>
    %c0_116 = arith.constant 0 : index
    %c0_117 = arith.constant 0 : index
    %124 = vector.load %arg11[%c0_116, %c0_117] : memref<8x1xf32, #tpu.memory_space<vmem>>, vector<8x1xf32>
    %125 = vector.broadcast %124 : vector<8x1xf32> to vector<8x256xf32>
    %126 = arith.addf %123, %125 : vector<8x256xf32>
    %cst_118 = arith.constant 0.000000e+00 : f32
    %127 = vector.broadcast %cst_118 : f32 to vector<8x256xf32>
    %128 = arith.maximumf %126, %127 : vector<8x256xf32>
    %129 = arith.addf %128, %68 : vector<8x256xf32>
    %cst_119 = arith.constant 0.000000e+00 : f32
    %130 = vector.broadcast %cst_119 : f32 to vector<8x256xf32>
    %131 = arith.maximumf %129, %130 : vector<8x256xf32>
    %c0_120 = arith.constant 0 : index
    %c0_121 = arith.constant 0 : index
    %132 = vector.load %arg12[%c0_120, %c0_121] : memref<8x8xf32, #tpu.memory_space<vmem>>, vector<8x8xf32>
    %cst_122 = arith.constant dense<0.000000e+00> : vector<8x256xf32>
    %133 = tpu.matmul %132, %131, %cst_122 {dimension_numbers = #tpu.dot_dimension_numbers<[1], [0], [0], [1], [0, 0, 1, 1], [], []>} : vector<8x8xf32>, vector<8x256xf32>, vector<8x256xf32> -> vector<8x256xf32>
    %c0_123 = arith.constant 0 : index
    %c0_124 = arith.constant 0 : index
    %134 = vector.load %arg13[%c0_123, %c0_124] : memref<8x1xf32, #tpu.memory_space<vmem>>, vector<8x1xf32>
    %135 = vector.broadcast %134 : vector<8x1xf32> to vector<8x256xf32>
    %136 = arith.addf %133, %135 : vector<8x256xf32>
    %137 = tpu.iota {dimensions = array<i32: 0>} : vector<128x1xi32>
    %138 = tpu.iota {dimensions = array<i32: 1>} : vector<1x128xi32>
    %cst_125 = arith.constant 0.000000e+00 : f32
    %139 = vector.broadcast %cst_125 : f32 to vector<128x128xf32>
    %c0_i32 = arith.constant 0 : i32
    %140 = vector.broadcast %c0_i32 : i32 to vector<128x1xi32>
    %141 = arith.cmpi sge, %137, %140 : vector<128x1xi32>
    %c16_i32 = arith.constant 16 : i32
    %142 = vector.broadcast %c16_i32 : i32 to vector<128x1xi32>
    %143 = arith.cmpi slt, %137, %142 : vector<128x1xi32>
    %144 = arith.andi %141, %143 : vector<128x1xi1>
    %cst_126 = arith.constant 6.250000e-02 : f32
    %cst_127 = arith.constant 0.000000e+00 : f32
    %145 = vector.broadcast %cst_126 : f32 to vector<128x1xf32>
    %146 = vector.broadcast %cst_127 : f32 to vector<128x1xf32>
    %147 = arith.select %144, %145, %146 : vector<128x1xi1>, vector<128x1xf32>
    %c0_i32_128 = arith.constant 0 : i32
    %148 = vector.broadcast %c0_i32_128 : i32 to vector<1x128xi32>
    %149 = arith.cmpi sge, %138, %148 : vector<1x128xi32>
    %c16_i32_129 = arith.constant 16 : i32
    %150 = vector.broadcast %c16_i32_129 : i32 to vector<1x128xi32>
    %151 = arith.cmpi slt, %138, %150 : vector<1x128xi32>
    %152 = arith.andi %149, %151 : vector<1x128xi1>
    %cst_130 = arith.constant 1.000000e+00 : f32
    %cst_131 = arith.constant 0.000000e+00 : f32
    %153 = vector.broadcast %cst_130 : f32 to vector<1x128xf32>
    %154 = vector.broadcast %cst_131 : f32 to vector<1x128xf32>
    %155 = arith.select %152, %153, %154 : vector<1x128xi1>, vector<1x128xf32>
    %156 = vector.broadcast %147 : vector<128x1xf32> to vector<128x128xf32>
    %157 = vector.broadcast %155 : vector<1x128xf32> to vector<128x128xf32>
    %158 = arith.mulf %156, %157 : vector<128x128xf32>
    %159 = arith.addf %139, %158 : vector<128x128xf32>
    %c16_i32_132 = arith.constant 16 : i32
    %160 = vector.broadcast %c16_i32_132 : i32 to vector<128x1xi32>
    %161 = arith.cmpi sge, %137, %160 : vector<128x1xi32>
    %c32_i32 = arith.constant 32 : i32
    %162 = vector.broadcast %c32_i32 : i32 to vector<128x1xi32>
    %163 = arith.cmpi slt, %137, %162 : vector<128x1xi32>
    %164 = arith.andi %161, %163 : vector<128x1xi1>
    %cst_133 = arith.constant 6.250000e-02 : f32
    %cst_134 = arith.constant 0.000000e+00 : f32
    %165 = vector.broadcast %cst_133 : f32 to vector<128x1xf32>
    %166 = vector.broadcast %cst_134 : f32 to vector<128x1xf32>
    %167 = arith.select %164, %165, %166 : vector<128x1xi1>, vector<128x1xf32>
    %c16_i32_135 = arith.constant 16 : i32
    %168 = vector.broadcast %c16_i32_135 : i32 to vector<1x128xi32>
    %169 = arith.cmpi sge, %138, %168 : vector<1x128xi32>
    %c32_i32_136 = arith.constant 32 : i32
    %170 = vector.broadcast %c32_i32_136 : i32 to vector<1x128xi32>
    %171 = arith.cmpi slt, %138, %170 : vector<1x128xi32>
    %172 = arith.andi %169, %171 : vector<1x128xi1>
    %cst_137 = arith.constant 1.000000e+00 : f32
    %cst_138 = arith.constant 0.000000e+00 : f32
    %173 = vector.broadcast %cst_137 : f32 to vector<1x128xf32>
    %174 = vector.broadcast %cst_138 : f32 to vector<1x128xf32>
    %175 = arith.select %172, %173, %174 : vector<1x128xi1>, vector<1x128xf32>
    %176 = vector.broadcast %167 : vector<128x1xf32> to vector<128x128xf32>
    %177 = vector.broadcast %175 : vector<1x128xf32> to vector<128x128xf32>
    %178 = arith.mulf %176, %177 : vector<128x128xf32>
    %179 = arith.addf %159, %178 : vector<128x128xf32>
    %c32_i32_139 = arith.constant 32 : i32
    %180 = vector.broadcast %c32_i32_139 : i32 to vector<128x1xi32>
    %181 = arith.cmpi sge, %137, %180 : vector<128x1xi32>
    %c48_i32 = arith.constant 48 : i32
    %182 = vector.broadcast %c48_i32 : i32 to vector<128x1xi32>
    %183 = arith.cmpi slt, %137, %182 : vector<128x1xi32>
    %184 = arith.andi %181, %183 : vector<128x1xi1>
    %cst_140 = arith.constant 6.250000e-02 : f32
    %cst_141 = arith.constant 0.000000e+00 : f32
    %185 = vector.broadcast %cst_140 : f32 to vector<128x1xf32>
    %186 = vector.broadcast %cst_141 : f32 to vector<128x1xf32>
    %187 = arith.select %184, %185, %186 : vector<128x1xi1>, vector<128x1xf32>
    %c32_i32_142 = arith.constant 32 : i32
    %188 = vector.broadcast %c32_i32_142 : i32 to vector<1x128xi32>
    %189 = arith.cmpi sge, %138, %188 : vector<1x128xi32>
    %c48_i32_143 = arith.constant 48 : i32
    %190 = vector.broadcast %c48_i32_143 : i32 to vector<1x128xi32>
    %191 = arith.cmpi slt, %138, %190 : vector<1x128xi32>
    %192 = arith.andi %189, %191 : vector<1x128xi1>
    %cst_144 = arith.constant 1.000000e+00 : f32
    %cst_145 = arith.constant 0.000000e+00 : f32
    %193 = vector.broadcast %cst_144 : f32 to vector<1x128xf32>
    %194 = vector.broadcast %cst_145 : f32 to vector<1x128xf32>
    %195 = arith.select %192, %193, %194 : vector<1x128xi1>, vector<1x128xf32>
    %196 = vector.broadcast %187 : vector<128x1xf32> to vector<128x128xf32>
    %197 = vector.broadcast %195 : vector<1x128xf32> to vector<128x128xf32>
    %198 = arith.mulf %196, %197 : vector<128x128xf32>
    %199 = arith.addf %179, %198 : vector<128x128xf32>
    %c48_i32_146 = arith.constant 48 : i32
    %200 = vector.broadcast %c48_i32_146 : i32 to vector<128x1xi32>
    %201 = arith.cmpi sge, %137, %200 : vector<128x1xi32>
    %c64_i32 = arith.constant 64 : i32
    %202 = vector.broadcast %c64_i32 : i32 to vector<128x1xi32>
    %203 = arith.cmpi slt, %137, %202 : vector<128x1xi32>
    %204 = arith.andi %201, %203 : vector<128x1xi1>
    %cst_147 = arith.constant 6.250000e-02 : f32
    %cst_148 = arith.constant 0.000000e+00 : f32
    %205 = vector.broadcast %cst_147 : f32 to vector<128x1xf32>
    %206 = vector.broadcast %cst_148 : f32 to vector<128x1xf32>
    %207 = arith.select %204, %205, %206 : vector<128x1xi1>, vector<128x1xf32>
    %c48_i32_149 = arith.constant 48 : i32
    %208 = vector.broadcast %c48_i32_149 : i32 to vector<1x128xi32>
    %209 = arith.cmpi sge, %138, %208 : vector<1x128xi32>
    %c64_i32_150 = arith.constant 64 : i32
    %210 = vector.broadcast %c64_i32_150 : i32 to vector<1x128xi32>
    %211 = arith.cmpi slt, %138, %210 : vector<1x128xi32>
    %212 = arith.andi %209, %211 : vector<1x128xi1>
    %cst_151 = arith.constant 1.000000e+00 : f32
    %cst_152 = arith.constant 0.000000e+00 : f32
    %213 = vector.broadcast %cst_151 : f32 to vector<1x128xf32>
    %214 = vector.broadcast %cst_152 : f32 to vector<1x128xf32>
    %215 = arith.select %212, %213, %214 : vector<1x128xi1>, vector<1x128xf32>
    %216 = vector.broadcast %207 : vector<128x1xf32> to vector<128x128xf32>
    %217 = vector.broadcast %215 : vector<1x128xf32> to vector<128x128xf32>
    %218 = arith.mulf %216, %217 : vector<128x128xf32>
    %219 = arith.addf %199, %218 : vector<128x128xf32>
    %c64_i32_153 = arith.constant 64 : i32
    %220 = vector.broadcast %c64_i32_153 : i32 to vector<128x1xi32>
    %221 = arith.cmpi sge, %137, %220 : vector<128x1xi32>
    %c80_i32 = arith.constant 80 : i32
    %222 = vector.broadcast %c80_i32 : i32 to vector<128x1xi32>
    %223 = arith.cmpi slt, %137, %222 : vector<128x1xi32>
    %224 = arith.andi %221, %223 : vector<128x1xi1>
    %cst_154 = arith.constant 6.250000e-02 : f32
    %cst_155 = arith.constant 0.000000e+00 : f32
    %225 = vector.broadcast %cst_154 : f32 to vector<128x1xf32>
    %226 = vector.broadcast %cst_155 : f32 to vector<128x1xf32>
    %227 = arith.select %224, %225, %226 : vector<128x1xi1>, vector<128x1xf32>
    %c64_i32_156 = arith.constant 64 : i32
    %228 = vector.broadcast %c64_i32_156 : i32 to vector<1x128xi32>
    %229 = arith.cmpi sge, %138, %228 : vector<1x128xi32>
    %c80_i32_157 = arith.constant 80 : i32
    %230 = vector.broadcast %c80_i32_157 : i32 to vector<1x128xi32>
    %231 = arith.cmpi slt, %138, %230 : vector<1x128xi32>
    %232 = arith.andi %229, %231 : vector<1x128xi1>
    %cst_158 = arith.constant 1.000000e+00 : f32
    %cst_159 = arith.constant 0.000000e+00 : f32
    %233 = vector.broadcast %cst_158 : f32 to vector<1x128xf32>
    %234 = vector.broadcast %cst_159 : f32 to vector<1x128xf32>
    %235 = arith.select %232, %233, %234 : vector<1x128xi1>, vector<1x128xf32>
    %236 = vector.broadcast %227 : vector<128x1xf32> to vector<128x128xf32>
    %237 = vector.broadcast %235 : vector<1x128xf32> to vector<128x128xf32>
    %238 = arith.mulf %236, %237 : vector<128x128xf32>
    %239 = arith.addf %219, %238 : vector<128x128xf32>
    %c80_i32_160 = arith.constant 80 : i32
    %240 = vector.broadcast %c80_i32_160 : i32 to vector<128x1xi32>
    %241 = arith.cmpi sge, %137, %240 : vector<128x1xi32>
    %c96_i32 = arith.constant 96 : i32
    %242 = vector.broadcast %c96_i32 : i32 to vector<128x1xi32>
    %243 = arith.cmpi slt, %137, %242 : vector<128x1xi32>
    %244 = arith.andi %241, %243 : vector<128x1xi1>
    %cst_161 = arith.constant 6.250000e-02 : f32
    %cst_162 = arith.constant 0.000000e+00 : f32
    %245 = vector.broadcast %cst_161 : f32 to vector<128x1xf32>
    %246 = vector.broadcast %cst_162 : f32 to vector<128x1xf32>
    %247 = arith.select %244, %245, %246 : vector<128x1xi1>, vector<128x1xf32>
    %c80_i32_163 = arith.constant 80 : i32
    %248 = vector.broadcast %c80_i32_163 : i32 to vector<1x128xi32>
    %249 = arith.cmpi sge, %138, %248 : vector<1x128xi32>
    %c96_i32_164 = arith.constant 96 : i32
    %250 = vector.broadcast %c96_i32_164 : i32 to vector<1x128xi32>
    %251 = arith.cmpi slt, %138, %250 : vector<1x128xi32>
    %252 = arith.andi %249, %251 : vector<1x128xi1>
    %cst_165 = arith.constant 1.000000e+00 : f32
    %cst_166 = arith.constant 0.000000e+00 : f32
    %253 = vector.broadcast %cst_165 : f32 to vector<1x128xf32>
    %254 = vector.broadcast %cst_166 : f32 to vector<1x128xf32>
    %255 = arith.select %252, %253, %254 : vector<1x128xi1>, vector<1x128xf32>
    %256 = vector.broadcast %247 : vector<128x1xf32> to vector<128x128xf32>
    %257 = vector.broadcast %255 : vector<1x128xf32> to vector<128x128xf32>
    %258 = arith.mulf %256, %257 : vector<128x128xf32>
    %259 = arith.addf %239, %258 : vector<128x128xf32>
    %c96_i32_167 = arith.constant 96 : i32
    %260 = vector.broadcast %c96_i32_167 : i32 to vector<128x1xi32>
    %261 = arith.cmpi sge, %137, %260 : vector<128x1xi32>
    %c112_i32 = arith.constant 112 : i32
    %262 = vector.broadcast %c112_i32 : i32 to vector<128x1xi32>
    %263 = arith.cmpi slt, %137, %262 : vector<128x1xi32>
    %264 = arith.andi %261, %263 : vector<128x1xi1>
    %cst_168 = arith.constant 6.250000e-02 : f32
    %cst_169 = arith.constant 0.000000e+00 : f32
    %265 = vector.broadcast %cst_168 : f32 to vector<128x1xf32>
    %266 = vector.broadcast %cst_169 : f32 to vector<128x1xf32>
    %267 = arith.select %264, %265, %266 : vector<128x1xi1>, vector<128x1xf32>
    %c96_i32_170 = arith.constant 96 : i32
    %268 = vector.broadcast %c96_i32_170 : i32 to vector<1x128xi32>
    %269 = arith.cmpi sge, %138, %268 : vector<1x128xi32>
    %c112_i32_171 = arith.constant 112 : i32
    %270 = vector.broadcast %c112_i32_171 : i32 to vector<1x128xi32>
    %271 = arith.cmpi slt, %138, %270 : vector<1x128xi32>
    %272 = arith.andi %269, %271 : vector<1x128xi1>
    %cst_172 = arith.constant 1.000000e+00 : f32
    %cst_173 = arith.constant 0.000000e+00 : f32
    %273 = vector.broadcast %cst_172 : f32 to vector<1x128xf32>
    %274 = vector.broadcast %cst_173 : f32 to vector<1x128xf32>
    %275 = arith.select %272, %273, %274 : vector<1x128xi1>, vector<1x128xf32>
    %276 = vector.broadcast %267 : vector<128x1xf32> to vector<128x128xf32>
    %277 = vector.broadcast %275 : vector<1x128xf32> to vector<128x128xf32>
    %278 = arith.mulf %276, %277 : vector<128x128xf32>
    %279 = arith.addf %259, %278 : vector<128x128xf32>
    %c112_i32_174 = arith.constant 112 : i32
    %280 = vector.broadcast %c112_i32_174 : i32 to vector<128x1xi32>
    %281 = arith.cmpi sge, %137, %280 : vector<128x1xi32>
    %c128_i32 = arith.constant 128 : i32
    %282 = vector.broadcast %c128_i32 : i32 to vector<128x1xi32>
    %283 = arith.cmpi slt, %137, %282 : vector<128x1xi32>
    %284 = arith.andi %281, %283 : vector<128x1xi1>
    %cst_175 = arith.constant 6.250000e-02 : f32
    %cst_176 = arith.constant 0.000000e+00 : f32
    %285 = vector.broadcast %cst_175 : f32 to vector<128x1xf32>
    %286 = vector.broadcast %cst_176 : f32 to vector<128x1xf32>
    %287 = arith.select %284, %285, %286 : vector<128x1xi1>, vector<128x1xf32>
    %c112_i32_177 = arith.constant 112 : i32
    %288 = vector.broadcast %c112_i32_177 : i32 to vector<1x128xi32>
    %289 = arith.cmpi sge, %138, %288 : vector<1x128xi32>
    %c128_i32_178 = arith.constant 128 : i32
    %290 = vector.broadcast %c128_i32_178 : i32 to vector<1x128xi32>
    %291 = arith.cmpi slt, %138, %290 : vector<1x128xi32>
    %292 = arith.andi %289, %291 : vector<1x128xi1>
    %cst_179 = arith.constant 1.000000e+00 : f32
    %cst_180 = arith.constant 0.000000e+00 : f32
    %293 = vector.broadcast %cst_179 : f32 to vector<1x128xf32>
    %294 = vector.broadcast %cst_180 : f32 to vector<1x128xf32>
    %295 = arith.select %292, %293, %294 : vector<1x128xi1>, vector<1x128xf32>
    %296 = vector.broadcast %287 : vector<128x1xf32> to vector<128x128xf32>
    %297 = vector.broadcast %295 : vector<1x128xf32> to vector<128x128xf32>
    %298 = arith.mulf %296, %297 : vector<128x128xf32>
    %299 = arith.addf %279, %298 : vector<128x128xf32>
    %300 = vector.extract_strided_slice %136 {offsets = [0, 0], sizes = [8, 128], strides = [1, 1]} : vector<8x256xf32> to vector<8x128xf32>
    %cst_181 = arith.constant dense<0.000000e+00> : vector<8x128xf32>
    %301 = tpu.matmul %300, %299, %cst_181 {dimension_numbers = #tpu.dot_dimension_numbers<[1], [0], [0], [1], [0, 0, 1, 1], [], []>} : vector<8x128xf32>, vector<128x128xf32>, vector<8x128xf32> -> vector<8x128xf32>
    %302 = vector.extract_strided_slice %136 {offsets = [0, 128], sizes = [8, 128], strides = [1, 1]} : vector<8x256xf32> to vector<8x128xf32>
    %cst_182 = arith.constant dense<0.000000e+00> : vector<8x128xf32>
    %303 = tpu.matmul %302, %299, %cst_182 {dimension_numbers = #tpu.dot_dimension_numbers<[1], [0], [0], [1], [0, 0, 1, 1], [], []>} : vector<8x128xf32>, vector<128x128xf32>, vector<8x128xf32> -> vector<8x128xf32>
    %304 = tpu.concatenate %301, %303 in 1 : vector<8x128xf32>, vector<8x128xf32> -> vector<8x256xf32>
    %cst_183 = arith.constant 0.000000e+00 : f32
    %305 = vector.broadcast %cst_183 : f32 to vector<40x256xf32>
    %c0_184 = arith.constant 0 : index
    %c0_185 = arith.constant 0 : index
    %306 = vector.load %arg27[%c0_184, %c0_185] : memref<40x256xf32, #tpu.memory_space<vmem>>, vector<40x256xf32>
    tpu.vector_store %arg27[%c0_184, %c0_185], %305 {strides = array<i32>} : memref<40x256xf32, #tpu.memory_space<vmem>>, vector<40x256xf32>,
    %307 = vector.extract_strided_slice %304 {offsets = [0, 0], sizes = [8, 124], strides = [1, 1]} : vector<8x256xf32> to vector<8x124xf32>
    %c0_186 = arith.constant 0 : index
    %c4_187 = arith.constant 4 : index
    %308 = vector.load %arg27[%c0_186, %c4_187] : memref<40x256xf32, #tpu.memory_space<vmem>>, vector<8x124xf32>
    tpu.vector_store %arg27[%c0_186, %c4_187], %307 {strides = array<i32>} : memref<40x256xf32, #tpu.memory_space<vmem>>, vector<8x124xf32>,
    %309 = vector.extract_strided_slice %304 {offsets = [0, 128], sizes = [8, 124], strides = [1, 1]} : vector<8x256xf32> to vector<8x124xf32>
    %c0_188 = arith.constant 0 : index
    %c132_189 = arith.constant 132 : index
    %310 = vector.load %arg27[%c0_188, %c132_189] : memref<40x256xf32, #tpu.memory_space<vmem>>, vector<8x124xf32>
    tpu.vector_store %arg27[%c0_188, %c132_189], %309 {strides = array<i32>} : memref<40x256xf32, #tpu.memory_space<vmem>>, vector<8x124xf32>,
    %311 = vector.extract_strided_slice %304 {offsets = [0, 0], sizes = [8, 126], strides = [1, 1]} : vector<8x256xf32> to vector<8x126xf32>
    %c8_190 = arith.constant 8 : index
    %c2_191 = arith.constant 2 : index
    %312 = vector.load %arg27[%c8_190, %c2_191] : memref<40x256xf32, #tpu.memory_space<vmem>>, vector<8x126xf32>
    tpu.vector_store %arg27[%c8_190, %c2_191], %311 {strides = array<i32>} : memref<40x256xf32, #tpu.memory_space<vmem>>, vector<8x126xf32>,
    %313 = vector.extract_strided_slice %304 {offsets = [0, 128], sizes = [8, 126], strides = [1, 1]} : vector<8x256xf32> to vector<8x126xf32>
    %c8_192 = arith.constant 8 : index
    %c130_193 = arith.constant 130 : index
    %314 = vector.load %arg27[%c8_192, %c130_193] : memref<40x256xf32, #tpu.memory_space<vmem>>, vector<8x126xf32>
    tpu.vector_store %arg27[%c8_192, %c130_193], %313 {strides = array<i32>} : memref<40x256xf32, #tpu.memory_space<vmem>>, vector<8x126xf32>,
    %315 = vector.extract_strided_slice %304 {offsets = [0, 0], sizes = [8, 128], strides = [1, 1]} : vector<8x256xf32> to vector<8x128xf32>
    %c16_194 = arith.constant 16 : index
    %c0_195 = arith.constant 0 : index
    %316 = vector.load %arg27[%c16_194, %c0_195] : memref<40x256xf32, #tpu.memory_space<vmem>>, vector<8x128xf32>
    tpu.vector_store %arg27[%c16_194, %c0_195], %315 {strides = array<i32>} : memref<40x256xf32, #tpu.memory_space<vmem>>, vector<8x128xf32>,
    %317 = vector.extract_strided_slice %304 {offsets = [0, 128], sizes = [8, 128], strides = [1, 1]} : vector<8x256xf32> to vector<8x128xf32>
    %c16_196 = arith.constant 16 : index
    %c128_197 = arith.constant 128 : index
    %318 = vector.load %arg27[%c16_196, %c128_197] : memref<40x256xf32, #tpu.memory_space<vmem>>, vector<8x128xf32>
    tpu.vector_store %arg27[%c16_196, %c128_197], %317 {strides = array<i32>} : memref<40x256xf32, #tpu.memory_space<vmem>>, vector<8x128xf32>,
    %319 = vector.extract_strided_slice %304 {offsets = [0, 2], sizes = [8, 126], strides = [1, 1]} : vector<8x256xf32> to vector<8x126xf32>
    %c24_198 = arith.constant 24 : index
    %c0_199 = arith.constant 0 : index
    %320 = vector.load %arg27[%c24_198, %c0_199] : memref<40x256xf32, #tpu.memory_space<vmem>>, vector<8x126xf32>
    tpu.vector_store %arg27[%c24_198, %c0_199], %319 {strides = array<i32>} : memref<40x256xf32, #tpu.memory_space<vmem>>, vector<8x126xf32>,
    %321 = vector.extract_strided_slice %304 {offsets = [0, 130], sizes = [8, 126], strides = [1, 1]} : vector<8x256xf32> to vector<8x126xf32>
    %c24_200 = arith.constant 24 : index
    %c128_201 = arith.constant 128 : index
    %322 = vector.load %arg27[%c24_200, %c128_201] : memref<40x256xf32, #tpu.memory_space<vmem>>, vector<8x126xf32>
    tpu.vector_store %arg27[%c24_200, %c128_201], %321 {strides = array<i32>} : memref<40x256xf32, #tpu.memory_space<vmem>>, vector<8x126xf32>,
    %323 = vector.extract_strided_slice %304 {offsets = [0, 4], sizes = [8, 124], strides = [1, 1]} : vector<8x256xf32> to vector<8x124xf32>
    %c32_202 = arith.constant 32 : index
    %c0_203 = arith.constant 0 : index
    %324 = vector.load %arg27[%c32_202, %c0_203] : memref<40x256xf32, #tpu.memory_space<vmem>>, vector<8x124xf32>
    tpu.vector_store %arg27[%c32_202, %c0_203], %323 {strides = array<i32>} : memref<40x256xf32, #tpu.memory_space<vmem>>, vector<8x124xf32>,
    %325 = vector.extract_strided_slice %304 {offsets = [0, 132], sizes = [8, 124], strides = [1, 1]} : vector<8x256xf32> to vector<8x124xf32>
    %c32_204 = arith.constant 32 : index
    %c128_205 = arith.constant 128 : index
    %326 = vector.load %arg27[%c32_204, %c128_205] : memref<40x256xf32, #tpu.memory_space<vmem>>, vector<8x124xf32>
    tpu.vector_store %arg27[%c32_204, %c128_205], %325 {strides = array<i32>} : memref<40x256xf32, #tpu.memory_space<vmem>>, vector<8x124xf32>,
    %c0_206 = arith.constant 0 : index
    %c0_207 = arith.constant 0 : index
    %327 = vector.load %arg14[%c0_206, %c0_207] : memref<8x40xf32, #tpu.memory_space<vmem>>, vector<8x40xf32>
    %c0_208 = arith.constant 0 : index
    %c0_209 = arith.constant 0 : index
    %328 = vector.load %arg27[%c0_208, %c0_209] : memref<40x256xf32, #tpu.memory_space<vmem>>, vector<40x256xf32>
    %cst_210 = arith.constant dense<0.000000e+00> : vector<8x256xf32>
    %329 = tpu.matmul %327, %328, %cst_210 {dimension_numbers = #tpu.dot_dimension_numbers<[1], [0], [0], [1], [0, 0, 1, 1], [], []>} : vector<8x40xf32>, vector<40x256xf32>, vector<8x256xf32> -> vector<8x256xf32>
    %c0_211 = arith.constant 0 : index
    %c0_212 = arith.constant 0 : index
    %330 = vector.load %arg15[%c0_211, %c0_212] : memref<8x1xf32, #tpu.memory_space<vmem>>, vector<8x1xf32>
    %331 = vector.broadcast %330 : vector<8x1xf32> to vector<8x256xf32>
    %332 = arith.addf %329, %331 : vector<8x256xf32>
    %cst_213 = arith.constant 0.000000e+00 : f32
    %333 = vector.broadcast %cst_213 : f32 to vector<8x256xf32>
    %334 = arith.maximumf %332, %333 : vector<8x256xf32>
    %cst_214 = arith.constant 0.000000e+00 : f32
    %335 = vector.broadcast %cst_214 : f32 to vector<40x256xf32>
    %c0_215 = arith.constant 0 : index
    %c0_216 = arith.constant 0 : index
    %336 = vector.load %arg27[%c0_215, %c0_216] : memref<40x256xf32, #tpu.memory_space<vmem>>, vector<40x256xf32>
    tpu.vector_store %arg27[%c0_215, %c0_216], %335 {strides = array<i32>} : memref<40x256xf32, #tpu.memory_space<vmem>>, vector<40x256xf32>,
    %337 = vector.extract_strided_slice %334 {offsets = [0, 0], sizes = [8, 124], strides = [1, 1]} : vector<8x256xf32> to vector<8x124xf32>
    %c0_217 = arith.constant 0 : index
    %c4_218 = arith.constant 4 : index
    %338 = vector.load %arg27[%c0_217, %c4_218] : memref<40x256xf32, #tpu.memory_space<vmem>>, vector<8x124xf32>
    tpu.vector_store %arg27[%c0_217, %c4_218], %337 {strides = array<i32>} : memref<40x256xf32, #tpu.memory_space<vmem>>, vector<8x124xf32>,
    %339 = vector.extract_strided_slice %334 {offsets = [0, 128], sizes = [8, 124], strides = [1, 1]} : vector<8x256xf32> to vector<8x124xf32>
    %c0_219 = arith.constant 0 : index
    %c132_220 = arith.constant 132 : index
    %340 = vector.load %arg27[%c0_219, %c132_220] : memref<40x256xf32, #tpu.memory_space<vmem>>, vector<8x124xf32>
    tpu.vector_store %arg27[%c0_219, %c132_220], %339 {strides = array<i32>} : memref<40x256xf32, #tpu.memory_space<vmem>>, vector<8x124xf32>,
    %341 = vector.extract_strided_slice %334 {offsets = [0, 0], sizes = [8, 126], strides = [1, 1]} : vector<8x256xf32> to vector<8x126xf32>
    %c8_221 = arith.constant 8 : index
    %c2_222 = arith.constant 2 : index
    %342 = vector.load %arg27[%c8_221, %c2_222] : memref<40x256xf32, #tpu.memory_space<vmem>>, vector<8x126xf32>
    tpu.vector_store %arg27[%c8_221, %c2_222], %341 {strides = array<i32>} : memref<40x256xf32, #tpu.memory_space<vmem>>, vector<8x126xf32>,
    %343 = vector.extract_strided_slice %334 {offsets = [0, 128], sizes = [8, 126], strides = [1, 1]} : vector<8x256xf32> to vector<8x126xf32>
    %c8_223 = arith.constant 8 : index
    %c130_224 = arith.constant 130 : index
    %344 = vector.load %arg27[%c8_223, %c130_224] : memref<40x256xf32, #tpu.memory_space<vmem>>, vector<8x126xf32>
    tpu.vector_store %arg27[%c8_223, %c130_224], %343 {strides = array<i32>} : memref<40x256xf32, #tpu.memory_space<vmem>>, vector<8x126xf32>,
    %345 = vector.extract_strided_slice %334 {offsets = [0, 0], sizes = [8, 128], strides = [1, 1]} : vector<8x256xf32> to vector<8x128xf32>
    %c16_225 = arith.constant 16 : index
    %c0_226 = arith.constant 0 : index
    %346 = vector.load %arg27[%c16_225, %c0_226] : memref<40x256xf32, #tpu.memory_space<vmem>>, vector<8x128xf32>
    tpu.vector_store %arg27[%c16_225, %c0_226], %345 {strides = array<i32>} : memref<40x256xf32, #tpu.memory_space<vmem>>, vector<8x128xf32>,
    %347 = vector.extract_strided_slice %334 {offsets = [0, 128], sizes = [8, 128], strides = [1, 1]} : vector<8x256xf32> to vector<8x128xf32>
    %c16_227 = arith.constant 16 : index
    %c128_228 = arith.constant 128 : index
    %348 = vector.load %arg27[%c16_227, %c128_228] : memref<40x256xf32, #tpu.memory_space<vmem>>, vector<8x128xf32>
    tpu.vector_store %arg27[%c16_227, %c128_228], %347 {strides = array<i32>} : memref<40x256xf32, #tpu.memory_space<vmem>>, vector<8x128xf32>,
    %349 = vector.extract_strided_slice %334 {offsets = [0, 2], sizes = [8, 126], strides = [1, 1]} : vector<8x256xf32> to vector<8x126xf32>
    %c24_229 = arith.constant 24 : index
    %c0_230 = arith.constant 0 : index
    %350 = vector.load %arg27[%c24_229, %c0_230] : memref<40x256xf32, #tpu.memory_space<vmem>>, vector<8x126xf32>
    tpu.vector_store %arg27[%c24_229, %c0_230], %349 {strides = array<i32>} : memref<40x256xf32, #tpu.memory_space<vmem>>, vector<8x126xf32>,
    %351 = vector.extract_strided_slice %334 {offsets = [0, 130], sizes = [8, 126], strides = [1, 1]} : vector<8x256xf32> to vector<8x126xf32>
    %c24_231 = arith.constant 24 : index
    %c128_232 = arith.constant 128 : index
    %352 = vector.load %arg27[%c24_231, %c128_232] : memref<40x256xf32, #tpu.memory_space<vmem>>, vector<8x126xf32>
    tpu.vector_store %arg27[%c24_231, %c128_232], %351 {strides = array<i32>} : memref<40x256xf32, #tpu.memory_space<vmem>>, vector<8x126xf32>,
    %353 = vector.extract_strided_slice %334 {offsets = [0, 4], sizes = [8, 124], strides = [1, 1]} : vector<8x256xf32> to vector<8x124xf32>
    %c32_233 = arith.constant 32 : index
    %c0_234 = arith.constant 0 : index
    %354 = vector.load %arg27[%c32_233, %c0_234] : memref<40x256xf32, #tpu.memory_space<vmem>>, vector<8x124xf32>
    tpu.vector_store %arg27[%c32_233, %c0_234], %353 {strides = array<i32>} : memref<40x256xf32, #tpu.memory_space<vmem>>, vector<8x124xf32>,
    %355 = vector.extract_strided_slice %334 {offsets = [0, 132], sizes = [8, 124], strides = [1, 1]} : vector<8x256xf32> to vector<8x124xf32>
    %c32_235 = arith.constant 32 : index
    %c128_236 = arith.constant 128 : index
    %356 = vector.load %arg27[%c32_235, %c128_236] : memref<40x256xf32, #tpu.memory_space<vmem>>, vector<8x124xf32>
    tpu.vector_store %arg27[%c32_235, %c128_236], %355 {strides = array<i32>} : memref<40x256xf32, #tpu.memory_space<vmem>>, vector<8x124xf32>,
    %c0_237 = arith.constant 0 : index
    %c0_238 = arith.constant 0 : index
    %357 = vector.load %arg16[%c0_237, %c0_238] : memref<8x40xf32, #tpu.memory_space<vmem>>, vector<8x40xf32>
    %c0_239 = arith.constant 0 : index
    %c0_240 = arith.constant 0 : index
    %358 = vector.load %arg27[%c0_239, %c0_240] : memref<40x256xf32, #tpu.memory_space<vmem>>, vector<40x256xf32>
    %cst_241 = arith.constant dense<0.000000e+00> : vector<8x256xf32>
    %359 = tpu.matmul %357, %358, %cst_241 {dimension_numbers = #tpu.dot_dimension_numbers<[1], [0], [0], [1], [0, 0, 1, 1], [], []>} : vector<8x40xf32>, vector<40x256xf32>, vector<8x256xf32> -> vector<8x256xf32>
    %c0_242 = arith.constant 0 : index
    %c0_243 = arith.constant 0 : index
    %360 = vector.load %arg17[%c0_242, %c0_243] : memref<8x1xf32, #tpu.memory_space<vmem>>, vector<8x1xf32>
    %361 = vector.broadcast %360 : vector<8x1xf32> to vector<8x256xf32>
    %362 = arith.addf %359, %361 : vector<8x256xf32>
    %cst_244 = arith.constant 0.000000e+00 : f32
    %363 = vector.broadcast %cst_244 : f32 to vector<8x256xf32>
    %364 = arith.maximumf %362, %363 : vector<8x256xf32>
    %c0_245 = arith.constant 0 : index
    %c0_246 = arith.constant 0 : index
    %365 = vector.load %arg18[%c0_245, %c0_246] : memref<8x8xf32, #tpu.memory_space<vmem>>, vector<8x8xf32>
    %cst_247 = arith.constant dense<0.000000e+00> : vector<8x256xf32>
    %366 = tpu.matmul %365, %304, %cst_247 {dimension_numbers = #tpu.dot_dimension_numbers<[1], [0], [0], [1], [0, 0, 1, 1], [], []>} : vector<8x8xf32>, vector<8x256xf32>, vector<8x256xf32> -> vector<8x256xf32>
    %c0_248 = arith.constant 0 : index
    %c0_249 = arith.constant 0 : index
    %367 = vector.load %arg19[%c0_248, %c0_249] : memref<8x1xf32, #tpu.memory_space<vmem>>, vector<8x1xf32>
    %368 = vector.broadcast %367 : vector<8x1xf32> to vector<8x256xf32>
    %369 = arith.addf %366, %368 : vector<8x256xf32>
    %370 = arith.addf %364, %369 : vector<8x256xf32>
    %cst_250 = arith.constant 0.000000e+00 : f32
    %371 = vector.broadcast %cst_250 : f32 to vector<8x256xf32>
    %372 = arith.maximumf %370, %371 : vector<8x256xf32>
    %cst_251 = arith.constant 0.000000e+00 : f32
    %373 = vector.broadcast %cst_251 : f32 to vector<40x256xf32>
    %c0_252 = arith.constant 0 : index
    %c0_253 = arith.constant 0 : index
    %374 = vector.load %arg27[%c0_252, %c0_253] : memref<40x256xf32, #tpu.memory_space<vmem>>, vector<40x256xf32>
    tpu.vector_store %arg27[%c0_252, %c0_253], %373 {strides = array<i32>} : memref<40x256xf32, #tpu.memory_space<vmem>>, vector<40x256xf32>,
    %375 = vector.extract_strided_slice %372 {offsets = [0, 0], sizes = [8, 126], strides = [1, 1]} : vector<8x256xf32> to vector<8x126xf32>
    %c0_254 = arith.constant 0 : index
    %c2_255 = arith.constant 2 : index
    %376 = vector.load %arg27[%c0_254, %c2_255] : memref<40x256xf32, #tpu.memory_space<vmem>>, vector<8x126xf32>
    tpu.vector_store %arg27[%c0_254, %c2_255], %375 {strides = array<i32>} : memref<40x256xf32, #tpu.memory_space<vmem>>, vector<8x126xf32>,
    %377 = vector.extract_strided_slice %372 {offsets = [0, 128], sizes = [8, 126], strides = [1, 1]} : vector<8x256xf32> to vector<8x126xf32>
    %c0_256 = arith.constant 0 : index
    %c130_257 = arith.constant 130 : index
    %378 = vector.load %arg27[%c0_256, %c130_257] : memref<40x256xf32, #tpu.memory_space<vmem>>, vector<8x126xf32>
    tpu.vector_store %arg27[%c0_256, %c130_257], %377 {strides = array<i32>} : memref<40x256xf32, #tpu.memory_space<vmem>>, vector<8x126xf32>,
    %379 = vector.extract_strided_slice %372 {offsets = [0, 0], sizes = [8, 127], strides = [1, 1]} : vector<8x256xf32> to vector<8x127xf32>
    %c8_258 = arith.constant 8 : index
    %c1_259 = arith.constant 1 : index
    %380 = vector.load %arg27[%c8_258, %c1_259] : memref<40x256xf32, #tpu.memory_space<vmem>>, vector<8x127xf32>
    tpu.vector_store %arg27[%c8_258, %c1_259], %379 {strides = array<i32>} : memref<40x256xf32, #tpu.memory_space<vmem>>, vector<8x127xf32>,
    %381 = vector.extract_strided_slice %372 {offsets = [0, 128], sizes = [8, 127], strides = [1, 1]} : vector<8x256xf32> to vector<8x127xf32>
    %c8_260 = arith.constant 8 : index
    %c129_261 = arith.constant 129 : index
    %382 = vector.load %arg27[%c8_260, %c129_261] : memref<40x256xf32, #tpu.memory_space<vmem>>, vector<8x127xf32>
    tpu.vector_store %arg27[%c8_260, %c129_261], %381 {strides = array<i32>} : memref<40x256xf32, #tpu.memory_space<vmem>>, vector<8x127xf32>,
    %383 = vector.extract_strided_slice %372 {offsets = [0, 0], sizes = [8, 128], strides = [1, 1]} : vector<8x256xf32> to vector<8x128xf32>
    %c16_262 = arith.constant 16 : index
    %c0_263 = arith.constant 0 : index
    %384 = vector.load %arg27[%c16_262, %c0_263] : memref<40x256xf32, #tpu.memory_space<vmem>>, vector<8x128xf32>
    tpu.vector_store %arg27[%c16_262, %c0_263], %383 {strides = array<i32>} : memref<40x256xf32, #tpu.memory_space<vmem>>, vector<8x128xf32>,
    %385 = vector.extract_strided_slice %372 {offsets = [0, 128], sizes = [8, 128], strides = [1, 1]} : vector<8x256xf32> to vector<8x128xf32>
    %c16_264 = arith.constant 16 : index
    %c128_265 = arith.constant 128 : index
    %386 = vector.load %arg27[%c16_264, %c128_265] : memref<40x256xf32, #tpu.memory_space<vmem>>, vector<8x128xf32>
    tpu.vector_store %arg27[%c16_264, %c128_265], %385 {strides = array<i32>} : memref<40x256xf32, #tpu.memory_space<vmem>>, vector<8x128xf32>,
    %387 = vector.extract_strided_slice %372 {offsets = [0, 1], sizes = [8, 127], strides = [1, 1]} : vector<8x256xf32> to vector<8x127xf32>
    %c24_266 = arith.constant 24 : index
    %c0_267 = arith.constant 0 : index
    %388 = vector.load %arg27[%c24_266, %c0_267] : memref<40x256xf32, #tpu.memory_space<vmem>>, vector<8x127xf32>
    tpu.vector_store %arg27[%c24_266, %c0_267], %387 {strides = array<i32>} : memref<40x256xf32, #tpu.memory_space<vmem>>, vector<8x127xf32>,
    %389 = vector.extract_strided_slice %372 {offsets = [0, 129], sizes = [8, 127], strides = [1, 1]} : vector<8x256xf32> to vector<8x127xf32>
    %c24_268 = arith.constant 24 : index
    %c128_269 = arith.constant 128 : index
    %390 = vector.load %arg27[%c24_268, %c128_269] : memref<40x256xf32, #tpu.memory_space<vmem>>, vector<8x127xf32>
    tpu.vector_store %arg27[%c24_268, %c128_269], %389 {strides = array<i32>} : memref<40x256xf32, #tpu.memory_space<vmem>>, vector<8x127xf32>,
    %391 = vector.extract_strided_slice %372 {offsets = [0, 2], sizes = [8, 126], strides = [1, 1]} : vector<8x256xf32> to vector<8x126xf32>
    %c32_270 = arith.constant 32 : index
    %c0_271 = arith.constant 0 : index
    %392 = vector.load %arg27[%c32_270, %c0_271] : memref<40x256xf32, #tpu.memory_space<vmem>>, vector<8x126xf32>
    tpu.vector_store %arg27[%c32_270, %c0_271], %391 {strides = array<i32>} : memref<40x256xf32, #tpu.memory_space<vmem>>, vector<8x126xf32>,
    %393 = vector.extract_strided_slice %372 {offsets = [0, 130], sizes = [8, 126], strides = [1, 1]} : vector<8x256xf32> to vector<8x126xf32>
    %c32_272 = arith.constant 32 : index
    %c128_273 = arith.constant 128 : index
    %394 = vector.load %arg27[%c32_272, %c128_273] : memref<40x256xf32, #tpu.memory_space<vmem>>, vector<8x126xf32>
    tpu.vector_store %arg27[%c32_272, %c128_273], %393 {strides = array<i32>} : memref<40x256xf32, #tpu.memory_space<vmem>>, vector<8x126xf32>,
    %c0_274 = arith.constant 0 : index
    %c0_275 = arith.constant 0 : index
    %395 = vector.load %arg20[%c0_274, %c0_275] : memref<8x40xf32, #tpu.memory_space<vmem>>, vector<8x40xf32>
    %c0_276 = arith.constant 0 : index
    %c0_277 = arith.constant 0 : index
    %396 = vector.load %arg27[%c0_276, %c0_277] : memref<40x256xf32, #tpu.memory_space<vmem>>, vector<40x256xf32>
    %cst_278 = arith.constant dense<0.000000e+00> : vector<8x256xf32>
    %397 = tpu.matmul %395, %396, %cst_278 {dimension_numbers = #tpu.dot_dimension_numbers<[1], [0], [0], [1], [0, 0, 1, 1], [], []>} : vector<8x40xf32>, vector<40x256xf32>, vector<8x256xf32> -> vector<8x256xf32>
    %c0_279 = arith.constant 0 : index
    %c0_280 = arith.constant 0 : index
    %398 = vector.load %arg21[%c0_279, %c0_280] : memref<8x1xf32, #tpu.memory_space<vmem>>, vector<8x1xf32>
    %399 = vector.broadcast %398 : vector<8x1xf32> to vector<8x256xf32>
    %400 = arith.addf %397, %399 : vector<8x256xf32>
    %cst_281 = arith.constant 0.000000e+00 : f32
    %401 = vector.broadcast %cst_281 : f32 to vector<8x256xf32>
    %402 = arith.maximumf %400, %401 : vector<8x256xf32>
    %cst_282 = arith.constant 0.000000e+00 : f32
    %403 = vector.broadcast %cst_282 : f32 to vector<40x256xf32>
    %c0_283 = arith.constant 0 : index
    %c0_284 = arith.constant 0 : index
    %404 = vector.load %arg27[%c0_283, %c0_284] : memref<40x256xf32, #tpu.memory_space<vmem>>, vector<40x256xf32>
    tpu.vector_store %arg27[%c0_283, %c0_284], %403 {strides = array<i32>} : memref<40x256xf32, #tpu.memory_space<vmem>>, vector<40x256xf32>,
    %405 = vector.extract_strided_slice %402 {offsets = [0, 0], sizes = [8, 126], strides = [1, 1]} : vector<8x256xf32> to vector<8x126xf32>
    %c0_285 = arith.constant 0 : index
    %c2_286 = arith.constant 2 : index
    %406 = vector.load %arg27[%c0_285, %c2_286] : memref<40x256xf32, #tpu.memory_space<vmem>>, vector<8x126xf32>
    tpu.vector_store %arg27[%c0_285, %c2_286], %405 {strides = array<i32>} : memref<40x256xf32, #tpu.memory_space<vmem>>, vector<8x126xf32>,
    %407 = vector.extract_strided_slice %402 {offsets = [0, 128], sizes = [8, 126], strides = [1, 1]} : vector<8x256xf32> to vector<8x126xf32>
    %c0_287 = arith.constant 0 : index
    %c130_288 = arith.constant 130 : index
    %408 = vector.load %arg27[%c0_287, %c130_288] : memref<40x256xf32, #tpu.memory_space<vmem>>, vector<8x126xf32>
    tpu.vector_store %arg27[%c0_287, %c130_288], %407 {strides = array<i32>} : memref<40x256xf32, #tpu.memory_space<vmem>>, vector<8x126xf32>,
    %409 = vector.extract_strided_slice %402 {offsets = [0, 0], sizes = [8, 127], strides = [1, 1]} : vector<8x256xf32> to vector<8x127xf32>
    %c8_289 = arith.constant 8 : index
    %c1_290 = arith.constant 1 : index
    %410 = vector.load %arg27[%c8_289, %c1_290] : memref<40x256xf32, #tpu.memory_space<vmem>>, vector<8x127xf32>
    tpu.vector_store %arg27[%c8_289, %c1_290], %409 {strides = array<i32>} : memref<40x256xf32, #tpu.memory_space<vmem>>, vector<8x127xf32>,
    %411 = vector.extract_strided_slice %402 {offsets = [0, 128], sizes = [8, 127], strides = [1, 1]} : vector<8x256xf32> to vector<8x127xf32>
    %c8_291 = arith.constant 8 : index
    %c129_292 = arith.constant 129 : index
    %412 = vector.load %arg27[%c8_291, %c129_292] : memref<40x256xf32, #tpu.memory_space<vmem>>, vector<8x127xf32>
    tpu.vector_store %arg27[%c8_291, %c129_292], %411 {strides = array<i32>} : memref<40x256xf32, #tpu.memory_space<vmem>>, vector<8x127xf32>,
    %413 = vector.extract_strided_slice %402 {offsets = [0, 0], sizes = [8, 128], strides = [1, 1]} : vector<8x256xf32> to vector<8x128xf32>
    %c16_293 = arith.constant 16 : index
    %c0_294 = arith.constant 0 : index
    %414 = vector.load %arg27[%c16_293, %c0_294] : memref<40x256xf32, #tpu.memory_space<vmem>>, vector<8x128xf32>
    tpu.vector_store %arg27[%c16_293, %c0_294], %413 {strides = array<i32>} : memref<40x256xf32, #tpu.memory_space<vmem>>, vector<8x128xf32>,
    %415 = vector.extract_strided_slice %402 {offsets = [0, 128], sizes = [8, 128], strides = [1, 1]} : vector<8x256xf32> to vector<8x128xf32>
    %c16_295 = arith.constant 16 : index
    %c128_296 = arith.constant 128 : index
    %416 = vector.load %arg27[%c16_295, %c128_296] : memref<40x256xf32, #tpu.memory_space<vmem>>, vector<8x128xf32>
    tpu.vector_store %arg27[%c16_295, %c128_296], %415 {strides = array<i32>} : memref<40x256xf32, #tpu.memory_space<vmem>>, vector<8x128xf32>,
    %417 = vector.extract_strided_slice %402 {offsets = [0, 1], sizes = [8, 127], strides = [1, 1]} : vector<8x256xf32> to vector<8x127xf32>
    %c24_297 = arith.constant 24 : index
    %c0_298 = arith.constant 0 : index
    %418 = vector.load %arg27[%c24_297, %c0_298] : memref<40x256xf32, #tpu.memory_space<vmem>>, vector<8x127xf32>
    tpu.vector_store %arg27[%c24_297, %c0_298], %417 {strides = array<i32>} : memref<40x256xf32, #tpu.memory_space<vmem>>, vector<8x127xf32>,
    %419 = vector.extract_strided_slice %402 {offsets = [0, 129], sizes = [8, 127], strides = [1, 1]} : vector<8x256xf32> to vector<8x127xf32>
    %c24_299 = arith.constant 24 : index
    %c128_300 = arith.constant 128 : index
    %420 = vector.load %arg27[%c24_299, %c128_300] : memref<40x256xf32, #tpu.memory_space<vmem>>, vector<8x127xf32>
    tpu.vector_store %arg27[%c24_299, %c128_300], %419 {strides = array<i32>} : memref<40x256xf32, #tpu.memory_space<vmem>>, vector<8x127xf32>,
    %421 = vector.extract_strided_slice %402 {offsets = [0, 2], sizes = [8, 126], strides = [1, 1]} : vector<8x256xf32> to vector<8x126xf32>
    %c32_301 = arith.constant 32 : index
    %c0_302 = arith.constant 0 : index
    %422 = vector.load %arg27[%c32_301, %c0_302] : memref<40x256xf32, #tpu.memory_space<vmem>>, vector<8x126xf32>
    tpu.vector_store %arg27[%c32_301, %c0_302], %421 {strides = array<i32>} : memref<40x256xf32, #tpu.memory_space<vmem>>, vector<8x126xf32>,
    %423 = vector.extract_strided_slice %402 {offsets = [0, 130], sizes = [8, 126], strides = [1, 1]} : vector<8x256xf32> to vector<8x126xf32>
    %c32_303 = arith.constant 32 : index
    %c128_304 = arith.constant 128 : index
    %424 = vector.load %arg27[%c32_303, %c128_304] : memref<40x256xf32, #tpu.memory_space<vmem>>, vector<8x126xf32>
    tpu.vector_store %arg27[%c32_303, %c128_304], %423 {strides = array<i32>} : memref<40x256xf32, #tpu.memory_space<vmem>>, vector<8x126xf32>,
    %c0_305 = arith.constant 0 : index
    %c0_306 = arith.constant 0 : index
    %425 = vector.load %arg22[%c0_305, %c0_306] : memref<8x40xf32, #tpu.memory_space<vmem>>, vector<8x40xf32>
    %c0_307 = arith.constant 0 : index
    %c0_308 = arith.constant 0 : index
    %426 = vector.load %arg27[%c0_307, %c0_308] : memref<40x256xf32, #tpu.memory_space<vmem>>, vector<40x256xf32>
    %cst_309 = arith.constant dense<0.000000e+00> : vector<8x256xf32>
    %427 = tpu.matmul %425, %426, %cst_309 {dimension_numbers = #tpu.dot_dimension_numbers<[1], [0], [0], [1], [0, 0, 1, 1], [], []>} : vector<8x40xf32>, vector<40x256xf32>, vector<8x256xf32> -> vector<8x256xf32>
    %c0_310 = arith.constant 0 : index
    %c0_311 = arith.constant 0 : index
    %428 = vector.load %arg23[%c0_310, %c0_311] : memref<8x1xf32, #tpu.memory_space<vmem>>, vector<8x1xf32>
    %429 = vector.broadcast %428 : vector<8x1xf32> to vector<8x256xf32>
    %430 = arith.addf %427, %429 : vector<8x256xf32>
    %cst_312 = arith.constant 0.000000e+00 : f32
    %431 = vector.broadcast %cst_312 : f32 to vector<8x256xf32>
    %432 = arith.maximumf %430, %431 : vector<8x256xf32>
    %433 = arith.addf %432, %372 : vector<8x256xf32>
    %cst_313 = arith.constant 0.000000e+00 : f32
    %434 = vector.broadcast %cst_313 : f32 to vector<8x256xf32>
    %435 = arith.maximumf %433, %434 : vector<8x256xf32>
    %c0_314 = arith.constant 0 : index
    %c0_315 = arith.constant 0 : index
    %436 = vector.load %arg24[%c0_314, %c0_315] : memref<4x8xf32, #tpu.memory_space<vmem>>, vector<4x8xf32>
    %cst_316 = arith.constant dense<0.000000e+00> : vector<4x256xf32>
    %437 = tpu.matmul %436, %435, %cst_316 {dimension_numbers = #tpu.dot_dimension_numbers<[1], [0], [0], [1], [0, 0, 1, 1], [], []>} : vector<4x8xf32>, vector<8x256xf32>, vector<4x256xf32> -> vector<4x256xf32>
    %c0_317 = arith.constant 0 : index
    %c0_318 = arith.constant 0 : index
    %438 = vector.load %arg25[%c0_317, %c0_318] : memref<4x1xf32, #tpu.memory_space<vmem>>, vector<4x1xf32>
    %439 = vector.broadcast %438 : vector<4x1xf32> to vector<4x256xf32>
    %440 = arith.addf %437, %439 : vector<4x256xf32>
    %441 = vector.extract_strided_slice %440 {offsets = [0, 0], sizes = [4, 128], strides = [1, 1]} : vector<4x256xf32> to vector<4x128xf32>
    %c0_319 = arith.constant 0 : index
    %c0_320 = arith.constant 0 : index
    %c0_321 = arith.constant 0 : index
    %442 = vector.load %arg26[%c0_319, %c0_320, %c0_321] : memref<2x4x128xf32, #tpu.memory_space<vmem>>, vector<1x4x128xf32>
    %443 = vector.shape_cast %442 : vector<1x4x128xf32> to vector<4x128xf32>
    %444 = vector.shape_cast %441 : vector<4x128xf32> to vector<1x4x128xf32>
    tpu.vector_store %arg26[%c0_319, %c0_320, %c0_321], %444 {strides = array<i32>} : memref<2x4x128xf32, #tpu.memory_space<vmem>>, vector<1x4x128xf32>,
    %445 = vector.extract_strided_slice %440 {offsets = [0, 128], sizes = [4, 128], strides = [1, 1]} : vector<4x256xf32> to vector<4x128xf32>
    %c1_322 = arith.constant 1 : index
    %c0_323 = arith.constant 0 : index
    %c0_324 = arith.constant 0 : index
    %446 = vector.load %arg26[%c1_322, %c0_323, %c0_324] : memref<2x4x128xf32, #tpu.memory_space<vmem>>, vector<1x4x128xf32>
    %447 = vector.shape_cast %446 : vector<1x4x128xf32> to vector<4x128xf32>
    %448 = vector.shape_cast %445 : vector<4x128xf32> to vector<1x4x128xf32>
    tpu.vector_store %arg26[%c1_322, %c0_323, %c0_324], %448 {strides = array<i32>} : memref<2x4x128xf32, #tpu.memory_space<vmem>>, vector<1x4x128xf32>,
    return
  }
  func.func @transform_0(%arg0: i32) -> (i32, i32) {
    %c0_i32 = arith.constant 0 : i32
    %c0_i32_0 = arith.constant 0 : i32
    %c0_i32_1 = arith.constant 0 : i32
    return %c0_i32, %c0_i32_0 : i32, i32
  }
  func.func @transform_1(%arg0: i32) -> (i32, i32) {
    %c0_i32 = arith.constant 0 : i32
    %c0_i32_0 = arith.constant 0 : i32
    %c0_i32_1 = arith.constant 0 : i32
    return %c0_i32, %c0_i32_0 : i32, i32
  }
  func.func @transform_2(%arg0: i32) -> (i32, i32) {
    %c0_i32 = arith.constant 0 : i32
    %c0_i32_0 = arith.constant 0 : i32
    %c0_i32_1 = arith.constant 0 : i32
    return %c0_i32, %c0_i32_0 : i32, i32
  }
  func.func @transform_3(%arg0: i32) -> (i32, i32) {
    %c0_i32 = arith.constant 0 : i32
    %c0_i32_0 = arith.constant 0 : i32
    %c0_i32_1 = arith.constant 0 : i32
    return %c0_i32, %c0_i32_0 : i32, i32
  }
  func.func @transform_4(%arg0: i32) -> (i32, i32) {
    %c0_i32 = arith.constant 0 : i32
    %c0_i32_0 = arith.constant 0 : i32
    %c0_i32_1 = arith.constant 0 : i32
    return %c0_i32, %c0_i32_0 : i32, i32
  }
  func.func @transform_5(%arg0: i32) -> (i32, i32) {
    %c0_i32 = arith.constant 0 : i32
    %c0_i32_0 = arith.constant 0 : i32
    %c0_i32_1 = arith.constant 0 : i32
    return %c0_i32, %c0_i32_0 : i32, i32
  }
  func.func @transform_6(%arg0: i32) -> (i32, i32) {
    %c0_i32 = arith.constant 0 : i32
    %c0_i32_0 = arith.constant 0 : i32
    %c0_i32_1 = arith.constant 0 : i32
    return %c0_i32, %c0_i32_0 : i32, i32
  }
  func.func @transform_7(%arg0: i32) -> (i32, i32) {
    %c0_i32 = arith.constant 0 : i32
    %c0_i32_0 = arith.constant 0 : i32
    %c0_i32_1 = arith.constant 0 : i32
    return %c0_i32, %c0_i32_0 : i32, i32
  }
  func.func @transform_8(%arg0: i32) -> (i32, i32) {
    %c0_i32 = arith.constant 0 : i32
    %c0_i32_0 = arith.constant 0 : i32
    %c0_i32_1 = arith.constant 0 : i32
    return %c0_i32, %c0_i32_0 : i32, i32
  }
  func.func @transform_9(%arg0: i32) -> (i32, i32) {
    %c0_i32 = arith.constant 0 : i32
    %c0_i32_0 = arith.constant 0 : i32
    %c0_i32_1 = arith.constant 0 : i32
    return %c0_i32, %c0_i32_0 : i32, i32
  }
  func.func @transform_10(%arg0: i32) -> (i32, i32) {
    %c0_i32 = arith.constant 0 : i32
    %c0_i32_0 = arith.constant 0 : i32
    %c0_i32_1 = arith.constant 0 : i32
    return %c0_i32, %c0_i32_0 : i32, i32
  }
  func.func @transform_11(%arg0: i32) -> (i32, i32) {
    %c0_i32 = arith.constant 0 : i32
    %c0_i32_0 = arith.constant 0 : i32
    %c0_i32_1 = arith.constant 0 : i32
    return %c0_i32, %c0_i32_0 : i32, i32
  }
  func.func @transform_12(%arg0: i32) -> (i32, i32) {
    %c0_i32 = arith.constant 0 : i32
    %c0_i32_0 = arith.constant 0 : i32
    %c0_i32_1 = arith.constant 0 : i32
    return %c0_i32, %c0_i32_0 : i32, i32
  }
  func.func @transform_13(%arg0: i32) -> (i32, i32) {
    %c0_i32 = arith.constant 0 : i32
    %c0_i32_0 = arith.constant 0 : i32
    %c0_i32_1 = arith.constant 0 : i32
    return %c0_i32, %c0_i32_0 : i32, i32
  }
  func.func @transform_14(%arg0: i32) -> (i32, i32) {
    %c0_i32 = arith.constant 0 : i32
    %c0_i32_0 = arith.constant 0 : i32
    %c0_i32_1 = arith.constant 0 : i32
    return %c0_i32, %c0_i32_0 : i32, i32
  }
  func.func @transform_15(%arg0: i32) -> (i32, i32) {
    %c0_i32 = arith.constant 0 : i32
    %c0_i32_0 = arith.constant 0 : i32
    %c0_i32_1 = arith.constant 0 : i32
    return %c0_i32, %c0_i32_0 : i32, i32
  }
  func.func @transform_16(%arg0: i32) -> (i32, i32) {
    %c0_i32 = arith.constant 0 : i32
    %c0_i32_0 = arith.constant 0 : i32
    %c0_i32_1 = arith.constant 0 : i32
    return %c0_i32, %c0_i32_0 : i32, i32
  }
  func.func @transform_17(%arg0: i32) -> (i32, i32) {
    %c0_i32 = arith.constant 0 : i32
    %c0_i32_0 = arith.constant 0 : i32
    %c0_i32_1 = arith.constant 0 : i32
    return %c0_i32, %c0_i32_0 : i32, i32
  }
  func.func @transform_18(%arg0: i32) -> (i32, i32) {
    %c0_i32 = arith.constant 0 : i32
    %c0_i32_0 = arith.constant 0 : i32
    %c0_i32_1 = arith.constant 0 : i32
    return %c0_i32, %c0_i32_0 : i32, i32
  }
  func.func @transform_19(%arg0: i32) -> (i32, i32) {
    %c0_i32 = arith.constant 0 : i32
    %c0_i32_0 = arith.constant 0 : i32
    %c0_i32_1 = arith.constant 0 : i32
    return %c0_i32, %c0_i32_0 : i32, i32
  }
  func.func @transform_20(%arg0: i32) -> (i32, i32) {
    %c0_i32 = arith.constant 0 : i32
    %c0_i32_0 = arith.constant 0 : i32
    %c0_i32_1 = arith.constant 0 : i32
    return %c0_i32, %c0_i32_0 : i32, i32
  }
  func.func @transform_21(%arg0: i32) -> (i32, i32) {
    %c0_i32 = arith.constant 0 : i32
    %c0_i32_0 = arith.constant 0 : i32
    %c0_i32_1 = arith.constant 0 : i32
    return %c0_i32, %c0_i32_0 : i32, i32
  }
  func.func @transform_22(%arg0: i32) -> (i32, i32) {
    %c0_i32 = arith.constant 0 : i32
    %c0_i32_0 = arith.constant 0 : i32
    %c0_i32_1 = arith.constant 0 : i32
    return %c0_i32, %c0_i32_0 : i32, i32
  }
  func.func @transform_23(%arg0: i32) -> (i32, i32) {
    %c0_i32 = arith.constant 0 : i32
    %c0_i32_0 = arith.constant 0 : i32
    %c0_i32_1 = arith.constant 0 : i32
    return %c0_i32, %c0_i32_0 : i32, i32
  }
  func.func @transform_24(%arg0: i32) -> (i32, i32) {
    %c0_i32 = arith.constant 0 : i32
    %c0_i32_0 = arith.constant 0 : i32
    %c0_i32_1 = arith.constant 0 : i32
    return %c0_i32, %c0_i32_0 : i32, i32
  }
  func.func @transform_25(%arg0: i32) -> (i32, i32, i32) {
    %c0_i32 = arith.constant 0 : i32
    %c0_i32_0 = arith.constant 0 : i32
    %c0_i32_1 = arith.constant 0 : i32
    %c0_i32_2 = arith.constant 0 : i32
    return %c0_i32, %c0_i32_0, %c0_i32_1 : i32, i32, i32
  }
}

</mosaic_0001>

<bundles_post_ra>
// kernel: _lambda_.1
= control target key start
LH: loop header
LB: loop body
LE: loop exit
PB: predicated region body
PF: predicated region fallthrough
CT: control target
= control target key end

     0   :  { %s3971_s0 = inlined_call_operand.vmem [shape: f32[8,256], index: 0, kind: input, shape index: {}]   ;;  %s3972_s1 = inlined_call_operand.hbm [shape: f32[8,40], index: 1, kind: input, shape index: {}]   ;;  %s3973_s2 = inlined_call_operand.hbm [shape: f32[8,1], index: 2, kind: input, shape index: {}]   ;;  %s3974_s3 = inlined_call_operand.hbm [shape: f32[8,40], index: 3, kind: input, shape index: {}]   ;;  %s3975_s4 = inlined_call_operand.hbm [shape: f32[8,1], index: 4, kind: input, shape index: {}]   ;;  %s3976_s5 = inlined_call_operand.vmem [shape: f32[8,8], index: 5, kind: input, shape index: {}]   ;;  %s3977_s6 = inlined_call_operand.hbm [shape: f32[8,1], index: 6, kind: input, shape index: {}]   ;;  %s3978_s7 = inlined_call_operand.vmem [shape: f32[8,40], index: 7, kind: input, shape index: {}]   ;;  %s3979_s8 = inlined_call_operand.hbm [shape: f32[8,1], index: 8, kind: input, shape index: {}]   ;;  %s3980_s9 = inlined_call_operand.vmem [shape: f32[8,40], index: 9, kind: input, shape index: {}]   ;;  %s3981_s10 = inlined_call_operand.hbm [shape: f32[8,1], index: 10, kind: input, shape index: {}]   ;;  %s3982_s11 = inlined_call_operand.vmem [shape: f32[8,8], index: 11, kind: input, shape index: {}]   ;;  %s3983_s12 = inlined_call_operand.vmem [shape: f32[8,1], index: 12, kind: input, shape index: {}]   ;;  %s3984_s13 = inlined_call_operand.vmem [shape: f32[8,40], index: 13, kind: input, shape index: {}]   ;;  %s3985_s14 = inlined_call_operand.hbm [shape: f32[8,1], index: 14, kind: input, shape index: {}]   ;;  %s3986_s15 = inlined_call_operand.vmem [shape: f32[8,40], index: 15, kind: input, shape index: {}]   ;;  %s3987_s16 = inlined_call_operand.hbm [shape: f32[8,1], index: 16, kind: input, shape index: {}]   ;;  %s3988_s17 = inlined_call_operand.vmem [shape: f32[8,8], index: 17, kind: input, shape index: {}]   ;;  %s3989_s18 = inlined_call_operand.hbm [shape: f32[8,1], index: 18, kind: input, shape index: {}]   ;;  %s3990_s19 = inlined_call_operand.vmem [shape: f32[8,40], index: 19, kind: input, shape index: {}]   ;;  %s3991_s20 = inlined_call_operand.hbm [shape: f32[8,1], index: 20, kind: input, shape index: {}]   ;;  %s3992_s21 = inlined_call_operand.vmem [shape: f32[8,40], index: 21, kind: input, shape index: {}]   ;;  %s3993_s22 = inlined_call_operand.hbm [shape: f32[8,1], index: 22, kind: input, shape index: {}]   ;;  %s3994_s23 = inlined_call_operand.hbm [shape: f32[4,8], index: 23, kind: input, shape index: {}]   ;;  %s3995_s24 = inlined_call_operand.hbm [shape: f32[4,1], index: 24, kind: input, shape index: {}]   ;;  %s3996_s25 = inlined_call_operand.hbm [shape: f32[2,4,128], index: 25, kind: output, shape index: {}]  }
   0x1   :  { %4011 = sst [smem:[#allocation36_spill]] %s3971_s0 }
   0x2   :  { %4012 = sst [smem:[#allocation37_spill]] %s3972_s1 }
   0x3   :  { %4013 = sst [smem:[#allocation38_spill]] %s3973_s2 }
   0x4   :  { %4014 = sst [smem:[#allocation39_spill]] %s3974_s3 }
   0x5   :  { %4015 = sst [smem:[#allocation40_spill]] %s3975_s4 }
   0x6   :  { %4016 = sst [smem:[#allocation41_spill]] %s3976_s5 }
   0x7   :  { %4017 = sst [smem:[#allocation42_spill]] %s3977_s6 }
   0x8   :  { %4018 = sst [smem:[#allocation43_spill]] %s3978_s7 }
   0x9   :  { %4019 = sst [smem:[#allocation44_spill]] %s3979_s8 }
   0xa   :  { %4020 = sst [smem:[#allocation45_spill]] %s3980_s9 }
   0xb   :  { %4021 = sst [smem:[#allocation46_spill]] %s3996_s25 }
   0xc   :  { %30 = vsyncpa [#allocation4], 0 }
   0xd   :  { %31 = vsyncpa [#allocation7], 0 }
   0xe   :  { %32 = vsyncpa [#allocation10], 0 }
   0xf   :  { %33 = vsyncpa [#allocation13], 0 }
  0x10   :  { %34 = vsyncpa [#allocation16], 0 }
  0x11   :  { %35 = vsyncpa [#allocation19], 0 }
  0x12   :  { %36 = vsyncpa [#allocation22], 0 }
  0x13   :  { %37 = vsyncpa [#allocation25], 0 }
  0x14   :  { %38 = vsyncpa [#allocation5], 0  ;;  %s3295_s29 = smov [#allocation6]   ;;  %s3296_s6 = smov [#allocation9]  }
  0x15   :  { %s57_s2 = sshll.u32 %s3295_s29, 4  ;;  %s77_s30 = sshll.u32 %s3296_s6, 4  ;;  %s58_s2 = int_to_ptr.vmem [resolvable:$true] %s57_s2  ;;  %s78_s30 = int_to_ptr.vmem [resolvable:$true] %s77_s30 }
  0x16   :  { %s4022_s26 = sld [smem:[#allocation38_spill]] }
  0x1c   :  { %s2947_s1 = scalar_lea.hbm %s4022_s26, 128 }
  0x1d   :  { %p2948_p0 = scmp.ne.s32.totalorder %s4022_s26, %s2947_s1  ;;  %p2951_p1 = scmp.lt.u32.totalorder %s2947_s1, %s4022_s26 }
  0x1f   :  { %p2953_p2 = pnand %p2951_p1, %p2948_p0 }
  0x21   :  { %2956 = shalt.err (!%p2953_p2)
}
  0x22   :  { %s2957_s9 = scalar_lea.vmem %s58_s2, 128  ;;  %p2962_p4 = scmp.lt.s32.totalorder %s58_s2, %s58_s2 }
  0x23   :  { %p2958_p3 = scmp.ne.s32.totalorder %s58_s2, %s2957_s9  ;;  %p2963_p5 = scmp.lt.s32.totalorder %s2957_s9, %s2957_s9 }
  0x25   :  { %p2964_p6 = por %p2963_p5, %p2962_p4 }
  0x27   :  { %p2965_p7 = pnand %p2964_p6, %p2958_p3 }
  0x29   :  { %2968 = shalt.err (!%p2965_p7)
}
  0x2a   :  { %60 = dma.hbm_to_vmem [thread:$0]  %s4022_s26, 128, %s58_s2, [#allocation7]  }
  0x2b   :  { %s4023_s7 = sld [smem:[#allocation40_spill]] }
  0x31   :  { %s2969_s3 = scalar_lea.hbm %s4023_s7, 128 }
  0x32   :  { %p2970_p8 = scmp.ne.s32.totalorder %s4023_s7, %s2969_s3  ;;  %p2973_p9 = scmp.lt.u32.totalorder %s2969_s3, %s4023_s7 }
  0x34   :  { %p2975_p10 = pnand %p2973_p9, %p2970_p8 }
  0x36   :  { %2978 = shalt.err (!%p2975_p10)
}
  0x37   :  { %s2979_s28 = scalar_lea.vmem %s78_s30, 128  ;;  %p2984_p12 = scmp.lt.s32.totalorder %s78_s30, %s78_s30 }
  0x38   :  { %p2980_p11 = scmp.ne.s32.totalorder %s78_s30, %s2979_s28  ;;  %p2985_p13 = scmp.lt.s32.totalorder %s2979_s28, %s2979_s28 }
  0x3a   :  { %p2986_p0 = por %p2985_p13, %p2984_p12 }
  0x3c   :  { %p2987_p1 = pnand %p2986_p0, %p2980_p11 }
  0x3e   :  { %2990 = shalt.err (!%p2987_p1)
}
  0x3f   :  { %80 = dma.hbm_to_vmem [thread:$0]  %s4023_s7, 128, %s78_s30, [#allocation10]  }
  0x40   :  { %s3297_s9 = smov [#allocation12]   ;;  %s3298_s0 = smov [#allocation15]  }
  0x41   :  { %s101_s5 = sshll.u32 %s3297_s9, 4  ;;  %s129_s29 = sshll.u32 %s3298_s0, 4  ;;  %s102_s5 = int_to_ptr.vmem [resolvable:$true] %s101_s5  ;;  %s130_s29 = int_to_ptr.vmem [resolvable:$true] %s129_s29 }
  0x42   :  { %s4024_s8 = sld [smem:[#allocation44_spill]] }
  0x48   :  { %s2991_s27 = scalar_lea.hbm %s4024_s8, 128 }
  0x49   :  { %p2992_p2 = scmp.ne.s32.totalorder %s4024_s8, %s2991_s27  ;;  %p2995_p3 = scmp.lt.u32.totalorder %s2991_s27, %s4024_s8 }
  0x4b   :  { %p2997_p4 = pnand %p2995_p3, %p2992_p2 }
  0x4d   :  { %3000 = shalt.err (!%p2997_p4)
}
  0x4e   :  { %s3001_s30 = scalar_lea.vmem %s102_s5, 128  ;;  %p3006_p6 = scmp.lt.s32.totalorder %s102_s5, %s102_s5 }
  0x4f   :  { %p3002_p5 = scmp.ne.s32.totalorder %s102_s5, %s3001_s30  ;;  %p3007_p7 = scmp.lt.s32.totalorder %s3001_s30, %s3001_s30 }
  0x51   :  { %p3008_p8 = por %p3007_p7, %p3006_p6 }
  0x53   :  { %p3009_p9 = pnand %p3008_p8, %p3002_p5 }
  0x55   :  { %3012 = shalt.err (!%p3009_p9)
}
  0x56   :  { %104 = dma.hbm_to_vmem [thread:$0]  %s4024_s8, 128, %s102_s5, [#allocation13]  }
  0x57   :  { %s3013_s0 = scalar_lea.hbm %s3985_s14, 128 }
  0x58   :  { %p3014_p10 = scmp.ne.s32.totalorder %s3985_s14, %s3013_s0  ;;  %p3017_p11 = scmp.lt.u32.totalorder %s3013_s0, %s3985_s14 }
  0x5a   :  { %p3019_p12 = pnand %p3017_p11, %p3014_p10 }
  0x5c   :  { %3022 = shalt.err (!%p3019_p12)
}
  0x5d   :  { %s3023_s1 = scalar_lea.vmem %s130_s29, 128  ;;  %p3028_p0 = scmp.lt.s32.totalorder %s130_s29, %s130_s29 }
  0x5e   :  { %p3024_p13 = scmp.ne.s32.totalorder %s130_s29, %s3023_s1  ;;  %p3029_p1 = scmp.lt.s32.totalorder %s3023_s1, %s3023_s1 }
  0x60   :  { %p3030_p2 = por %p3029_p1, %p3028_p0 }
  0x62   :  { %p3031_p3 = pnand %p3030_p2, %p3024_p13 }
  0x64   :  { %3034 = shalt.err (!%p3031_p3)
}
  0x65   :  { %132 = dma.hbm_to_vmem [thread:$0]  %s3985_s14, 128, %s130_s29, [#allocation16]  }
  0x66   :  { %s3299_s4 = smov [#allocation18]   ;;  %s3300_s30 = smov [#allocation21]  }
  0x67   :  { %s153_s28 = sshll.u32 %s3299_s4, 4  ;;  %s177_s7 = sshll.u32 %s3300_s30, 4  ;;  %s154_s28 = int_to_ptr.vmem [resolvable:$true] %s153_s28  ;;  %s178_s7 = int_to_ptr.vmem [resolvable:$true] %s177_s7 }
  0x68   :  { %s3035_s9 = scalar_lea.hbm %s3989_s18, 128 }
  0x69   :  { %p3036_p4 = scmp.ne.s32.totalorder %s3989_s18, %s3035_s9  ;;  %p3039_p5 = scmp.lt.u32.totalorder %s3035_s9, %s3989_s18 }
  0x6b   :  { %p3041_p6 = pnand %p3039_p5, %p3036_p4 }
  0x6d   :  { %3044 = shalt.err (!%p3041_p6)
}
  0x6e   :  { %s3045_s14 = scalar_lea.vmem %s154_s28, 128  ;;  %p3050_p8 = scmp.lt.s32.totalorder %s154_s28, %s154_s28 }
  0x6f   :  { %p3046_p7 = scmp.ne.s32.totalorder %s154_s28, %s3045_s14  ;;  %p3051_p9 = scmp.lt.s32.totalorder %s3045_s14, %s3045_s14 }
  0x71   :  { %p3052_p10 = por %p3051_p9, %p3050_p8 }
  0x73   :  { %p3053_p11 = pnand %p3052_p10, %p3046_p7 }
  0x75   :  { %3056 = shalt.err (!%p3053_p11)
}
  0x76   :  { %156 = dma.hbm_to_vmem [thread:$0]  %s3989_s18, 128, %s154_s28, [#allocation19]  }
  0x77   :  { %s3057_s8 = scalar_lea.hbm %s3993_s22, 128 }
  0x78   :  { %p3058_p12 = scmp.ne.s32.totalorder %s3993_s22, %s3057_s8  ;;  %p3061_p13 = scmp.lt.u32.totalorder %s3057_s8, %s3993_s22 }
  0x7a   :  { %p3063_p0 = pnand %p3061_p13, %p3058_p12 }
  0x7c   :  { %3066 = shalt.err (!%p3063_p0)
}
  0x7d   :  { %s3067_s9 = scalar_lea.vmem %s178_s7, 128  ;;  %p3072_p2 = scmp.lt.s32.totalorder %s178_s7, %s178_s7 }
  0x7e   :  { %p3068_p1 = scmp.ne.s32.totalorder %s178_s7, %s3067_s9  ;;  %p3073_p3 = scmp.lt.s32.totalorder %s3067_s9, %s3067_s9 }
  0x80   :  { %p3074_p4 = por %p3073_p3, %p3072_p2 }
  0x82   :  { %p3075_p5 = pnand %p3074_p4, %p3068_p1 }
  0x84   :  { %3078 = shalt.err (!%p3075_p5)
}
  0x85   :  { %180 = dma.hbm_to_vmem [thread:$0]  %s3993_s22, 128, %s178_s7, [#allocation22]  }
  0x86   :  { %s3301_s0 = smov [#allocation3]   ;;  %s3302_s25 = smov [#allocation8]  }
  0x87   :  { %s47_s6 = sshll.u32 %s3301_s0, 4  ;;  %s67_s3 = sshll.u32 %s3302_s25, 4  ;;  %s48_s6 = int_to_ptr.vmem [resolvable:$true] %s47_s6  ;;  %s68_s3 = int_to_ptr.vmem [resolvable:$true] %s67_s3 }
  0x88   :  { %s4025_s27 = sld [smem:[#allocation37_spill]] }
  0x8e   :  { %s3079_s1 = scalar_lea.hbm %s4025_s27, 128 }
  0x8f   :  { %p3080_p6 = scmp.ne.s32.totalorder %s4025_s27, %s3079_s1  ;;  %p3083_p7 = scmp.lt.u32.totalorder %s3079_s1, %s4025_s27 }
  0x91   :  { %p3085_p8 = pnand %p3083_p7, %p3080_p6 }
  0x93   :  { %3088 = shalt.err (!%p3085_p8)
}
  0x94   :  { %s3089_s22 = scalar_lea.vmem %s48_s6, 128  ;;  %p3094_p10 = scmp.lt.s32.totalorder %s48_s6, %s48_s6 }
  0x95   :  { %p3090_p9 = scmp.ne.s32.totalorder %s48_s6, %s3089_s22  ;;  %p3095_p11 = scmp.lt.s32.totalorder %s3089_s22, %s3089_s22 }
  0x97   :  { %p3096_p12 = por %p3095_p11, %p3094_p10 }
  0x99   :  { %p3097_p13 = pnand %p3096_p12, %p3090_p9 }
  0x9b   :  { %3100 = shalt.err (!%p3097_p13)
}
  0x9c   :  { %50 = dma.hbm_to_vmem [thread:$0]  %s4025_s27, 128, %s48_s6, [#allocation4]  }
  0x9d   :  { %s4026_s18 = sld [smem:[#allocation39_spill]] }
  0xa3   :  { %s3101_s28 = scalar_lea.hbm %s4026_s18, 128 }
  0xa4   :  { %p3102_p0 = scmp.ne.s32.totalorder %s4026_s18, %s3101_s28  ;;  %p3105_p1 = scmp.lt.u32.totalorder %s3101_s28, %s4026_s18 }
  0xa6   :  { %p3107_p2 = pnand %p3105_p1, %p3102_p0 }
  0xa8   :  { %3110 = shalt.err (!%p3107_p2)
}
  0xa9   :  { %s3111_s1 = scalar_lea.vmem %s68_s3, 128  ;;  %p3116_p4 = scmp.lt.s32.totalorder %s68_s3, %s68_s3 }
  0xaa   :  { %p3112_p3 = scmp.ne.s32.totalorder %s68_s3, %s3111_s1  ;;  %p3117_p5 = scmp.lt.s32.totalorder %s3111_s1, %s3111_s1 }
  0xac   :  { %p3118_p6 = por %p3117_p5, %p3116_p4 }
  0xae   :  { %p3119_p7 = pnand %p3118_p6, %p3112_p3 }
  0xb0   :  { %3122 = shalt.err (!%p3119_p7)
}
  0xb1   :  { %70 = dma.hbm_to_vmem [thread:$0]  %s4026_s18, 128, %s68_s3, [#allocation7]  }
  0xb2   :  { %s3303_s5 = smov [#allocation11]   ;;  %s3304_s4 = smov [#allocation14]  }
  0xb3   :  { %s89_s8 = sshll.u32 %s3303_s5, 4  ;;  %s113_s30 = sshll.u32 %s3304_s4, 4  ;;  %s90_s8 = int_to_ptr.vmem [resolvable:$true] %s89_s8  ;;  %s114_s30 = int_to_ptr.vmem [resolvable:$true] %s113_s30 }
  0xb4   :  { %s4027_s2 = sld [smem:[#allocation42_spill]] }
  0xba   :  { %s3123_s26 = scalar_lea.hbm %s4027_s2, 128 }
  0xbb   :  { %p3124_p8 = scmp.ne.s32.totalorder %s4027_s2, %s3123_s26  ;;  %p3127_p9 = scmp.lt.u32.totalorder %s3123_s26, %s4027_s2 }
  0xbd   :  { %p3129_p10 = pnand %p3127_p9, %p3124_p8 }
  0xbf   :  { %3132 = shalt.err (!%p3129_p10)
}
  0xc0   :  { %s3133_s3 = scalar_lea.vmem %s90_s8, 128  ;;  %p3138_p12 = scmp.lt.s32.totalorder %s90_s8, %s90_s8 }
  0xc1   :  { %p3134_p11 = scmp.ne.s32.totalorder %s90_s8, %s3133_s3  ;;  %p3139_p13 = scmp.lt.s32.totalorder %s3133_s3, %s3133_s3 }
  0xc3   :  { %p3140_p0 = por %p3139_p13, %p3138_p12 }
  0xc5   :  { %p3141_p1 = pnand %p3140_p0, %p3134_p11 }
  0xc7   :  { %3144 = shalt.err (!%p3141_p1)
}
  0xc8   :  { %92 = dma.hbm_to_vmem [thread:$0]  %s4027_s2, 128, %s90_s8, [#allocation10]  }
  0xc9   :  { %s3145_s6 = scalar_lea.hbm %s3981_s10, 128 }
  0xca   :  { %p3146_p2 = scmp.ne.s32.totalorder %s3981_s10, %s3145_s6  ;;  %p3149_p3 = scmp.lt.u32.totalorder %s3145_s6, %s3981_s10 }
  0xcc   :  { %p3151_p4 = pnand %p3149_p3, %p3146_p2 }
  0xce   :  { %3154 = shalt.err (!%p3151_p4)
}
  0xcf   :  { %s3155_s7 = scalar_lea.vmem %s114_s30, 128  ;;  %p3160_p6 = scmp.lt.s32.totalorder %s114_s30, %s114_s30 }
  0xd0   :  { %p3156_p5 = scmp.ne.s32.totalorder %s114_s30, %s3155_s7  ;;  %p3161_p7 = scmp.lt.s32.totalorder %s3155_s7, %s3155_s7 }
  0xd2   :  { %p3162_p8 = por %p3161_p7, %p3160_p6 }
  0xd4   :  { %p3163_p9 = pnand %p3162_p8, %p3156_p5 }
  0xd6   :  { %3166 = shalt.err (!%p3163_p9)
}
  0xd7   :  { %116 = dma.hbm_to_vmem [thread:$0]  %s3981_s10, 128, %s114_s30, [#allocation13]  }
  0xd8   :  { %s3305_s26 = smov [#allocation17]   ;;  %s3306_s28 = smov [#allocation20]  }
  0xd9   :  { %s141_s9 = sshll.u32 %s3305_s26, 4  ;;  %s165_s0 = sshll.u32 %s3306_s28, 4  ;;  %s142_s9 = int_to_ptr.vmem [resolvable:$true] %s141_s9  ;;  %s166_s0 = int_to_ptr.vmem [resolvable:$true] %s165_s0 }
  0xda   :  { %s3167_s18 = scalar_lea.hbm %s3987_s16, 128 }
  0xdb   :  { %p3168_p10 = scmp.ne.s32.totalorder %s3987_s16, %s3167_s18  ;;  %p3171_p11 = scmp.lt.u32.totalorder %s3167_s18, %s3987_s16 }
  0xdd   :  { %p3173_p12 = pnand %p3171_p11, %p3168_p10 }
  0xdf   :  { %3176 = shalt.err (!%p3173_p12)
}
  0xe0   :  { %s3177_s10 = scalar_lea.vmem %s142_s9, 128  ;;  %p3182_p0 = scmp.lt.s32.totalorder %s142_s9, %s142_s9 }
  0xe1   :  { %p3178_p13 = scmp.ne.s32.totalorder %s142_s9, %s3177_s10  ;;  %p3183_p1 = scmp.lt.s32.totalorder %s3177_s10, %s3177_s10 }
  0xe3   :  { %p3184_p2 = por %p3183_p1, %p3182_p0 }
  0xe5   :  { %p3185_p3 = pnand %p3184_p2, %p3178_p13 }
  0xe7   :  { %3188 = shalt.err (!%p3185_p3)
}
  0xe8   :  { %144 = dma.hbm_to_vmem [thread:$0]  %s3987_s16, 128, %s142_s9, [#allocation16]  }
  0xe9   :  { %s3189_s22 = scalar_lea.hbm %s3991_s20, 128 }
  0xea   :  { %p3190_p4 = scmp.ne.s32.totalorder %s3991_s20, %s3189_s22  ;;  %p3193_p5 = scmp.lt.u32.totalorder %s3189_s22, %s3991_s20 }
  0xec   :  { %p3195_p6 = pnand %p3193_p5, %p3190_p4 }
  0xee   :  { %3198 = shalt.err (!%p3195_p6)
}
  0xef   :  { %s3199_s28 = scalar_lea.vmem %s166_s0, 128  ;;  %p3204_p8 = scmp.lt.s32.totalorder %s166_s0, %s166_s0 }
  0xf0   :  { %p3200_p7 = scmp.ne.s32.totalorder %s166_s0, %s3199_s28  ;;  %p3205_p9 = scmp.lt.s32.totalorder %s3199_s28, %s3199_s28 }
  0xf2   :  { %p3206_p10 = por %p3205_p9, %p3204_p8 }
  0xf4   :  { %p3207_p11 = pnand %p3206_p10, %p3200_p7 }
  0xf6   :  { %3210 = shalt.err (!%p3207_p11)
}
  0xf7   :  { %168 = dma.hbm_to_vmem [thread:$0]  %s3991_s20, 128, %s166_s0, [#allocation19]  }
  0xf8   :  { %s3307_s25 = smov [#allocation23]   ;;  %s3308_s18 = smov [#allocation24]  }
  0xf9   :  { %s187_s3 = sshll.u32 %s3307_s25, 4  ;;  %s197_s14 = sshll.u32 %s3308_s18, 4  ;;  %s188_s3 = int_to_ptr.vmem [resolvable:$true] %s187_s3  ;;  %s198_s14 = int_to_ptr.vmem [resolvable:$true] %s197_s14 }
  0xfa   :  { %s3211_s6 = scalar_lea.hbm %s3994_s23, 64 }
  0xfb   :  { %p3212_p12 = scmp.ne.s32.totalorder %s3994_s23, %s3211_s6  ;;  %p3215_p13 = scmp.lt.u32.totalorder %s3211_s6, %s3994_s23 }
  0xfd   :  { %p3217_p0 = pnand %p3215_p13, %p3212_p12 }
  0xff   :  { %3220 = shalt.err (!%p3217_p0)
}
 0x100   :  { %s3221_s20 = scalar_lea.vmem %s188_s3, 64  ;;  %p3226_p2 = scmp.lt.s32.totalorder %s188_s3, %s188_s3 }
 0x101   :  { %p3222_p1 = scmp.ne.s32.totalorder %s188_s3, %s3221_s20  ;;  %p3227_p3 = scmp.lt.s32.totalorder %s3221_s20, %s3221_s20 }
 0x103   :  { %p3228_p4 = por %p3227_p3, %p3226_p2 }
 0x105   :  { %p3229_p5 = pnand %p3228_p4, %p3222_p1 }
 0x107   :  { %3232 = shalt.err (!%p3229_p5)
}
 0x108   :  { %190 = dma.hbm_to_vmem [thread:$0]  %s3994_s23, 64, %s188_s3, [#allocation22]  }
 0x109   :  { %s3233_s8 = scalar_lea.hbm %s3995_s24, 64 }
 0x10a   :  { %p3234_p6 = scmp.ne.s32.totalorder %s3995_s24, %s3233_s8  ;;  %p3237_p7 = scmp.lt.u32.totalorder %s3233_s8, %s3995_s24 }
 0x10c   :  { %p3239_p8 = pnand %p3237_p7, %p3234_p6 }
 0x10e   :  { %3242 = shalt.err (!%p3239_p8)
}
 0x10f   :  { %s3243_s9 = scalar_lea.vmem %s198_s14, 64  ;;  %p3248_p10 = scmp.lt.s32.totalorder %s198_s14, %s198_s14 }
 0x110   :  { %p3244_p9 = scmp.ne.s32.totalorder %s198_s14, %s3243_s9  ;;  %p3249_p11 = scmp.lt.s32.totalorder %s3243_s9, %s3243_s9 }
 0x112   :  { %p3250_p12 = por %p3249_p11, %p3248_p10 }
 0x114   :  { %p3251_p13 = pnand %p3250_p12, %p3244_p9 }
 0x116   :  { %3254 = shalt.err (!%p3251_p13)
}
 0x117   :  { %200 = dma.hbm_to_vmem [thread:$0]  %s3995_s24, 64, %s198_s14, [#allocation25]  }
 0x118   :  { %3277 = dma.done.wait [#allocation4], 128  }
 0x119   :  { %3278 = vsyncadd [#allocation4], 4294967168 }
 0x11a   :  { %3279 = dma.done.wait [#allocation7], 256  }
 0x11b   :  { %3280 = vsyncadd [#allocation7], 4294967040 }
 0x11c   :  { %3281 = dma.done.wait [#allocation10], 256  }
 0x11d   :  { %3282 = vsyncadd [#allocation10], 4294967040 }
 0x11e   :  { %3283 = dma.done.wait [#allocation13], 256  }
 0x11f   :  { %3284 = vsyncadd [#allocation13], 4294967040 }
 0x120   :  { %3285 = dma.done.wait [#allocation16], 256  }
 0x121   :  { %3286 = vsyncadd [#allocation16], 4294967040 }
 0x122   :  { %3287 = dma.done.wait [#allocation19], 256  }
 0x123   :  { %3288 = vsyncadd [#allocation19], 4294967040 }
 0x124   :  { %3289 = dma.done.wait [#allocation22], 192  }
 0x125   :  { %3290 = vsyncadd [#allocation22], 4294967104 }
 0x126   :  { %3291 = dma.done.wait [#allocation25], 64  }
 0x127   :  { %3292 = vsyncadd [#allocation25], 4294967232  ;;  %v3309_v0 = vmov 0.0   ;;  %s4028_s18 = sld [smem:[#allocation36_spill]]  ;;  %s3310_s1 = smov 2   ;;  %v3314_v3 = vmov 0  }
 0x128   :  { %246 = vst [vmem:[#allocation2 + $0x8] sm:$0xff] %v3309_v0  ;;  %245 = vst [vmem:[#allocation2] sm:$0xff] %v3309_v0  ;;  %380 = vmatprep.mubr.f32.mxu0 %v3309_v0  ;;  %519 = vmatprep.mubr.f32.mxu1 %v3309_v0  ;;  %s3311_s6 = smov 1   ;;  %s3312_s10 = smov 127   ;;  %v306_v4 = vld [vmem:[#allocation6] sm:$0xff]  ;;  %vm4010_vm0 = vcmask 1047568  }
 0x129   :  { %247 = vst [vmem:[#allocation2 + $0x10] sm:$0xff] %v3309_v0  ;;  %248 = vst [vmem:[#allocation2 + $0x18] sm:$0xff] %v3309_v0  ;;  %s3313_s30 = smov 126   ;;  %2945 = vset.pattern.permute.xlu0 %v3314_v3  ;;  %2946 = vset.pattern.permute.xlu1 %v3314_v3  ;;  %vm4006_vm1 = vcmask 1047560   ;;  %vm4005_vm2 = vcmask 1039360   ;;  %vm4009_vm3 = vcmask 1031168  }
 0x12a   :  { %251 = vst [vmem:[#allocation2 + $0x30] sm:$0xff] %v3309_v0  ;;  %252 = vst [vmem:[#allocation2 + $0x38] sm:$0xff] %v3309_v0  ;;  %v295_v25 = vld [vmem:[#allocation3] sm:$0xff]  ;;  %vm4007_vm4 = vcmask 326656   ;;  %v446_v33 = vld [vmem:[#allocation9] sm:$0xff]  ;;  %s4029_s20 = sld [smem:[#allocation41_spill]] }
 0x12b   :  { %253 = vst [vmem:[#allocation2 + $0x40] sm:$0xff] %v3309_v0  ;;  %254 = vst [vmem:[#allocation2 + $0x48] sm:$0xff] %v3309_v0  ;;  %vm535_vm5 = vcmask 64512   ;;  %v529_v35 = vld [vmem:[#allocation11] sm:$0xff]  ;;  %v435_v56 = vld [vmem:[#allocation8] sm:$0xff]  ;;  %s3315_s0 = smov 4  }
 0x12c   :  { %s3316_s4 = smov 124   ;;  %vm628_vm6 = vcmask 1047584   ;;  %vm4008_vm7 = vcmask 1014784   ;;  %s4030_s8 = sld [smem:[#allocation43_spill]] }
 0x12d   :  { %v3632_v1 = vld [vmem:[%s4028_s18 + $0x8] sm:$0xff]  ;;  %v3637_v2 = vld [vmem:[%s4028_s18] sm:$0xff]  ;;  %s4031_s16 = sld [smem:[#allocation45_spill]] }
 0x12e   :  { %262 = vrot.lane.b32.xlu0 %v3632_v1, %s3310_s1  ;;  %256 = vrot.lane.b32.xlu1 %v3637_v2, %s3310_s1 }
 0x130   :  { %v528_v34 = vld [vmem:[%s4029_s20] sm:$0xff] }
 0x132   :  { %271 = vrot.lane.b32.xlu0 %v3632_v1, %s3311_s6  ;;  %266 = vrot.lane.b32.xlu1 %v3637_v2, %s3311_s6 }
 0x136   :  { %282 = vrot.lane.b32.xlu0 %v3632_v1, %s3312_s10  ;;  %277 = vrot.lane.b32.xlu1 %v3637_v2, %s3312_s10 }
 0x13a   :  { %291 = vrot.lane.b32.xlu0 %v3632_v1, %s3313_s30  ;;  %286 = vrot.lane.b32.xlu1 %v3637_v2, %s3313_s30 }
 0x13e   :  { %309 = vperm.xlu0 %2945, %v306_v4  }
 0x1a0   :  { %v263_v5 = vpop.permute.xlu0 %262  ;;  %v257_v6 = vpop.permute.xlu1 %256 }
 0x1a1   :  { %265 = vst.msk [vmem:[#allocation2 + $0x8] sm:$0xff] %vm4010_vm0, %v263_v5  ;;  %260 = vst.msk [vmem:[#allocation2] sm:$0xff] %vm4010_vm0, %v257_v6 }
 0x1a4   :  { %v272_v7 = vpop.permute.xlu0 %271  ;;  %v267_v8 = vpop.permute.xlu1 %266 }
 0x1a5   :  { %274 = vst.msk [vmem:[#allocation2 + $0x18] sm:$0xff] %vm4006_vm1, %v272_v7  ;;  %270 = vst.msk [vmem:[#allocation2 + $0x10] sm:$0xff] %vm4006_vm1, %v267_v8 }
 0x1a8   :  { %v283_v9 = vpop.permute.xlu0 %282  ;;  %v278_v10 = vpop.permute.xlu1 %277  ;;  %v297_v11 = vld [vmem:[#allocation2 + $0x8] sm:$0xff]  ;;  %v296_v12 = vld [vmem:[#allocation2] sm:$0xff] }
 0x1a9   :  { %285 = vst.msk [vmem:[#allocation2 + $0x38] sm:$0xff] %vm4005_vm2, %v283_v9  ;;  %281 = vst.msk [vmem:[#allocation2 + $0x30] sm:$0xff] %vm4005_vm2, %v278_v10  ;;  %v673_v10 = vld [vmem:[#allocation12] sm:$0xff] }
 0x1aa   :  { %390 = vst [vmem:[#allocation2 + $0x8] sm:$0xff] %v3309_v0  ;;  %389 = vst [vmem:[#allocation2] sm:$0xff] %v3309_v0 }
 0x1ac   :  { %v292_v13 = vpop.permute.xlu0 %291  ;;  %v299_v14 = vld [vmem:[#allocation2 + $0x18] sm:$0xff]  ;;  %v287_v15 = vpop.permute.xlu1 %286  ;;  %v298_v16 = vld [vmem:[#allocation2 + $0x10] sm:$0xff] }
 0x1ad   :  { %294 = vst.msk [vmem:[#allocation2 + $0x48] sm:$0xff] %vm4009_vm3, %v292_v13  ;;  %v2807_v17 = vpack.c.bf16 %v299_v14, %v297_v11  ;;  %392 = vst [vmem:[#allocation2 + $0x18] sm:$0xff] %v3309_v0  ;;  %v2809_v18 = vpack.c.bf16 %v298_v16, %v296_v12 }
 0x1ae   :  { %290 = vst.msk [vmem:[#allocation2 + $0x40] sm:$0xff] %vm4009_vm3, %v287_v15  ;;  %391 = vst [vmem:[#allocation2 + $0x10] sm:$0xff] %v3309_v0 }
 0x1af   :  { %2808 = vmatprep.subr.bf16.mxu0 %v2807_v17 }
 0x1b0   :  { %2810 = vmatpush1.bf16.msra.mxu0 %v2809_v18  ;;  %v303_v19 = vld [vmem:[#allocation2 + $0x38] sm:$0xff]  ;;  %v302_v20 = vld [vmem:[#allocation2 + $0x30] sm:$0xff] }
 0x1b1   :  { %v2811_v21 = vpack.c.bf16 %v303_v19, %v3632_v1  ;;  %396 = vst [vmem:[#allocation2 + $0x38] sm:$0xff] %v3309_v0  ;;  %v2813_v22 = vpack.c.bf16 %v302_v20, %v3637_v2  ;;  %395 = vst [vmem:[#allocation2 + $0x30] sm:$0xff] %v3309_v0 }
 0x1b3   :  { %2812 = vmatprep.subr.bf16.mxu0 %v2811_v21 }
 0x1b4   :  { %2814 = vmatpush1.bf16.msra.mxu0 %v2813_v22  ;;  %v305_v23 = vld [vmem:[#allocation2 + $0x48] sm:$0xff] }
 0x1b5   :  { %v304_v24 = vld [vmem:[#allocation2 + $0x40] sm:$0xff]  ;;  %324 = vmatprep.subr.mxu0 %v305_v23  ;;  %398 = vst [vmem:[#allocation2 + $0x48] sm:$0xff] %v3309_v0 }
 0x1b6   :  { %397 = vst [vmem:[#allocation2 + $0x40] sm:$0xff] %v3309_v0 }
 0x1b8   :  { %325 = vmatpush1.msra.mxu0 %v304_v24 }
 0x1b9   :  { %2691 = vmatmul.mubr.msk.f32.vlgmr.msra.gmra.mrb[0].mxu0 %vm4007_vm4, %v295_v25  ;;  %539 = vmatprep.subr.mxu0 %v3632_v1 }
 0x1ba   :  { %540 = vmatpush1.msra.mxu0 %v3637_v2  ;;  %603 = vmatprep.mubr.f32.mxu0 %v3309_v0 }
 0x1bd   :  { %v310_v26 = vpop.permute.xlu0 %309  ;;  %2693 = vmatmul.mubr.msk.f32.vlgmr.msra.gmra.mrb[2].mxu0 %vm535_vm5, %v528_v34 }
 0x1be   :  { %885 = vmatprep.mubr.f32.mxu0 %v3309_v0 }
 0x28c   :  { %v382_v27 = vpop.f32.mrb[0].mxu0 }
 0x28d   :  { %v383_v28 = vadd.f32 %v382_v27, %v310_v26  ;;  %v384_v29 = vpop.f32.mrb[1].mxu0 }
 0x28e   :  { %v385_v30 = vadd.f32 %v384_v29, %v310_v26 }
 0x28f   :  { %v387_v31 = vmax.f32 %v383_v28, 0.0 }
 0x290   :  { %v388_v32 = vmax.f32 %v385_v30, 0.0  ;;  %v605_v57 = vpop.f32.mrb[2].mxu0 }
 0x291   :  { %400 = vrot.lane.b32.xlu0 %v387_v31, %s3310_s1  ;;  %v607_v58 = vpop.f32.mrb[3].mxu0 }
 0x292   :  { %405 = vrot.lane.b32.xlu1 %v388_v32, %s3310_s1 }
 0x295   :  { %423 = vrot.lane.b32.xlu0 %v388_v32, %s3312_s10 }
 0x296   :  { %413 = vrot.lane.b32.xlu1 %v388_v32, %s3311_s6 }
 0x299   :  { %431 = vrot.lane.b32.xlu0 %v388_v32, %s3313_s30 }
 0x29a   :  { %409 = vrot.lane.b32.xlu1 %v387_v31, %s3311_s6 }
 0x29d   :  { %449 = vperm.xlu0 %2945, %v446_v33  }
 0x29e   :  { %419 = vrot.lane.b32.xlu1 %v387_v31, %s3312_s10 }
 0x2a2   :  { %427 = vrot.lane.b32.xlu1 %v387_v31, %s3313_s30 }
 0x2a6   :  { %532 = vperm.xlu1 %2946, %v529_v35  }
 0x303   :  { %v401_v36 = vpop.permute.xlu0 %400 }
 0x304   :  { %403 = vst.msk [vmem:[#allocation2] sm:$0xff] %vm4010_vm0, %v401_v36  ;;  %v406_v37 = vpop.permute.xlu1 %405 }
 0x305   :  { %408 = vst.msk [vmem:[#allocation2 + $0x8] sm:$0xff] %vm4010_vm0, %v406_v37 }
 0x307   :  { %v424_v38 = vpop.permute.xlu0 %423 }
 0x308   :  { %426 = vst.msk [vmem:[#allocation2 + $0x38] sm:$0xff] %vm4005_vm2, %v424_v38  ;;  %v414_v39 = vpop.permute.xlu1 %413 }
 0x309   :  { %416 = vst.msk [vmem:[#allocation2 + $0x18] sm:$0xff] %vm4006_vm1, %v414_v39  ;;  %v812_v39 = vld [vmem:[#allocation14] sm:$0xff] }
 0x30b   :  { %v432_v40 = vpop.permute.xlu0 %431  ;;  %v436_v41 = vld [vmem:[#allocation2] sm:$0xff] }
 0x30c   :  { %434 = vst.msk [vmem:[#allocation2 + $0x48] sm:$0xff] %vm4009_vm3, %v432_v40  ;;  %v410_v42 = vpop.permute.xlu1 %409  ;;  %v437_v43 = vld [vmem:[#allocation2 + $0x8] sm:$0xff]  ;;  %614 = vst [vmem:[#allocation2] sm:$0xff] %v3309_v0  ;;  %v899_v40 = vld [vmem:[%s3983_s12] sm:$0xff] }
 0x30d   :  { %412 = vst.msk [vmem:[#allocation2 + $0x10] sm:$0xff] %vm4006_vm1, %v410_v42  ;;  %615 = vst [vmem:[#allocation2 + $0x8] sm:$0xff] %v3309_v0 }
 0x30f   :  { %v443_v44 = vld [vmem:[#allocation2 + $0x38] sm:$0xff] }
 0x310   :  { %v420_v45 = vpop.permute.xlu1 %419  ;;  %v439_v46 = vld [vmem:[#allocation2 + $0x18] sm:$0xff]  ;;  %621 = vst [vmem:[#allocation2 + $0x38] sm:$0xff] %v3309_v0  ;;  %v2819_v52 = vpack.c.bf16 %v443_v44, %v388_v32 }
 0x311   :  { %422 = vst.msk [vmem:[#allocation2 + $0x30] sm:$0xff] %vm4005_vm2, %v420_v45  ;;  %v2815_v47 = vpack.c.bf16 %v439_v46, %v437_v43  ;;  %617 = vst [vmem:[#allocation2 + $0x18] sm:$0xff] %v3309_v0 }
 0x313   :  { %2816 = vmatprep.subr.bf16.mxu1 %v2815_v47  ;;  %v445_v48 = vld [vmem:[#allocation2 + $0x48] sm:$0xff] }
 0x314   :  { %v428_v49 = vpop.permute.xlu1 %427  ;;  %v438_v50 = vld [vmem:[#allocation2 + $0x10] sm:$0xff]  ;;  %623 = vst [vmem:[#allocation2 + $0x48] sm:$0xff] %v3309_v0 }
 0x315   :  { %430 = vst.msk [vmem:[#allocation2 + $0x40] sm:$0xff] %vm4009_vm3, %v428_v49  ;;  %v2817_v51 = vpack.c.bf16 %v438_v50, %v436_v41  ;;  %616 = vst [vmem:[#allocation2 + $0x10] sm:$0xff] %v3309_v0 }
 0x317   :  { %2818 = vmatpush1.bf16.msra.mxu1 %v2817_v51 }
 0x318   :  { %2820 = vmatprep.subr.bf16.mxu1 %v2819_v52  ;;  %v442_v53 = vld [vmem:[#allocation2 + $0x30] sm:$0xff] }
 0x319   :  { %v2821_v54 = vpack.c.bf16 %v442_v53, %v387_v31  ;;  %620 = vst [vmem:[#allocation2 + $0x30] sm:$0xff] %v3309_v0  ;;  %v662_v31 = vld [vmem:[%s4030_s8] sm:$0xff] }
 0x31b   :  { %2822 = vmatpush1.bf16.msra.mxu1 %v2821_v54 }
 0x31c   :  { %463 = vmatprep.subr.mxu1 %v445_v48  ;;  %v444_v55 = vld [vmem:[#allocation2 + $0x40] sm:$0xff]  ;;  %v450_v60 = vpop.permute.xlu0 %449 }
 0x31d   :  { %622 = vst [vmem:[#allocation2 + $0x40] sm:$0xff] %v3309_v0 }
 0x31f   :  { %464 = vmatpush1.msra.mxu1 %v444_v55 }
 0x320   :  { %2692 = vmatmul.mubr.msk.f32.vlgmr.msra.gmra.mrb[0].mxu1 %vm4007_vm4, %v435_v56 }
 0x321   :  { %746 = vmatprep.mubr.f32.mxu1 %v3309_v0 }
 0x325   :  { %v533_v59 = vpop.permute.xlu1 %532 }
 0x326   :  { %v606_v1 = vadd.f32 %v605_v57, %v533_v59  ;;  %v608_v3 = vadd.f32 %v607_v58, %v533_v59 }
 0x3f3   :  { %v521_v61 = vpop.f32.mrb[0].mxu1 }
 0x3f4   :  { %v522_v62 = vadd.f32 %v521_v61, %v450_v60  ;;  %v523_v63 = vpop.f32.mrb[1].mxu1  ;;  %v801_v61 = vld [vmem:[%s4031_s16] sm:$0xff] }
 0x3f5   :  { %v524_v2 = vadd.f32 %v523_v63, %v450_v60  ;;  %v3317_v63 = vmov 0.0|0.0  }
 0x3f6   :  { %v526_v4 = vmax.f32 %v522_v62, 0.0  ;;  %v996_v62 = vlaneseq }
 0x3f7   :  { %v527_v5 = vmax.f32 %v524_v2, 0.0 }
 0x3f8   :  { %v610_v6 = vadd.f32 %v606_v1, %v526_v4  ;;  %v997_v1 = vand.u32 127, %v996_v62 }
 0x3f9   :  { %v611_v7 = vadd.f32 %v608_v3, %v527_v5 }
 0x3fa   :  { %v3708_v8 = vmax.f32 %v610_v6, 0.0  ;;  %vm1063_vm8 = vcmp.lt.s32.totalorder %v997_v1, 16  ;;  %vm1162_vm9 = vcmp.ge.s32.totalorder %v997_v1, 16  ;;  %vm1163_vm10 = vcmp.lt.s32.totalorder %v997_v1, 32 }
 0x3fb   :  { %v3710_v9 = vmax.f32 %v611_v7, 0.0  ;;  %vm1262_vm11 = vcmp.ge.s32.totalorder %v997_v1, 32  ;;  %v1065_v2 = vsel %vm1063_vm8, 1.0, %v3309_v0  ;;  %vm1164_vm12 = vmand %vm1162_vm9, %vm1163_vm10  ;;  %vm1263_vm13 = vcmp.lt.s32.totalorder %v997_v1, 48 }
 0x3fc   :  { %625 = vrot.lane.b32.xlu0 %v3708_v8, %s3315_s0  ;;  %vm1362_vm14 = vcmp.ge.s32.totalorder %v997_v1, 48  ;;  %vm1363_vm15 = vcmp.lt.s32.totalorder %v997_v1, 64  ;;  %v1066_v3 = vmul.f32 0.0625, %v1065_v2  ;;  %v1165_v4 = vsel %vm1164_vm12, 1.0, %v3309_v0  ;;  %vm1264_vm2 = vmand %vm1262_vm11, %vm1263_vm13 }
 0x3fd   :  { %639 = vrot.lane.b32.xlu1 %v3710_v9, %s3310_s1  ;;  %vm1462_vm1 = vcmp.ge.s32.totalorder %v997_v1, 64  ;;  %v1166_v5 = vmul.f32 0.0, %v1165_v4  ;;  %v1265_v6 = vsel %vm1264_vm2, 1.0, %v3309_v0  ;;  %vm1662_vm9 = vcmp.ge.s32.totalorder %v997_v1, 96 }
 0x3fe   :  { %v1266_v7 = vmul.f32 0.0, %v1265_v6  ;;  %vm1663_vm10 = vcmp.lt.s32.totalorder %v997_v1, 112  ;;  %vm1762_vm2 = vcmp.ge.s32.totalorder %v997_v1, 112  ;;  %vm4036_vm13 = vcmask 1014784  }
 0x3ff   :  { %vm1664_vm11 = vmand %vm1662_vm9, %vm1663_vm10 }
 0x400   :  { %631 = vrot.lane.b32.xlu0 %v3710_v9, %s3315_s0 }
 0x401   :  { %635 = vrot.lane.b32.xlu1 %v3708_v8, %s3310_s1 }
 0x404   :  { %649 = vrot.lane.b32.xlu0 %v3710_v9, %s3313_s30 }
 0x405   :  { %645 = vrot.lane.b32.xlu1 %v3708_v8, %s3313_s30 }
 0x408   :  { %658 = vrot.lane.b32.xlu0 %v3710_v9, %s3316_s4 }
 0x409   :  { %653 = vrot.lane.b32.xlu1 %v3708_v8, %s3316_s4 }
 0x40c   :  { %676 = vperm.xlu0 %2945, %v673_v10  }
 0x46e   :  { %v626_v11 = vpop.permute.xlu0 %625 }
 0x46f   :  { %629 = vst.msk [vmem:[#allocation2] sm:$0xff] %vm628_vm6, %v626_v11  ;;  %v640_v12 = vpop.permute.xlu1 %639  ;;  %v1182_v11 = vadd.f32 %v1166_v5, %v1066_v3 }
 0x470   :  { %642 = vst.msk [vmem:[#allocation2 + $0x18] sm:$0xff] %vm4010_vm0, %v640_v12 }
 0x472   :  { %v632_v13 = vpop.permute.xlu0 %631 }
 0x473   :  { %634 = vst.msk [vmem:[#allocation2 + $0x8] sm:$0xff] %vm628_vm6, %v632_v13  ;;  %v636_v14 = vpop.permute.xlu1 %635 }
 0x474   :  { %638 = vst.msk [vmem:[#allocation2 + $0x10] sm:$0xff] %vm4010_vm0, %v636_v14 }
 0x476   :  { %v650_v15 = vpop.permute.xlu0 %649  ;;  %v663_v16 = vld [vmem:[#allocation2] sm:$0xff] }
 0x477   :  { %652 = vst.msk [vmem:[#allocation2 + $0x38] sm:$0xff] %vm4009_vm3, %v650_v15  ;;  %v646_v17 = vpop.permute.xlu1 %645  ;;  %v666_v18 = vld [vmem:[#allocation2 + $0x18] sm:$0xff]  ;;  %755 = vst [vmem:[#allocation2] sm:$0xff] %v3309_v0  ;;  %v1068_v15 = vmul.f32 0.0, %v1065_v2 }
 0x478   :  { %648 = vst.msk [vmem:[#allocation2 + $0x30] sm:$0xff] %vm4009_vm3, %v646_v17  ;;  %758 = vst [vmem:[#allocation2 + $0x18] sm:$0xff] %v3309_v0 }
 0x47a   :  { %v659_v19 = vpop.permute.xlu0 %658  ;;  %v664_v20 = vld [vmem:[#allocation2 + $0x8] sm:$0xff] }
 0x47b   :  { %661 = vst.msk [vmem:[#allocation2 + $0x48] sm:$0xff] %vm4008_vm7, %v659_v19  ;;  %v654_v21 = vpop.permute.xlu1 %653  ;;  %v2823_v22 = vpack.c.bf16 %v666_v18, %v664_v20  ;;  %756 = vst [vmem:[#allocation2 + $0x8] sm:$0xff] %v3309_v0  ;;  %v665_v23 = vld [vmem:[#allocation2 + $0x10] sm:$0xff]  ;;  %v1665_v18 = vsel %vm1664_vm11, 1.0, %v3309_v0  ;;  %v1168_v19 = vmul.f32 0.0625, %v1165_v4  ;;  %v1186_v20 = vadd.f32 %v1166_v5, %v1068_v15 }
 0x47c   :  { %657 = vst.msk [vmem:[#allocation2 + $0x40] sm:$0xff] %vm4008_vm7, %v654_v21  ;;  %v2825_v24 = vpack.c.bf16 %v665_v23, %v663_v16  ;;  %757 = vst [vmem:[#allocation2 + $0x10] sm:$0xff] %v3309_v0  ;;  %v1282_v16 = vadd.f32 %v1266_v7, %v1182_v11  ;;  %v1270_v21 = vmul.f32 0.0625, %v1265_v6  ;;  %v1678_v4 = vmul.f32 0.0625, %v1665_v18 }
 0x47d   :  { %2824 = vmatprep.subr.bf16.mxu1 %v2823_v22  ;;  %vm4043_vm11 = vmmov %vm4036_vm13 }
 0x47e   :  { %2826 = vmatpush1.bf16.msra.mxu1 %v2825_v24  ;;  %v670_v25 = vld [vmem:[#allocation2 + $0x38] sm:$0xff] }
 0x47f   :  { %v2827_v26 = vpack.c.bf16 %v670_v25, %v3710_v9  ;;  %762 = vst [vmem:[#allocation2 + $0x38] sm:$0xff] %v3309_v0  ;;  %v669_v27 = vld [vmem:[#allocation2 + $0x30] sm:$0xff]  ;;  %v3791_v25 = vsel %vm1762_vm2, 1.0, %v3309_v0 }
 0x480   :  { %v2829_v28 = vpack.c.bf16 %v669_v27, %v3708_v8  ;;  %761 = vst [vmem:[#allocation2 + $0x30] sm:$0xff] %v3309_v0  ;;  %v1286_v27 = vadd.f32 %v1270_v21, %v1186_v20 }
 0x481   :  { %2828 = vmatprep.subr.bf16.mxu1 %v2827_v26  ;;  %v1184_v26 = vadd.f32 %v1168_v19, %v1068_v15 }
 0x482   :  { %2830 = vmatpush1.bf16.msra.mxu1 %v2829_v28  ;;  %v672_v29 = vld [vmem:[#allocation2 + $0x48] sm:$0xff]  ;;  %v1288_v28 = vadd.f32 %v1266_v7, %v1186_v20 }
 0x483   :  { %690 = vmatprep.subr.mxu1 %v672_v29  ;;  %764 = vst [vmem:[#allocation2 + $0x48] sm:$0xff] %v3309_v0  ;;  %v671_v30 = vld [vmem:[#allocation2 + $0x40] sm:$0xff] }
 0x484   :  { %763 = vst [vmem:[#allocation2 + $0x40] sm:$0xff] %v3309_v0 }
 0x486   :  { %691 = vmatpush1.msra.mxu1 %v671_v30  ;;  %v3793_v30 = vmul.f32 0.0, %v1665_v18 }
 0x487   :  { %2694 = vmatmul.mubr.msk.f32.vlgmr.msra.gmra.mrb[2].mxu1 %vm4007_vm4, %v662_v31  ;;  %v1284_v31 = vadd.f32 %v1266_v7, %v1184_v26 }
 0x488   :  { %972 = vmatprep.mubr.f32.mxu1 %v3309_v0 }
 0x48b   :  { %v677_v32 = vpop.permute.xlu0 %676 }
 0x55a   :  { %v748_v33 = vpop.f32.mrb[2].mxu1 }
 0x55b   :  { %v749_v34 = vadd.f32 %v748_v33, %v677_v32  ;;  %v750_v35 = vpop.f32.mrb[3].mxu1 }
 0x55c   :  { %v751_v36 = vadd.f32 %v750_v35, %v677_v32  ;;  %v1766_v35 = vmul.f32 0.0, %v3791_v25 }
 0x55d   :  { %v753_v37 = vmax.f32 %v749_v34, 0.0 }
 0x55e   :  { %v754_v38 = vmax.f32 %v751_v36, 0.0 }
 0x55f   :  { %766 = vrot.lane.b32.xlu1 %v753_v37, %s3315_s0 }
 0x560   :  { %779 = vrot.lane.b32.xlu0 %v754_v38, %s3310_s1 }
 0x563   :  { %771 = vrot.lane.b32.xlu1 %v754_v38, %s3315_s0 }
 0x564   :  { %775 = vrot.lane.b32.xlu0 %v753_v37, %s3310_s1 }
 0x567   :  { %789 = vrot.lane.b32.xlu1 %v754_v38, %s3313_s30 }
 0x568   :  { %785 = vrot.lane.b32.xlu0 %v753_v37, %s3313_s30 }
 0x56b   :  { %797 = vrot.lane.b32.xlu1 %v754_v38, %s3316_s4 }
 0x56c   :  { %793 = vrot.lane.b32.xlu0 %v753_v37, %s3316_s4 }
 0x56f   :  { %815 = vperm.xlu1 %2946, %v812_v39  }
 0x570   :  { %902 = vperm.xlu0 %2945, %v899_v40  }
 0x5d1   :  { %v767_v41 = vpop.permute.xlu1 %766 }
 0x5d2   :  { %769 = vst.msk [vmem:[#allocation2] sm:$0xff] %vm628_vm6, %v767_v41  ;;  %v780_v42 = vpop.permute.xlu0 %779 }
 0x5d3   :  { %782 = vst.msk [vmem:[#allocation2 + $0x18] sm:$0xff] %vm4010_vm0, %v780_v42 }
 0x5d5   :  { %v772_v43 = vpop.permute.xlu1 %771 }
 0x5d6   :  { %774 = vst.msk [vmem:[#allocation2 + $0x8] sm:$0xff] %vm628_vm6, %v772_v43  ;;  %v776_v44 = vpop.permute.xlu0 %775 }
 0x5d7   :  { %778 = vst.msk [vmem:[#allocation2 + $0x10] sm:$0xff] %vm4010_vm0, %v776_v44  ;;  %vm1563_vm0 = vcmp.lt.s32.totalorder %v997_v1, 96 }
 0x5d9   :  { %v790_v45 = vpop.permute.xlu1 %789  ;;  %v802_v46 = vld [vmem:[#allocation2] sm:$0xff] }
 0x5da   :  { %792 = vst.msk [vmem:[#allocation2 + $0x38] sm:$0xff] %vm4009_vm3, %v790_v45  ;;  %v786_v47 = vpop.permute.xlu0 %785  ;;  %v805_v48 = vld [vmem:[#allocation2 + $0x18] sm:$0xff]  ;;  %1938 = vst [vmem:[#allocation2] sm:$0xff] %v3309_v0 }
 0x5db   :  { %788 = vst.msk [vmem:[#allocation2 + $0x30] sm:$0xff] %vm4009_vm3, %v786_v47  ;;  %1941 = vst [vmem:[#allocation2 + $0x18] sm:$0xff] %v3309_v0  ;;  %vm1562_vm3 = vcmp.ge.s32.totalorder %v997_v1, 80 }
 0x5dc   :  { %vm1564_vm12 = vmand %vm1562_vm3, %vm1563_vm0  ;;  %vm3318_vm0 = vmmov 0  }
 0x5dd   :  { %v798_v49 = vpop.permute.xlu1 %797  ;;  %v803_v50 = vld [vmem:[#allocation2 + $0x8] sm:$0xff]  ;;  %v1565_v14 = vsel %vm1564_vm12, 1.0, %v3309_v0 }
 0x5de   :  { %800 = vst.msk [vmem:[#allocation2 + $0x48] sm:$0xff] %vm4008_vm7, %v798_v49  ;;  %v794_v51 = vpop.permute.xlu0 %793  ;;  %v2831_v52 = vpack.c.bf16 %v805_v48, %v803_v50  ;;  %1939 = vst [vmem:[#allocation2 + $0x8] sm:$0xff] %v3309_v0  ;;  %v804_v53 = vld [vmem:[#allocation2 + $0x10] sm:$0xff]  ;;  %v1566_v23 = vmul.f32 0.0, %v1565_v14 }
 0x5df   :  { %796 = vst.msk [vmem:[#allocation2 + $0x40] sm:$0xff] %vm4008_vm7, %v794_v51  ;;  %v2833_v54 = vpack.c.bf16 %v804_v53, %v802_v46  ;;  %1940 = vst [vmem:[#allocation2 + $0x10] sm:$0xff] %v3309_v0 }
 0x5e0   :  { %2832 = vmatprep.subr.bf16.mxu0 %v2831_v52  ;;  %vm1364_vm7 = vmand %vm1362_vm14, %vm1363_vm15  ;;  %v1576_v52 = vmul.f32 0.0625, %v1565_v14  ;;  %vm4038_vm15 = vcmask 326656  }
 0x5e1   :  { %2834 = vmatpush1.bf16.msra.mxu0 %v2833_v54  ;;  %v809_v55 = vld [vmem:[#allocation2 + $0x38] sm:$0xff]  ;;  %v1365_v10 = vsel %vm1364_vm7, 1.0, %v3309_v0  ;;  %vm4037_vm14 = vmmov %vm4036_vm13 }
 0x5e2   :  { %v2835_v56 = vpack.c.bf16 %v809_v55, %v754_v38  ;;  %1945 = vst [vmem:[#allocation2 + $0x38] sm:$0xff] %v3309_v0  ;;  %v808_v57 = vld [vmem:[#allocation2 + $0x30] sm:$0xff]  ;;  %v1366_v12 = vmul.f32 0.0, %v1365_v10  ;;  %v1372_v24 = vmul.f32 0.0625, %v1365_v10  ;;  %vm4045_vm2 = vmmov %vm4038_vm15 }
 0x5e3   :  { %v2837_v58 = vpack.c.bf16 %v808_v57, %v753_v37  ;;  %1944 = vst [vmem:[#allocation2 + $0x30] sm:$0xff] %v3309_v0 }
 0x5e4   :  { %2836 = vmatprep.subr.bf16.mxu0 %v2835_v56  ;;  %v1382_v22 = vadd.f32 %v1366_v12, %v1282_v16  ;;  %v1386_v32 = vadd.f32 %v1366_v12, %v1286_v27  ;;  %v1388_v33 = vadd.f32 %v1372_v24, %v1288_v28  ;;  %v1384_v37 = vadd.f32 %v1366_v12, %v1284_v31  ;;  %v898_v24 = vld [vmem:[%s3982_s11] sm:$0xff] }
 0x5e5   :  { %2838 = vmatpush1.bf16.msra.mxu0 %v2837_v58  ;;  %v811_v59 = vld [vmem:[#allocation2 + $0x48] sm:$0xff]  ;;  %v1390_v40 = vadd.f32 %v1366_v12, %v1288_v28 }
 0x5e6   :  { %829 = vmatprep.subr.mxu0 %v811_v59  ;;  %1947 = vst [vmem:[#allocation2 + $0x48] sm:$0xff] %v3309_v0  ;;  %v810_v60 = vld [vmem:[#allocation2 + $0x40] sm:$0xff] }
 0x5e7   :  { %1946 = vst [vmem:[#allocation2 + $0x40] sm:$0xff] %v3309_v0 }
 0x5e9   :  { %830 = vmatpush1.msra.mxu0 %v810_v60 }
 0x5ea   :  { %2695 = vmatmul.mubr.msk.f32.vlgmr.msra.gmra.mrb[4].mxu0 %vm4007_vm4, %v801_v61  ;;  %2839 = vmatprep.subr.bf16.mxu0 %v3317_v63  ;;  %vm1463_vm4 = vcmp.lt.s32.totalorder %v997_v1, 80 }
 0x5eb   :  { %vm1464_vm8 = vmand %vm1462_vm1, %vm1463_vm4  ;;  %2769 = vmatprep.mubr.msk.f32.mxu0 %vm3318_vm0, %v3309_v0  ;;  %vm4032_vm1 = vcmask 1047568   ;;  %vm4034_vm4 = vcmask 1031168  }
 0x5ec   :  { %v1465_v13 = vsel %vm1464_vm8, 1.0, %v3309_v0  ;;  %vm4033_vm3 = vmmov %vm4032_vm1 }
 0x5ed   :  { %v1466_v17 = vmul.f32 0.0, %v1465_v13  ;;  %v1474_v36 = vmul.f32 0.0625, %v1465_v13  ;;  %vm4035_vm7 = vmmov %vm4034_vm4 }
 0x5ee   :  { %v816_v13 = vpop.permute.xlu1 %815  ;;  %vm4039_vm8 = vmmov %vm4032_vm1 }
 0x5ef   :  { %v1482_v29 = vadd.f32 %v1466_v17, %v1382_v22  ;;  %v1486_v38 = vadd.f32 %v1466_v17, %v1386_v32  ;;  %v1488_v39 = vadd.f32 %v1466_v17, %v1388_v33  ;;  %v1484_v42 = vadd.f32 %v1466_v17, %v1384_v37  ;;  %v903_v28 = vpop.permute.xlu0 %902  ;;  %vm4040_vm9 = vmmov %vm4032_vm1 }
 0x5f0   :  { %v1490_v48 = vadd.f32 %v1474_v36, %v1390_v40  ;;  %v1492_v51 = vadd.f32 %v1466_v17, %v1390_v40  ;;  %vm4041_vm10 = vmmov %vm4034_vm4 }
 0x5f1   :  { %v1582_v34 = vadd.f32 %v1566_v23, %v1482_v29  ;;  %v1586_v43 = vadd.f32 %v1566_v23, %v1486_v38  ;;  %v1584_v45 = vadd.f32 %v1566_v23, %v1484_v42  ;;  %v1588_v47 = vadd.f32 %v1566_v23, %v1488_v39  ;;  %vm4042_vm12 = vmmov %vm4034_vm4 }
 0x5f2   :  { %v1590_v56 = vadd.f32 %v1566_v23, %v1490_v48  ;;  %v1592_v61 = vadd.f32 %v1576_v52, %v1492_v51  ;;  %v1594_v62 = vadd.f32 %v1566_v23, %v1492_v51 }
 0x5f3   :  { %v1682_v41 = vadd.f32 %v3793_v30, %v1582_v34  ;;  %v1686_v46 = vadd.f32 %v3793_v30, %v1586_v43  ;;  %v1684_v50 = vadd.f32 %v3793_v30, %v1584_v45  ;;  %v1688_v55 = vadd.f32 %v3793_v30, %v1588_v47 }
 0x5f4   :  { %v1690_v60 = vadd.f32 %v3793_v30, %v1590_v56  ;;  %v1692_v3 = vadd.f32 %v3793_v30, %v1592_v61  ;;  %v1694_v7 = vadd.f32 %v1678_v4, %v1594_v62  ;;  %v1984_v56 = vld [vmem:[%s3984_s13] sm:$0xff]  ;;  %v2134_v4 = vld [vmem:[#allocation17] sm:$0xff] }
 0x5f5   :  { %v1782_v44 = vadd.f32 %v1766_v35, %v1682_v41  ;;  %v1784_v53 = vadd.f32 %v1766_v35, %v1684_v50  ;;  %v1786_v54 = vadd.f32 %v1766_v35, %v1686_v46  ;;  %v1788_v59 = vadd.f32 %v1766_v35, %v1688_v55 }
 0x5f6   :  { %v1790_v2 = vadd.f32 %v1766_v35, %v1690_v60  ;;  %v1792_v6 = vadd.f32 %v1766_v35, %v1692_v3  ;;  %v1794_v11 = vadd.f32 %v1766_v35, %v1694_v7  ;;  %v1995_v35 = vld [vmem:[#allocation15] sm:$0xff] }
 0x5f7   :  { %v2840_v49 = vpack.c.bf16 %v1782_v44, %v1782_v44  ;;  %v2843_v57 = vpack.c.bf16 %v1784_v53, %v1784_v53  ;;  %v2846_v58 = vpack.c.bf16 %v1786_v54, %v1786_v54  ;;  %v2849_v1 = vpack.c.bf16 %v1788_v59, %v1788_v59 }
 0x5f8   :  { %v2852_v5 = vpack.c.bf16 %v1790_v2, %v1790_v2  ;;  %v2855_v10 = vpack.c.bf16 %v1792_v6, %v1792_v6  ;;  %v2858_v12 = vpack.c.bf16 %v1794_v11, %v1794_v11 }
 0x5f9   :  { %2841 = vmatpush3.bf16.msra.mxu0 %v2840_v49 }
 0x5fa   :  { %2842 = vmatprep.subr.bf16.mxu0 %v3317_v63 }
 0x5fd   :  { %2844 = vmatpush3.bf16.msra.mxu0 %v2843_v57 }
 0x5fe   :  { %2845 = vmatprep.subr.bf16.mxu0 %v3317_v63 }
 0x601   :  { %2847 = vmatpush3.bf16.msra.mxu0 %v2846_v58 }
 0x602   :  { %2848 = vmatprep.subr.bf16.mxu0 %v3317_v63 }
 0x605   :  { %2850 = vmatpush3.bf16.msra.mxu0 %v2849_v1 }
 0x606   :  { %2851 = vmatprep.subr.bf16.mxu0 %v3317_v63 }
 0x609   :  { %2853 = vmatpush3.bf16.msra.mxu0 %v2852_v5 }
 0x60a   :  { %2854 = vmatprep.subr.bf16.mxu0 %v3317_v63 }
 0x60d   :  { %2856 = vmatpush3.bf16.msra.mxu0 %v2855_v10 }
 0x60e   :  { %2857 = vmatprep.subr.bf16.mxu0 %v3317_v63 }
 0x611   :  { %2859 = vmatpush3.bf16.msra.mxu0 %v2858_v12 }
 0x612   :  { %2860 = vmatprep.subr.bf16.mxu0 %v3317_v63 }
 0x6bd   :  { %v887_v14 = vpop.f32.mrb[4].mxu0 }
 0x6be   :  { %v888_v15 = vadd.f32 %v887_v14, %v816_v13  ;;  %v889_v16 = vpop.f32.mrb[5].mxu0 }
 0x6bf   :  { %v890_v17 = vadd.f32 %v889_v16, %v816_v13 }
 0x6c0   :  { %v892_v18 = vmax.f32 %v888_v15, 0.0 }
 0x6c1   :  { %v893_v19 = vmax.f32 %v890_v17, 0.0 }
 0x6c2   :  { %v894_v20 = vadd.f32 %v892_v18, %v3708_v8  ;;  %v1696_v8 = vadd.f32 %v3793_v30, %v1594_v62 }
 0x6c3   :  { %v895_v21 = vadd.f32 %v893_v19, %v3710_v9  ;;  %v1780_v9 = vmul.f32 0.0625, %v3791_v25 }
 0x6c4   :  { %v896_v23 = vmax.f32 %v894_v20, 0.0 }
 0x6c5   :  { %v897_v22 = vmax.f32 %v895_v21, 0.0  ;;  %v1796_v26 = vadd.f32 %v1780_v9, %v1696_v8 }
 0x6c7   :  { %908 = vmatprep.subr.mxu1 %v897_v22  ;;  %v2861_v27 = vpack.c.bf16 %v1796_v26, %v1796_v26 }
 0x6c8   :  { %909 = vmatpush1.msra.mxu1 %v896_v23 }
 0x6c9   :  { %2696 = vmatmul.mubr.msk.f32.vlgmr.msra.gmra.mrb[4].mxu1 %vm535_vm5, %v898_v24  ;;  %2863 = vmatprep.subr.bf16.mxu1 %v3317_v63 }
 0x6ca   :  { %2865 = vmatpush3.bf16.msra.mxu1 %v2840_v49  ;;  %2862 = vmatpush3.bf16.msra.mxu0 %v2861_v27 }
 0x6cb   :  { %2866 = vmatprep.subr.bf16.mxu1 %v3317_v63  ;;  %2804 = vmatprep.mubr.msk.f32.mxu1 %vm3318_vm0, %v3309_v0  ;;  %vm4046_vm0 = vmmov %vm4032_vm1 }
 0x6ce   :  { %2868 = vmatpush3.bf16.msra.mxu1 %v2843_v57  ;;  %v2216_v57 = vld [vmem:[%s3988_s17] sm:$0xff] }
 0x6cf   :  { %2869 = vmatprep.subr.bf16.mxu1 %v3317_v63 }
 0x6d2   :  { %2871 = vmatpush3.bf16.msra.mxu1 %v2846_v58 }
 0x6d3   :  { %2872 = vmatprep.subr.bf16.mxu1 %v3317_v63 }
 0x6d6   :  { %2874 = vmatpush3.bf16.msra.mxu1 %v2849_v1 }
 0x6d7   :  { %2875 = vmatprep.subr.bf16.mxu1 %v3317_v63 }
 0x6da   :  { %2877 = vmatpush3.bf16.msra.mxu1 %v2852_v5  ;;  %v2217_v5 = vld [vmem:[#allocation18] sm:$0xff] }
 0x6db   :  { %2878 = vmatprep.subr.bf16.mxu1 %v3317_v63 }
 0x6de   :  { %2880 = vmatpush3.bf16.msra.mxu1 %v2855_v10 }
 0x6df   :  { %2881 = vmatprep.subr.bf16.mxu1 %v3317_v63 }
 0x6e2   :  { %2883 = vmatpush3.bf16.msra.mxu1 %v2858_v12 }
 0x6e3   :  { %2884 = vmatprep.subr.bf16.mxu1 %v3317_v63 }
 0x6e6   :  { %2886 = vmatpush3.bf16.msra.mxu1 %v2861_v27 }
 0x79c   :  { %v974_v29 = vpop.f32.mrb[4].mxu1 }
 0x79d   :  { %v975_v31 = vadd.f32 %v974_v29, %v903_v28  ;;  %v976_v32 = vpop.f32.mrb[5].mxu1 }
 0x79e   :  { %v977_v33 = vadd.f32 %v976_v32, %v903_v28  ;;  %v2123_v28 = vld [vmem:[%s3986_s15] sm:$0xff] }
 0x79f   :  { %2770 = vmatmul.mubr.f32.vlgmr.msra.gmra.mrb[6].mxu0 %v975_v31 }
 0x7a0   :  { %2805 = vmatmul.mubr.f32.vlgmr.msra.gmra.mrb[6].mxu1 %v977_v33  ;;  %2068 = vmatprep.mubr.f32.mxu0 %v3309_v0 }
 0x7a1   :  { %2207 = vmatprep.mubr.f32.mxu1 %v3309_v0 }
 0x872   :  { %v1864_v63 = vpop.f32.mrb[6].mxu0 }
 0x873   :  { %v1934_v25 = vpop.f32.mrb[6].mxu1  ;;  %1949 = vrot.lane.b32.xlu1 %v1864_v63, %s3315_s0  ;;  %v2771_v30 = vpop.f32.mrb[7].mxu0 }
 0x874   :  { %1962 = vrot.lane.b32.xlu0 %v1934_v25, %s3310_s1  ;;  %v2806_v34 = vpop.f32.mrb[7].mxu1 }
 0x877   :  { %1954 = vrot.lane.b32.xlu1 %v1934_v25, %s3315_s0 }
 0x878   :  { %1958 = vrot.lane.b32.xlu0 %v1864_v63, %s3310_s1 }
 0x87b   :  { %1972 = vrot.lane.b32.xlu1 %v1934_v25, %s3313_s30 }
 0x87c   :  { %1968 = vrot.lane.b32.xlu0 %v1864_v63, %s3313_s30 }
 0x87f   :  { %1980 = vrot.lane.b32.xlu1 %v1934_v25, %s3316_s4 }
 0x880   :  { %1976 = vrot.lane.b32.xlu0 %v1864_v63, %s3316_s4 }
 0x883   :  { %1998 = vperm.xlu1 %2946, %v1995_v35  }
 0x8e5   :  { %v1950_v36 = vpop.permute.xlu1 %1949 }
 0x8e6   :  { %1952 = vst.msk [vmem:[#allocation2] sm:$0xff] %vm628_vm6, %v1950_v36  ;;  %v1963_v37 = vpop.permute.xlu0 %1962 }
 0x8e7   :  { %1965 = vst.msk [vmem:[#allocation2 + $0x18] sm:$0xff] %vm4032_vm1, %v1963_v37  ;;  %vm4047_vm1 = vcmask 1047560  }
 0x8e9   :  { %v1955_v38 = vpop.permute.xlu1 %1954 }
 0x8ea   :  { %1957 = vst.msk [vmem:[#allocation2 + $0x8] sm:$0xff] %vm628_vm6, %v1955_v38  ;;  %v1959_v39 = vpop.permute.xlu0 %1958 }
 0x8eb   :  { %1961 = vst.msk [vmem:[#allocation2 + $0x10] sm:$0xff] %vm4033_vm3, %v1959_v39  ;;  %vm4048_vm3 = vmmov %vm4046_vm0 }
 0x8ed   :  { %v1973_v40 = vpop.permute.xlu1 %1972  ;;  %v1985_v41 = vld [vmem:[#allocation2] sm:$0xff] }
 0x8ee   :  { %1975 = vst.msk [vmem:[#allocation2 + $0x38] sm:$0xff] %vm4034_vm4, %v1973_v40  ;;  %v1969_v42 = vpop.permute.xlu0 %1968  ;;  %v1988_v43 = vld [vmem:[#allocation2 + $0x18] sm:$0xff]  ;;  %2077 = vst [vmem:[#allocation2] sm:$0xff] %v3309_v0 }
 0x8ef   :  { %1971 = vst.msk [vmem:[#allocation2 + $0x30] sm:$0xff] %vm4035_vm7, %v1969_v42  ;;  %2080 = vst [vmem:[#allocation2 + $0x18] sm:$0xff] %v3309_v0  ;;  %vm4050_vm7 = vcmask 1039360  }
 0x8f0   :  { %vm4049_vm4 = vmmov %vm4047_vm1 }
 0x8f1   :  { %v1981_v44 = vpop.permute.xlu1 %1980  ;;  %v1986_v45 = vld [vmem:[#allocation2 + $0x8] sm:$0xff] }
 0x8f2   :  { %1983 = vst.msk [vmem:[#allocation2 + $0x48] sm:$0xff] %vm4036_vm13, %v1981_v44  ;;  %v1977_v46 = vpop.permute.xlu0 %1976  ;;  %v2887_v47 = vpack.c.bf16 %v1988_v43, %v1986_v45  ;;  %2078 = vst [vmem:[#allocation2 + $0x8] sm:$0xff] %v3309_v0  ;;  %v1987_v48 = vld [vmem:[#allocation2 + $0x10] sm:$0xff] }
 0x8f3   :  { %1979 = vst.msk [vmem:[#allocation2 + $0x40] sm:$0xff] %vm4037_vm14, %v1977_v46  ;;  %v2889_v49 = vpack.c.bf16 %v1987_v48, %v1985_v41  ;;  %2079 = vst [vmem:[#allocation2 + $0x10] sm:$0xff] %v3309_v0  ;;  %v2358_v41 = vld [vmem:[#allocation20] sm:$0xff] }
 0x8f4   :  { %2888 = vmatprep.subr.bf16.mxu0 %v2887_v47  ;;  %vm4051_vm13 = vmmov %vm4050_vm7 }
 0x8f5   :  { %2890 = vmatpush1.bf16.msra.mxu0 %v2889_v49  ;;  %v1992_v50 = vld [vmem:[#allocation2 + $0x38] sm:$0xff]  ;;  %vm4052_vm14 = vmmov %vm4041_vm10 }
 0x8f6   :  { %v2891_v51 = vpack.c.bf16 %v1992_v50, %v1934_v25  ;;  %2084 = vst [vmem:[#allocation2 + $0x38] sm:$0xff] %v3309_v0  ;;  %v1991_v52 = vld [vmem:[#allocation2 + $0x30] sm:$0xff] }
 0x8f7   :  { %v2893_v53 = vpack.c.bf16 %v1991_v52, %v1864_v63  ;;  %2083 = vst [vmem:[#allocation2 + $0x30] sm:$0xff] %v3309_v0 }
 0x8f8   :  { %2892 = vmatprep.subr.bf16.mxu0 %v2891_v51 }
 0x8f9   :  { %2894 = vmatpush1.bf16.msra.mxu0 %v2893_v53  ;;  %v1994_v54 = vld [vmem:[#allocation2 + $0x48] sm:$0xff] }
 0x8fa   :  { %2012 = vmatprep.subr.mxu0 %v1994_v54  ;;  %2086 = vst [vmem:[#allocation2 + $0x48] sm:$0xff] %v3309_v0  ;;  %v1993_v55 = vld [vmem:[#allocation2 + $0x40] sm:$0xff] }
 0x8fb   :  { %2085 = vst [vmem:[#allocation2 + $0x40] sm:$0xff] %v3309_v0 }
 0x8fd   :  { %2013 = vmatpush1.msra.mxu0 %v1993_v55 }
 0x8fe   :  { %2697 = vmatmul.mubr.msk.f32.vlgmr.msra.gmra.mrb[8].mxu0 %vm4038_vm15, %v1984_v56  ;;  %2226 = vmatprep.subr.mxu0 %v1934_v25  ;;  %vm4053_vm15 = vmmov %vm4041_vm10 }
 0x8ff   :  { %2227 = vmatpush1.msra.mxu0 %v1864_v63  ;;  %2290 = vmatprep.mubr.f32.mxu0 %v3309_v0 }
 0x902   :  { %2699 = vmatmul.mubr.msk.f32.vlgmr.msra.gmra.mrb[10].mxu0 %vm535_vm5, %v2216_v57  ;;  %v1999_v58 = vpop.permute.xlu1 %1998 }
 0x903   :  { %2570 = vmatprep.mubr.f32.mxu0 %v3309_v0 }
 0x9d1   :  { %v2070_v59 = vpop.f32.mrb[8].mxu0 }
 0x9d2   :  { %v2071_v60 = vadd.f32 %v2070_v59, %v1999_v58  ;;  %v2072_v61 = vpop.f32.mrb[9].mxu0 }
 0x9d3   :  { %v2073_v62 = vadd.f32 %v2072_v61, %v1999_v58 }
 0x9d4   :  { %v2075_v1 = vmax.f32 %v2071_v60, 0.0 }
 0x9d5   :  { %v2076_v2 = vmax.f32 %v2073_v62, 0.0  ;;  %v2292_v3 = vpop.f32.mrb[10].mxu0  ;;  %v2347_v62 = vld [vmem:[%s3990_s19] sm:$0xff] }
 0x9d6   :  { %2088 = vrot.lane.b32.xlu0 %v2075_v1, %s3315_s0  ;;  %v2294_v6 = vpop.f32.mrb[11].mxu0 }
 0x9d7   :  { %2101 = vrot.lane.b32.xlu1 %v2076_v2, %s3310_s1 }
 0x9da   :  { %2093 = vrot.lane.b32.xlu0 %v2076_v2, %s3315_s0 }
 0x9db   :  { %2097 = vrot.lane.b32.xlu1 %v2075_v1, %s3310_s1 }
 0x9de   :  { %2111 = vrot.lane.b32.xlu0 %v2076_v2, %s3313_s30 }
 0x9df   :  { %2107 = vrot.lane.b32.xlu1 %v2075_v1, %s3313_s30 }
 0x9e2   :  { %2119 = vrot.lane.b32.xlu0 %v2076_v2, %s3316_s4 }
 0x9e3   :  { %2115 = vrot.lane.b32.xlu1 %v2075_v1, %s3316_s4 }
 0x9e6   :  { %2137 = vperm.xlu0 %2945, %v2134_v4  }
 0x9e7   :  { %2220 = vperm.xlu1 %2946, %v2217_v5  }
 0xa48   :  { %v2089_v7 = vpop.permute.xlu0 %2088 }
 0xa49   :  { %2091 = vst.msk [vmem:[#allocation2] sm:$0xff] %vm628_vm6, %v2089_v7  ;;  %v2102_v10 = vpop.permute.xlu1 %2101 }
 0xa4a   :  { %2104 = vst.msk [vmem:[#allocation2 + $0x18] sm:$0xff] %vm4039_vm8, %v2102_v10  ;;  %vm4054_vm8 = vmmov %vm4045_vm2  ;;  %v2584_v10 = vld [vmem:[#allocation24] sm:$0xf] }
 0xa4c   :  { %v2094_v11 = vpop.permute.xlu0 %2093 }
 0xa4d   :  { %2096 = vst.msk [vmem:[#allocation2 + $0x8] sm:$0xff] %vm628_vm6, %v2094_v11  ;;  %v2098_v12 = vpop.permute.xlu1 %2097  ;;  %vm4044_vm6 = vmmov %vm4043_vm11 }
 0xa4e   :  { %2100 = vst.msk [vmem:[#allocation2 + $0x10] sm:$0xff] %vm4040_vm9, %v2098_v12  ;;  %vm4055_vm9 = vmmov %vm4046_vm0 }
 0xa50   :  { %v2112_v13 = vpop.permute.xlu0 %2111  ;;  %v2124_v14 = vld [vmem:[#allocation2] sm:$0xff] }
 0xa51   :  { %2114 = vst.msk [vmem:[#allocation2 + $0x38] sm:$0xff] %vm4041_vm10, %v2112_v13  ;;  %v2108_v15 = vpop.permute.xlu1 %2107  ;;  %v2127_v16 = vld [vmem:[#allocation2 + $0x18] sm:$0xff]  ;;  %2301 = vst [vmem:[#allocation2] sm:$0xff] %v3309_v0 }
 0xa52   :  { %2110 = vst.msk [vmem:[#allocation2 + $0x30] sm:$0xff] %vm4042_vm12, %v2108_v15  ;;  %2304 = vst [vmem:[#allocation2 + $0x18] sm:$0xff] %v3309_v0 }
 0xa53   :  { %vm4056_vm10 = vmmov %vm4047_vm1 }
 0xa54   :  { %v2120_v17 = vpop.permute.xlu0 %2119  ;;  %v2125_v18 = vld [vmem:[#allocation2 + $0x8] sm:$0xff]  ;;  %vm4057_vm12 = vmmov %vm4046_vm0 }
 0xa55   :  { %2122 = vst.msk [vmem:[#allocation2 + $0x48] sm:$0xff] %vm4043_vm11, %v2120_v17  ;;  %v2116_v19 = vpop.permute.xlu1 %2115  ;;  %v2895_v20 = vpack.c.bf16 %v2127_v16, %v2125_v18  ;;  %2302 = vst [vmem:[#allocation2 + $0x8] sm:$0xff] %v3309_v0  ;;  %v2126_v21 = vld [vmem:[#allocation2 + $0x10] sm:$0xff] }
 0xa56   :  { %2118 = vst.msk [vmem:[#allocation2 + $0x40] sm:$0xff] %vm4044_vm6, %v2116_v19  ;;  %v2897_v22 = vpack.c.bf16 %v2126_v21, %v2124_v14  ;;  %2303 = vst [vmem:[#allocation2 + $0x10] sm:$0xff] %v3309_v0 }
 0xa57   :  { %2896 = vmatprep.subr.bf16.mxu1 %v2895_v20  ;;  %vm4058_vm11 = vmmov %vm4047_vm1 }
 0xa58   :  { %2898 = vmatpush1.bf16.msra.mxu1 %v2897_v22  ;;  %v2131_v23 = vld [vmem:[#allocation2 + $0x38] sm:$0xff]  ;;  %vm4059_vm6 = vmmov %vm4050_vm7 }
 0xa59   :  { %v2899_v24 = vpack.c.bf16 %v2131_v23, %v2076_v2  ;;  %2308 = vst [vmem:[#allocation2 + $0x38] sm:$0xff] %v3309_v0  ;;  %v2130_v8 = vld [vmem:[#allocation2 + $0x30] sm:$0xff] }
 0xa5a   :  { %v2901_v9 = vpack.c.bf16 %v2130_v8, %v2075_v1  ;;  %2307 = vst [vmem:[#allocation2 + $0x30] sm:$0xff] %v3309_v0 }
 0xa5b   :  { %2900 = vmatprep.subr.bf16.mxu1 %v2899_v24 }
 0xa5c   :  { %2902 = vmatpush1.bf16.msra.mxu1 %v2901_v9  ;;  %v2133_v26 = vld [vmem:[#allocation2 + $0x48] sm:$0xff] }
 0xa5d   :  { %2151 = vmatprep.subr.mxu1 %v2133_v26  ;;  %2310 = vst [vmem:[#allocation2 + $0x48] sm:$0xff] %v3309_v0  ;;  %v2132_v27 = vld [vmem:[#allocation2 + $0x40] sm:$0xff] }
 0xa5e   :  { %2309 = vst [vmem:[#allocation2 + $0x40] sm:$0xff] %v3309_v0 }
 0xa60   :  { %2152 = vmatpush1.msra.mxu1 %v2132_v27 }
 0xa61   :  { %2698 = vmatmul.mubr.msk.f32.vlgmr.msra.gmra.mrb[8].mxu1 %vm4045_vm2, %v2123_v28  ;;  %vm4060_vm2 = vmmov %vm4059_vm6 }
 0xa62   :  { %2431 = vmatprep.mubr.f32.mxu1 %v3309_v0 }
 0xa65   :  { %v2138_v29 = vpop.permute.xlu0 %2137 }
 0xa66   :  { %v2221_v31 = vpop.permute.xlu1 %2220 }
 0xa67   :  { %v2293_v30 = vadd.f32 %v2292_v3, %v2221_v31  ;;  %v2295_v35 = vadd.f32 %v2294_v6, %v2221_v31 }
 0xb34   :  { %v2209_v32 = vpop.f32.mrb[8].mxu1 }
 0xb35   :  { %v2210_v33 = vadd.f32 %v2209_v32, %v2138_v29  ;;  %v2211_v63 = vpop.f32.mrb[9].mxu1 }
 0xb36   :  { %v2212_v25 = vadd.f32 %v2211_v63, %v2138_v29  ;;  %v2486_v29 = vld [vmem:[%s3992_s21] sm:$0xff]  ;;  %s3319_s21 = smov [#allocation26]  }
 0xb37   :  { %v2214_v34 = vmax.f32 %v2210_v33, 0.0  ;;  %s2672_s29 = sshll.u32 %s3319_s21, 4  ;;  %s2673_s29 = int_to_ptr.vmem [resolvable:$true] %s2672_s29 }
 0xb38   :  { %v2215_v36 = vmax.f32 %v2212_v25, 0.0  ;;  %p3260_p1 = scmp.lt.s32.totalorder %s2673_s29, %s2673_s29 }
 0xb39   :  { %v2297_v37 = vadd.f32 %v2293_v30, %v2214_v34 }
 0xb3a   :  { %v2298_v38 = vadd.f32 %v2295_v35, %v2215_v36 }
 0xb3b   :  { %v3892_v39 = vmax.f32 %v2297_v37, 0.0 }
 0xb3c   :  { %v3894_v40 = vmax.f32 %v2298_v38, 0.0 }
 0xb3d   :  { %2312 = vrot.lane.b32.xlu0 %v3892_v39, %s3310_s1 }
 0xb3e   :  { %2325 = vrot.lane.b32.xlu1 %v3894_v40, %s3311_s6 }
 0xb41   :  { %2317 = vrot.lane.b32.xlu0 %v3894_v40, %s3310_s1 }
 0xb42   :  { %2321 = vrot.lane.b32.xlu1 %v3892_v39, %s3311_s6 }
 0xb45   :  { %2335 = vrot.lane.b32.xlu0 %v3894_v40, %s3312_s10 }
 0xb46   :  { %2331 = vrot.lane.b32.xlu1 %v3892_v39, %s3312_s10 }
 0xb49   :  { %2343 = vrot.lane.b32.xlu0 %v3894_v40, %s3313_s30 }
 0xb4a   :  { %2339 = vrot.lane.b32.xlu1 %v3892_v39, %s3313_s30 }
 0xb4d   :  { %2361 = vperm.xlu0 %2945, %v2358_v41  }
 0xbaf   :  { %v2313_v42 = vpop.permute.xlu0 %2312 }
 0xbb0   :  { %2315 = vst.msk [vmem:[#allocation2] sm:$0xff] %vm4046_vm0, %v2313_v42  ;;  %v2326_v43 = vpop.permute.xlu1 %2325  ;;  %vm4061_vm0 = vmmov %vm4052_vm14  ;;  %v2583_v42 = vld [vmem:[#allocation23] sm:$0xf] }
 0xbb1   :  { %2328 = vst.msk [vmem:[#allocation2 + $0x18] sm:$0xff] %vm4047_vm1, %v2326_v43  ;;  %vm4062_vm1 = vmmov %vm4061_vm0 }
 0xbb3   :  { %v2318_v44 = vpop.permute.xlu0 %2317 }
 0xbb4   :  { %2320 = vst.msk [vmem:[#allocation2 + $0x8] sm:$0xff] %vm4048_vm3, %v2318_v44  ;;  %v2322_v45 = vpop.permute.xlu1 %2321  ;;  %vm4063_vm3 = vmmov %vm4054_vm8 }
 0xbb5   :  { %2324 = vst.msk [vmem:[#allocation2 + $0x10] sm:$0xff] %vm4049_vm4, %v2322_v45 }
 0xbb7   :  { %v2336_v46 = vpop.permute.xlu0 %2335  ;;  %v2348_v47 = vld [vmem:[#allocation2] sm:$0xff] }
 0xbb8   :  { %2338 = vst.msk [vmem:[#allocation2 + $0x38] sm:$0xff] %vm4050_vm7, %v2336_v46  ;;  %v2332_v48 = vpop.permute.xlu1 %2331  ;;  %v2351_v49 = vld [vmem:[#allocation2 + $0x18] sm:$0xff]  ;;  %2440 = vst [vmem:[#allocation2] sm:$0xff] %v3309_v0 }
 0xbb9   :  { %2334 = vst.msk [vmem:[#allocation2 + $0x30] sm:$0xff] %vm4051_vm13, %v2332_v48  ;;  %2443 = vst [vmem:[#allocation2 + $0x18] sm:$0xff] %v3309_v0 }
 0xbbb   :  { %v2344_v50 = vpop.permute.xlu0 %2343  ;;  %v2349_v51 = vld [vmem:[#allocation2 + $0x8] sm:$0xff] }
 0xbbc   :  { %2346 = vst.msk [vmem:[#allocation2 + $0x48] sm:$0xff] %vm4052_vm14, %v2344_v50  ;;  %v2340_v52 = vpop.permute.xlu1 %2339  ;;  %v2903_v53 = vpack.c.bf16 %v2351_v49, %v2349_v51  ;;  %2441 = vst [vmem:[#allocation2 + $0x8] sm:$0xff] %v3309_v0  ;;  %v2350_v54 = vld [vmem:[#allocation2 + $0x10] sm:$0xff] }
 0xbbd   :  { %2342 = vst.msk [vmem:[#allocation2 + $0x40] sm:$0xff] %vm4053_vm15, %v2340_v52  ;;  %v2905_v55 = vpack.c.bf16 %v2350_v54, %v2348_v47  ;;  %2442 = vst [vmem:[#allocation2 + $0x10] sm:$0xff] %v3309_v0 }
 0xbbe   :  { %2904 = vmatprep.subr.bf16.mxu1 %v2903_v53 }
 0xbbf   :  { %2906 = vmatpush1.bf16.msra.mxu1 %v2905_v55  ;;  %v2355_v56 = vld [vmem:[#allocation2 + $0x38] sm:$0xff] }
 0xbc0   :  { %v2907_v57 = vpack.c.bf16 %v2355_v56, %v3894_v40  ;;  %2447 = vst [vmem:[#allocation2 + $0x38] sm:$0xff] %v3309_v0  ;;  %v2354_v58 = vld [vmem:[#allocation2 + $0x30] sm:$0xff] }
 0xbc1   :  { %v2909_v59 = vpack.c.bf16 %v2354_v58, %v3892_v39  ;;  %2446 = vst [vmem:[#allocation2 + $0x30] sm:$0xff] %v3309_v0 }
 0xbc2   :  { %2908 = vmatprep.subr.bf16.mxu1 %v2907_v57 }
 0xbc3   :  { %2910 = vmatpush1.bf16.msra.mxu1 %v2909_v59  ;;  %v2357_v60 = vld [vmem:[#allocation2 + $0x48] sm:$0xff] }
 0xbc4   :  { %2375 = vmatprep.subr.mxu1 %v2357_v60  ;;  %2449 = vst [vmem:[#allocation2 + $0x48] sm:$0xff] %v3309_v0  ;;  %v2356_v61 = vld [vmem:[#allocation2 + $0x40] sm:$0xff] }
 0xbc5   :  { %2448 = vst [vmem:[#allocation2 + $0x40] sm:$0xff] %v3309_v0 }
 0xbc7   :  { %2376 = vmatpush1.msra.mxu1 %v2356_v61 }
 0xbc8   :  { %2700 = vmatmul.mubr.msk.f32.vlgmr.msra.gmra.mrb[10].mxu1 %vm4054_vm8, %v2347_v62 }
 0xbc9   :  { %2657 = vmatprep.mubr.f32.mxu1 %v3309_v0  ;;  %v2497_v0 = vld [vmem:[#allocation21] sm:$0xff] }
 0xbcc   :  { %v2362_v1 = vpop.permute.xlu0 %2361 }
 0xc9b   :  { %v2433_v2 = vpop.f32.mrb[10].mxu1 }
 0xc9c   :  { %v2434_v3 = vadd.f32 %v2433_v2, %v2362_v1  ;;  %v2435_v4 = vpop.f32.mrb[11].mxu1 }
 0xc9d   :  { %v2436_v5 = vadd.f32 %v2435_v4, %v2362_v1 }
 0xc9e   :  { %v2438_v6 = vmax.f32 %v2434_v3, 0.0 }
 0xc9f   :  { %v2439_v7 = vmax.f32 %v2436_v5, 0.0 }
 0xca0   :  { %2451 = vrot.lane.b32.xlu1 %v2438_v6, %s3310_s1 }
 0xca1   :  { %2464 = vrot.lane.b32.xlu0 %v2439_v7, %s3311_s6 }
 0xca4   :  { %2456 = vrot.lane.b32.xlu1 %v2439_v7, %s3310_s1  ;;  %s3255_s1 = scalar_lea.vmem %s2673_s29, 128 }
 0xca5   :  { %2460 = vrot.lane.b32.xlu0 %v2438_v6, %s3311_s6  ;;  %p3256_p0 = scmp.ne.s32.totalorder %s2673_s29, %s3255_s1  ;;  %p3261_p2 = scmp.lt.s32.totalorder %s3255_s1, %s3255_s1 }
 0xca7   :  { %p3262_p3 = por %p3261_p2, %p3260_p1 }
 0xca8   :  { %2474 = vrot.lane.b32.xlu1 %v2439_v7, %s3312_s10 }
 0xca9   :  { %2470 = vrot.lane.b32.xlu0 %v2438_v6, %s3312_s10  ;;  %p3263_p4 = pnand %p3262_p3, %p3256_p0 }
 0xcac   :  { %2482 = vrot.lane.b32.xlu1 %v2439_v7, %s3313_s30 }
 0xcad   :  { %2478 = vrot.lane.b32.xlu0 %v2438_v6, %s3313_s30 }
 0xcb0   :  { %2500 = vperm.xlu1 %2946, %v2497_v0  }
 0xcb1   :  { %2587 = vperm.xlu0 %2945, %v2584_v10  }
 0xd12   :  { %v2452_v11 = vpop.permute.xlu1 %2451 }
 0xd13   :  { %2454 = vst.msk [vmem:[#allocation2] sm:$0xff] %vm4055_vm9, %v2452_v11  ;;  %v2465_v12 = vpop.permute.xlu0 %2464 }
 0xd14   :  { %2467 = vst.msk [vmem:[#allocation2 + $0x18] sm:$0xff] %vm4056_vm10, %v2465_v12 }
 0xd16   :  { %v2457_v13 = vpop.permute.xlu1 %2456 }
 0xd17   :  { %2459 = vst.msk [vmem:[#allocation2 + $0x8] sm:$0xff] %vm4057_vm12, %v2457_v13  ;;  %v2461_v14 = vpop.permute.xlu0 %2460 }
 0xd18   :  { %2463 = vst.msk [vmem:[#allocation2 + $0x10] sm:$0xff] %vm4058_vm11, %v2461_v14 }
 0xd1a   :  { %v2475_v15 = vpop.permute.xlu1 %2474  ;;  %v2487_v22 = vld [vmem:[#allocation2] sm:$0xff] }
 0xd1b   :  { %2477 = vst.msk [vmem:[#allocation2 + $0x38] sm:$0xff] %vm4059_vm6, %v2475_v15  ;;  %v2471_v16 = vpop.permute.xlu0 %2470  ;;  %v2490_v19 = vld [vmem:[#allocation2 + $0x18] sm:$0xff] }
 0xd1c   :  { %2473 = vst.msk [vmem:[#allocation2 + $0x30] sm:$0xff] %vm4060_vm2, %v2471_v16 }
 0xd1e   :  { %v2483_v17 = vpop.permute.xlu1 %2482  ;;  %v2488_v18 = vld [vmem:[#allocation2 + $0x8] sm:$0xff] }
 0xd1f   :  { %2485 = vst.msk [vmem:[#allocation2 + $0x48] sm:$0xff] %vm4061_vm0, %v2483_v17  ;;  %v2479_v20 = vpop.permute.xlu0 %2478  ;;  %v2911_v21 = vpack.c.bf16 %v2490_v19, %v2488_v18  ;;  %v2489_v23 = vld [vmem:[#allocation2 + $0x10] sm:$0xff] }
 0xd20   :  { %2481 = vst.msk [vmem:[#allocation2 + $0x40] sm:$0xff] %vm4062_vm1, %v2479_v20  ;;  %v2913_v24 = vpack.c.bf16 %v2489_v23, %v2487_v22 }
 0xd21   :  { %2912 = vmatprep.subr.bf16.mxu0 %v2911_v21 }
 0xd22   :  { %2914 = vmatpush1.bf16.msra.mxu0 %v2913_v24  ;;  %v2494_v8 = vld [vmem:[#allocation2 + $0x38] sm:$0xff] }
 0xd23   :  { %v2915_v9 = vpack.c.bf16 %v2494_v8, %v2439_v7  ;;  %v2493_v26 = vld [vmem:[#allocation2 + $0x30] sm:$0xff] }
 0xd24   :  { %v2917_v27 = vpack.c.bf16 %v2493_v26, %v2438_v6 }
 0xd25   :  { %2916 = vmatprep.subr.bf16.mxu0 %v2915_v9 }
 0xd26   :  { %2918 = vmatpush1.bf16.msra.mxu0 %v2917_v27  ;;  %v2496_v28 = vld [vmem:[#allocation2 + $0x48] sm:$0xff] }
 0xd27   :  { %2514 = vmatprep.subr.mxu0 %v2496_v28  ;;  %v2495_v31 = vld [vmem:[#allocation2 + $0x40] sm:$0xff] }
 0xd2a   :  { %2515 = vmatpush1.msra.mxu0 %v2495_v31 }
 0xd2b   :  { %2701 = vmatmul.mubr.msk.f32.vlgmr.msra.gmra.mrb[12].mxu0 %vm4063_vm3, %v2486_v29 }
 0xd2f   :  { %v2501_v32 = vpop.permute.xlu1 %2500 }
 0xd30   :  { %v2588_v43 = vpop.permute.xlu0 %2587 }
 0xdfe   :  { %v2572_v33 = vpop.f32.mrb[12].mxu0 }
 0xdff   :  { %v2573_v63 = vadd.f32 %v2572_v33, %v2501_v32  ;;  %v2574_v25 = vpop.f32.mrb[13].mxu0 }
 0xe00   :  { %v2575_v30 = vadd.f32 %v2574_v25, %v2501_v32 }
 0xe01   :  { %v2577_v34 = vmax.f32 %v2573_v63, 0.0 }
 0xe02   :  { %v2578_v35 = vmax.f32 %v2575_v30, 0.0 }
 0xe03   :  { %v2579_v36 = vadd.f32 %v2577_v34, %v3892_v39 }
 0xe04   :  { %v2580_v37 = vadd.f32 %v2578_v35, %v3894_v40 }
 0xe05   :  { %v2581_v41 = vmax.f32 %v2579_v36, 0.0 }
 0xe06   :  { %v2582_v38 = vmax.f32 %v2580_v37, 0.0 }
 0xe08   :  { %2593 = vmatprep.subr.mxu1 %v2582_v38 }
 0xe09   :  { %2594 = vmatpush1.msra.mxu1 %v2581_v41 }
 0xe0a   :  { %2702 = vmatmul.mubr.msk.f32.vlgmr.msra.gmra.mrb[12].mxu1 %vm535_vm5, %v2583_v42 }
 0xedd   :  { %v2659_v44 = vpop.f32.mrb[12].mxu1 }
 0xede   :  { %v2660_v45 = vadd.f32 %v2659_v44, %v2588_v43  ;;  %v2661_v46 = vpop.f32.mrb[13].mxu1 }
 0xedf   :  { %v2662_v47 = vadd.f32 %v2661_v46, %v2588_v43 }
 0xee0   :  { %2664 = vst [vmem:[#allocation26] sm:$0xf] %v2660_v45 }
 0xee1   :  { %2666 = vst [vmem:[#allocation26 + $0x4] sm:$0xf] %v2662_v47 }
 0xee2   :  { %3266 = shalt.err (!%p3263_p4)
}
 0xee3   :  { %s4064_s30 = sld [smem:[#allocation46_spill]] }
 0xee9   :  { %s3267_s27 = scalar_lea.hbm %s4064_s30, 128 }
 0xeea   :  { %p3268_p5 = scmp.ne.s32.totalorder %s4064_s30, %s3267_s27  ;;  %p3271_p6 = scmp.lt.u32.totalorder %s3267_s27, %s4064_s30 }
 0xeec   :  { %p3273_p7 = pnand %p3271_p6, %p3268_p5 }
 0xeee   :  { %3276 = shalt.err (!%p3273_p7)
}
 0xeef   :  { %s3320_s7 = smov 64  }
 0xef0   :  { %2678 = dma.vmem_to_hbm [thread:$0]  %s2673_s29, 128, %s4064_s30, [#allocation5], %s3320_s7, %s3320_s7, %s3315_s0  }
 0xef1   :  { %3293 = dma.done.wait [#allocation5], 128  }
 0xef2   :  { %3294 = vsyncadd [#allocation5], 4294967168 }
 0xef3   :  { %2682 = vsyncpa [#allocation4], 1 }
 0xef4   :  { %2683 = vsyncpa [#allocation7], 1 }
 0xef5   :  { %2684 = vsyncpa [#allocation10], 1 }
 0xef6   :  { %2685 = vsyncpa [#allocation13], 1 }
 0xef7   :  { %2686 = vsyncpa [#allocation16], 1 }
 0xef8   :  { %2687 = vsyncpa [#allocation19], 1 }
 0xef9   :  { %2688 = vsyncpa [#allocation22], 1 }
 0xefa   :  { %2689 = vsyncpa [#allocation25], 1 }
 0xefb   :  { %2690 = vsyncpa [#allocation5], 1 }

</bundles_post_ra>
